<compile_context>
chip_gen: v6e
topology: v6e:2x2x1
jax: 0.10.0
libtpu: 0.0.40
codegen_flags: <defaults>
</compile_context>

<pallas_src>
import functools

import jax
import jax.numpy as jnp
from jax.experimental import pallas as pl
from jax.experimental.pallas import tpu as pltpu

ROW_TILE = 256        # row tile for the simple MLP kernels
EDGE_TILE = 512       # default edge tile (must be a multiple of 128)


def _round_up(x, m):
    return (x + m - 1) // m * m


def _pad_rows(a, rp):
    r = a.shape[0]
    return a if r == rp else jnp.pad(a, ((0, rp - r), (0, 0)))


def _silu(x):
    return x * jax.nn.sigmoid(x)


def _mxdot(a, b):
    # MXU matmul: bf16 operands, f32 accumulation.
    return jnp.dot(a.astype(jnp.bfloat16), b.astype(jnp.bfloat16),
                   preferred_element_type=jnp.float32)


# ------------------------------------------------------------------ simple MLP kernels

def _linear_kernel(x_ref, w_ref, b_ref, o_ref):
    o_ref[...] = _mxdot(x_ref[...], w_ref[...]) + b_ref[...]


def _mlp2_kernel(x_ref, w1_ref, b1_ref, w2_ref, b2_ref, o_ref):
    t = _silu(_mxdot(x_ref[...], w1_ref[...]) + b1_ref[...])
    o_ref[...] = _mxdot(t, w2_ref[...]) + b2_ref[...]


def _mlp2_mask_kernel(x_ref, w1_ref, b1_ref, w2_ref, b2_ref, m_ref, o_ref):
    t = _silu(_mxdot(x_ref[...], w1_ref[...]) + b1_ref[...])
    o_ref[...] = (_mxdot(t, w2_ref[...]) + b2_ref[...]) * m_ref[...]


def linear(x, w, b, *, row_tile=ROW_TILE):
    R, K = x.shape
    F = w.shape[1]
    TR = min(row_tile, _round_up(R, 8))
    Rp = _round_up(R, TR)
    out = pl.pallas_call(
        _linear_kernel,
        grid=(Rp // TR,),
        in_specs=[pl.BlockSpec((TR, K), lambda i: (i, 0)),
                  pl.BlockSpec((K, F), lambda i: (0, 0)),
                  pl.BlockSpec((1, F), lambda i: (0, 0))],
        out_specs=pl.BlockSpec((TR, F), lambda i: (i, 0)),
        out_shape=jax.ShapeDtypeStruct((Rp, F), jnp.float32),
        compiler_params=pltpu.CompilerParams(dimension_semantics=("parallel",)),
    )(_pad_rows(x, Rp), w.astype(jnp.bfloat16), b)
    return out[:R]


def mlp2(x, w1, b1, w2, b2, *, row_tile=ROW_TILE):
    R, K = x.shape
    H1, F = w1.shape[1], w2.shape[1]
    TR = min(row_tile, _round_up(R, 8))
    Rp = _round_up(R, TR)
    out = pl.pallas_call(
        _mlp2_kernel,
        grid=(Rp // TR,),
        in_specs=[pl.BlockSpec((TR, K), lambda i: (i, 0)),
                  pl.BlockSpec((K, H1), lambda i: (0, 0)),
                  pl.BlockSpec((1, H1), lambda i: (0, 0)),
                  pl.BlockSpec((H1, F), lambda i: (0, 0)),
                  pl.BlockSpec((1, F), lambda i: (0, 0))],
        out_specs=pl.BlockSpec((TR, F), lambda i: (i, 0)),
        out_shape=jax.ShapeDtypeStruct((Rp, F), jnp.float32),
        compiler_params=pltpu.CompilerParams(dimension_semantics=("parallel",)),
    )(_pad_rows(x, Rp), w1.astype(jnp.bfloat16), b1, w2.astype(jnp.bfloat16), b2)
    return out[:R]


def mlp2_masked(x, w1, b1, w2, b2, mask, *, row_tile=ROW_TILE):
    # node_dec followed by `* node_mask`, fused in one kernel.
    R, K = x.shape
    H1, F = w1.shape[1], w2.shape[1]
    TR = min(row_tile, _round_up(R, 8))
    Rp = _round_up(R, TR)
    out = pl.pallas_call(
        _mlp2_mask_kernel,
        grid=(Rp // TR,),
        in_specs=[pl.BlockSpec((TR, K), lambda i: (i, 0)),
                  pl.BlockSpec((K, H1), lambda i: (0, 0)),
                  pl.BlockSpec((1, H1), lambda i: (0, 0)),
                  pl.BlockSpec((H1, F), lambda i: (0, 0)),
                  pl.BlockSpec((1, F), lambda i: (0, 0)),
                  pl.BlockSpec((TR, 1), lambda i: (i, 0))],
        out_specs=pl.BlockSpec((TR, F), lambda i: (i, 0)),
        out_shape=jax.ShapeDtypeStruct((Rp, F), jnp.float32),
        compiler_params=pltpu.CompilerParams(dimension_semantics=("parallel",)),
    )(_pad_rows(x, Rp), w1.astype(jnp.bfloat16), b1, w2.astype(jnp.bfloat16), b2,
      _pad_rows(mask, Rp))
    return out[:R]


# ------------------------------------------------------------------ fused E_GCL stack

def _gcl_stack_kernel(h0_ref, nattr_ref, row_s_ref, col_s_ref, row_l_ref,
                      radial_ref, eattr_ref, emask_ref,
                      w_hr_ref, w_hc_ref, w_rad_ref, w_ea_ref, be1_ref,
                      we2_ref, be2_ref, wa_t_ref, ba_ref,
                      wn_h_ref, wn_agg_ref, wn_na_ref, bn1_ref, wn2_ref, bn2_ref,
                      hout_ref, hcur_ref, agg_ref):
    l = pl.program_id(0)          # layer index (sequential carry: hcur)
    k = pl.program_id(1)          # edge-tile index (sequential carry: agg)
    nl = pl.num_programs(0)
    nk = pl.num_programs(1)
    N = hcur_ref.shape[0]
    TE = row_s_ref.shape[0]

    @pl.when(jnp.logical_and(l == 0, k == 0))
    def _():
        hcur_ref[...] = h0_ref[...]          # h stays VMEM-resident for all layers

    @pl.when(k == 0)
    def _():
        agg_ref[...] = jnp.zeros_like(agg_ref)

    h = hcur_ref[...]                                            # (N, H) f32

    # --- gather h[row], h[col] with per-tile one-hots (exact f32 MXU gathers) ---
    gath_iota = jax.lax.broadcasted_iota(jnp.int32, (TE, N), 1)
    g_row = (gath_iota == row_s_ref[...]).astype(jnp.float32)    # (TE, N)
    g_col = (gath_iota == col_s_ref[...]).astype(jnp.float32)
    h_row = jnp.dot(g_row, h, preferred_element_type=jnp.float32)   # (TE, H)
    h_col = jnp.dot(g_col, h, preferred_element_type=jnp.float32)

    # --- edge MLP: first matmul split over the concat slices (no HBM concat) ---
    t = (_mxdot(h_row, w_hr_ref[0])
         + _mxdot(h_col, w_hc_ref[0])
         + radial_ref[...] * w_rad_ref[0]                        # (TE,1)*(1,H)
         + _mxdot(eattr_ref[...], w_ea_ref[0])
         + be1_ref[0])
    t = _silu(t)
    e = _silu(_mxdot(t, we2_ref[0]) + be2_ref[0])                # (TE, H)

    # --- attention head as a lane reduction (avoids a 1-wide MXU pass) ---
    att = jax.nn.sigmoid(jnp.sum(e * wa_t_ref[0], axis=-1, keepdims=True)
                         + ba_ref[0])
    edge_feat = e * att * emask_ref[...]                         # (TE, H)

    # --- scatter-add by `row` into the (N, H) accumulator (exact f32) ---
    scat_iota = jax.lax.broadcasted_iota(jnp.int32, (N, TE), 0)
    g_scat = (scat_iota == row_l_ref[...]).astype(jnp.float32)   # (N, TE)
    agg_ref[...] += jnp.dot(g_scat, edge_feat, preferred_element_type=jnp.float32)

    # --- node MLP + recurrent residual, once all edge tiles are accumulated ---
    @pl.when(k == nk - 1)
    def _():
        t2 = (_mxdot(h, wn_h_ref[0])
              + _mxdot(agg_ref[...], wn_agg_ref[0])
              + _mxdot(nattr_ref[...], wn_na_ref[0])
              + bn1_ref[0])
        t2 = _silu(t2)
        h_new = h + _mxdot(t2, wn2_ref[0]) + bn2_ref[0]
        hcur_ref[...] = h_new                 # carry into the next layer

        @pl.when(l == nl - 1)
        def _():
            hout_ref[...] = h_new             # final write-back to HBM


def e_gcl_stack(layer_params, h, node_attr, row_s, col_s, row_l, radial, edge_attr,
                edge_mask, *, n_layers, edge_tile):
    """All n_layers E_GCL_mask layers of one graph, fused in a single pallas_call."""
    N, H = h.shape
    A = node_attr.shape[1]
    Fe = edge_attr.shape[1]
    E_pad = radial.shape[0]
    n_tiles = E_pad // edge_tile
    bf16 = jnp.bfloat16

    def stack(fn, dtype=None):
        arr = jnp.stack([fn(layer_params[i]) for i in range(n_layers)])
        return arr.astype(dtype) if dtype is not None else arr

    # split concat weights into per-slice partial-matmul weights, stacked per layer
    w_hr = stack(lambda lp: lp["e1"][0][:H], bf16)               # (L,H,H)
    w_hc = stack(lambda lp: lp["e1"][0][H:2 * H], bf16)          # (L,H,H)
    w_rad = stack(lambda lp: lp["e1"][0][2 * H:2 * H + 1])       # (L,1,H) f32 (elementwise)
    w_ea = stack(lambda lp: lp["e1"][0][2 * H + 1:], bf16)       # (L,Fe,H)
    be1 = stack(lambda lp: lp["e1"][1])                          # (L,1,H)
    we2 = stack(lambda lp: lp["e2"][0], bf16)                    # (L,H,H)
    be2 = stack(lambda lp: lp["e2"][1])                          # (L,1,H)
    wa_t = stack(lambda lp: lp["att"][0].reshape(1, H))          # (L,1,H) lane layout
    ba = stack(lambda lp: lp["att"][1])                          # (L,1,1)
    wn_h = stack(lambda lp: lp["n1"][0][:H], bf16)               # (L,H,H)
    wn_agg = stack(lambda lp: lp["n1"][0][H:2 * H], bf16)        # (L,H,H)
    wn_na = stack(lambda lp: lp["n1"][0][2 * H:], bf16)          # (L,A,H)
    bn1 = stack(lambda lp: lp["n1"][1])                          # (L,1,H)
    wn2 = stack(lambda lp: lp["n2"][0], bf16)                    # (L,H,H)
    bn2 = stack(lambda lp: lp["n2"][1])                          # (L,1,H)

    res = lambda l, k: (0, 0)        # resident node blocks (loaded once)
    lay = lambda l, k: (l, 0, 0)     # per-layer weight blocks (re-fetched per layer)
    tile_s = lambda l, k: (k, 0)     # (TE, c) edge tiles
    tile_l = lambda l, k: (0, k)     # (1, TE) edge tiles

    grid_spec = pltpu.PrefetchScalarGridSpec(
        num_scalar_prefetch=0,
        grid=(n_layers, n_tiles),
        in_specs=[
            pl.BlockSpec((N, H), res),              # h (post-embedding)
            pl.BlockSpec((N, A), res),              # node_attr
            pl.BlockSpec((edge_tile, 1), tile_s),   # row (sublane layout)
            pl.BlockSpec((edge_tile, 1), tile_s),   # col (sublane layout)
            pl.BlockSpec((1, edge_tile), tile_l),   # row (lane layout, for scatter)
            pl.BlockSpec((edge_tile, 1), tile_s),   # radial
            pl.BlockSpec((edge_tile, Fe), tile_s),  # edge_attr
            pl.BlockSpec((edge_tile, 1), tile_s),   # edge_mask
            pl.BlockSpec((1, H, H), lay),           # w_hr
            pl.BlockSpec((1, H, H), lay),           # w_hc
            pl.BlockSpec((1, 1, H), lay),           # w_rad
            pl.BlockSpec((1, Fe, H), lay),          # w_ea
            pl.BlockSpec((1, 1, H), lay),           # be1
            pl.BlockSpec((1, H, H), lay),           # we2
            pl.BlockSpec((1, 1, H), lay),           # be2
            pl.BlockSpec((1, 1, H), lay),           # wa_t
            pl.BlockSpec((1, 1, 1), lay),           # ba
            pl.BlockSpec((1, H, H), lay),           # wn_h
            pl.BlockSpec((1, H, H), lay),           # wn_agg
            pl.BlockSpec((1, A, H), lay),           # wn_na
            pl.BlockSpec((1, 1, H), lay),           # bn1
            pl.BlockSpec((1, H, H), lay),           # wn2
            pl.BlockSpec((1, 1, H), lay),           # bn2
        ],
        out_specs=pl.BlockSpec((N, H), res),
        scratch_shapes=[pltpu.VMEM((N, H), jnp.float32),    # hcur (carried over layers)
                        pltpu.VMEM((N, H), jnp.float32)],   # agg  (carried over tiles)
    )
    return pl.pallas_call(
        _gcl_stack_kernel,
        grid_spec=grid_spec,
        out_shape=jax.ShapeDtypeStruct((N, H), jnp.float32),
        compiler_params=pltpu.CompilerParams(
            dimension_semantics=("arbitrary", "arbitrary")),
    )(h, node_attr, row_s, col_s, row_l, radial, edge_attr, edge_mask,
      w_hr, w_hc, w_rad, w_ea, be1, we2, be2, wa_t, ba,
      wn_h, wn_agg, wn_na, bn1, wn2, bn2)


# ------------------------------------------------------------------ params

def init_linear(key, fan_in, fan_out):
    k1, k2 = jax.random.split(key)
    bound = 1.0 / float(fan_in) ** 0.5
    w = jax.random.uniform(k1, (fan_in, fan_out), jnp.float32, -bound, bound)
    b = jax.random.uniform(k2, (1, fan_out), jnp.float32, -bound, bound)
    return w, b


def init_megnn_params(key, n_graphs, n_layers, in_node_nf, in_edge_nf, hidden_nf):
    H = hidden_nf
    keys = iter(jax.random.split(key, 16 + n_graphs * n_layers * 8 + n_graphs * 4))
    p = {}
    p["emb"] = init_linear(next(keys), in_node_nf, H)
    for j in range(n_graphs):
        for i in range(n_layers):
            lp = {}
            lp["e1"] = init_linear(next(keys), 2 * H + 1 + in_edge_nf, H)
            lp["e2"] = init_linear(next(keys), H, H)
            lp["n1"] = init_linear(next(keys), H + H + in_node_nf, H)
            lp["n2"] = init_linear(next(keys), H, H)
            lp["att"] = init_linear(next(keys), H, 1)
            p[f"gcl_{j}_{i}"] = lp
    for j in range(n_graphs):
        p[f"node_dec_{j}"] = (init_linear(next(keys), H, H),
                              init_linear(next(keys), H, H))
    p["grand_dec"] = (init_linear(next(keys), n_graphs * H, n_graphs * H),
                      init_linear(next(keys), n_graphs * H, 1))
    return p


# ------------------------------------------------------------------ forward

def megnn_forward(params, h0, x, all_edges, all_edge_attr, node_masks, edge_masks,
                  *, n_nodes, n_graphs, n_layers, hidden_nf, edge_tile=EDGE_TILE):
    assert edge_tile % 128 == 0, "edge_tile must be a multiple of 128"
    hf = []
    w_emb, b_emb = params["emb"]
    for j in range(n_graphs):
        h = linear(h0[j], w_emb, b_emb)
        node_mask = node_masks[j]
        edge_mask = edge_masks[j]
        row, col = all_edges[j]
        node_attr = h0[j]
        coord = x[j]
        n_node = n_nodes[j]                      # static python int
        edge_attr = all_edge_attr[j]

        # coord is never updated in E_GCL_mask.forward -> radial is layer-invariant
        coord_diff = coord[row] - coord[col]
        radial = jnp.sum(coord_diff * coord_diff, axis=1, keepdims=True)

        # pad edge arrays once per graph to a multiple of the edge tile
        E = row.shape[0]
        E_pad = _round_up(max(E, edge_tile), edge_tile)
        pad = E_pad - E
        row_p = jnp.pad(row.astype(jnp.int32), (0, pad))
        col_p = jnp.pad(col.astype(jnp.int32), (0, pad))
        radial_p = jnp.pad(radial, ((0, pad), (0, 0)))
        edge_attr_p = jnp.pad(edge_attr, ((0, pad), (0, 0)))
        edge_mask_p = jnp.pad(edge_mask, ((0, pad), (0, 0)))     # padded edges masked out
        row_s = row_p.reshape(E_pad, 1)
        col_s = col_p.reshape(E_pad, 1)
        row_l = row_p.reshape(1, E_pad)

        # all n_layers E_GCL_mask layers of graph j in one fused kernel
        layer_params = [params[f"gcl_{j}_{i}"] for i in range(n_layers)]
        h = e_gcl_stack(layer_params, h, node_attr, row_s, col_s, row_l,
                        radial_p, edge_attr_p, edge_mask_p,
                        n_layers=n_layers, edge_tile=edge_tile)

        (wd1, bd1), (wd2, bd2) = params[f"node_dec_{j}"]
        hdec = mlp2_masked(h, wd1, bd1, wd2, bd2, node_mask)
        # h.view(-1, n_node, H).sum(dim=1): contiguous per-molecule pooling
        n_mol = h.shape[0] // n_node
        hf.append(hdec.reshape(n_mol, n_node, hidden_nf).sum(axis=1))

    combined = jnp.concatenate(hf, axis=1)                       # (B, n_graphs*H)
    (wg1, bg1), (wg2, bg2) = params["grand_dec"]
    pred = mlp2(combined, wg1, bg1, wg2, bg2)                    # (B, 1)
    return pred[:, 0]


# ------------------------------------------------------------------ pure-JAX reference

def ref_forward(params, h0, x, all_edges, all_edge_attr, node_masks, edge_masks,
                n_nodes, n_graphs, n_layers, hidden_nf):
    silu = _silu
    w_emb, b_emb = params["emb"]
    hf = []
    for j in range(n_graphs):
        h = h0[j] @ w_emb + b_emb
        row, col = all_edges[j]
        node_attr = h0[j]
        coord = x[j]
        edge_attr = all_edge_attr[j]
        edge_mask = edge_masks[j]
        node_mask = node_masks[j]
        radial = jnp.sum((coord[row] - coord[col]) ** 2, axis=1, keepdims=True)
        for i in range(n_layers):
            lp = params[f"gcl_{j}_{i}"]
            (we1, be1), (we2, be2) = lp["e1"], lp["e2"]
            (wn1, bn1), (wn2, bn2) = lp["n1"], lp["n2"]
            wa, ba = lp["att"]
            ein = jnp.concatenate([h[row], h[col], radial, edge_attr], axis=1)
            e = silu(silu(ein @ we1 + be1) @ we2 + be2)
            att = jax.nn.sigmoid(e @ wa + ba)
            ef = e * att * edge_mask
            agg = jnp.zeros((h.shape[0], hidden_nf), jnp.float32).at[row].add(ef)
            nin = jnp.concatenate([h, agg, node_attr], axis=1)
            h = h + (silu(nin @ wn1 + bn1) @ wn2 + bn2)
        (wd1, bd1), (wd2, bd2) = params[f"node_dec_{j}"]
        hd = (silu(h @ wd1 + bd1) @ wd2 + bd2) * node_mask
        hf.append(hd.reshape(-1, n_nodes[j], hidden_nf).sum(axis=1))
    combined = jnp.concatenate(hf, axis=1)
    (wg1, bg1), (wg2, bg2) = params["grand_dec"]
    pred = silu(combined @ wg1 + bg1) @ wg2 + bg2
    return pred[:, 0]


# ------------------------------------------------------------------ main

if __name__ == "__main__":
    n_graphs, n_layers = 2, 2
    in_node_nf, in_edge_nf, hidden_nf = 4, 2, 32
    batch_size, n_node = 4, 10
    N = batch_size * n_node

    key = jax.random.PRNGKey(0)
    kp, kh, kx, ke = jax.random.split(key, 4)
    params = init_megnn_params(kp, n_graphs, n_layers, in_node_nf, in_edge_nf, hidden_nf)

    # fully-connected edges within each molecule of the batch
    rows, cols = [], []
    for b in range(batch_size):
        for a in range(n_node):
            for c in range(n_node):
                if a != c:
                    rows.append(b * n_node + a)
                    cols.append(b * n_node + c)
    row = jnp.array(rows, dtype=jnp.int32)
    col = jnp.array(cols, dtype=jnp.int32)
    E = row.shape[0]

    h0 = jax.random.normal(kh, (n_graphs, N, in_node_nf), jnp.float32)
    x = jax.random.normal(kx, (n_graphs, N, 3), jnp.float32)
    all_edge_attr = jax.random.normal(ke, (n_graphs, E, in_edge_nf), jnp.float32)

    # node/edge masks (mask out the last node of every molecule)
    nm = jnp.ones((N, 1), jnp.float32).at[n_node - 1::n_node].set(0.0)
    node_masks = jnp.stack([nm] * n_graphs)                      # (n_graphs, N, 1)
    em = (nm[row] * nm[col]).astype(jnp.float32)                 # (E, 1)
    edge_masks = jnp.stack([em] * n_graphs)                      # (n_graphs, E, 1)

    all_edges = [(row, col)] * n_graphs
    n_nodes = (n_node,) * n_graphs                               # static (not traced)

    fwd = jax.jit(functools.partial(
        megnn_forward, n_graphs=n_graphs, n_layers=n_layers, hidden_nf=hidden_nf,
        n_nodes=n_nodes, edge_tile=128))                         # 128 -> 3 edge tiles
    pred = jax.block_until_ready(
        fwd(params, h0, x, all_edges, all_edge_attr, node_masks, edge_masks))

    ref = jax.block_until_ready(
        ref_forward(params, h0, x, all_edges, all_edge_attr, node_masks, edge_masks,
                    n_nodes, n_graphs, n_layers, hidden_nf))

    assert pred.shape == (batch_size,)
    assert bool(jnp.all(jnp.isfinite(pred)))
    err = float(jnp.max(jnp.abs(pred - ref)))
    tol = 0.1 * (1.0 + float(jnp.max(jnp.abs(ref))))             # loose: bf16 matmuls
    assert err < tol, (err, tol)
    print("KERNEL_OK")
</pallas_src>

<mosaic_0001>
module attributes {stable_mosaic.version = 11 : i64} {
  func.func @_linear_kernel(%arg0: i32, %arg1: memref<40x4xf32, #tpu.memory_space<vmem>>, %arg2: memref<4x32xbf16, #tpu.memory_space<vmem>>, %arg3: memref<1x32xf32, #tpu.memory_space<vmem>>, %arg4: memref<40x32xf32, #tpu.memory_space<vmem>>) attributes {dimension_semantics = [#tpu.dimension_semantics<parallel>], iteration_bounds = array<i64: 1>, scalar_prefetch = 0 : i64, scratch_operands = 0 : i64, tpu.core_type = #tpu.core_type<tc>, window_params = [{transform_indices = @transform_0, window_bounds = array<i64: 40, 4>}, {pipeline_mode = #tpu.pipeline_mode<synchronous>, transform_indices = @transform_1, window_bounds = array<i64: 4, 32>}, {pipeline_mode = #tpu.pipeline_mode<synchronous>, transform_indices = @transform_2, window_bounds = array<i64: 1, 32>}, {transform_indices = @transform_3, window_bounds = array<i64: 40, 32>}]} {
    %c0 = arith.constant 0 : index
    %c0_0 = arith.constant 0 : index
    %0 = vector.load %arg1[%c0, %c0_0] : memref<40x4xf32, #tpu.memory_space<vmem>>, vector<40x4xf32>
    %c0_1 = arith.constant 0 : index
    %c0_2 = arith.constant 0 : index
    %1 = vector.load %arg2[%c0_1, %c0_2] : memref<4x32xbf16, #tpu.memory_space<vmem>>, vector<4x32xbf16>
    %2 = arith.truncf %0 : vector<40x4xf32> to vector<40x4xbf16>
    %cst = arith.constant dense<0.000000e+00> : vector<40x32xf32>
    %3 = tpu.matmul %2, %1, %cst {dimension_numbers = #tpu.dot_dimension_numbers<[1], [0], [0], [1], [0, 0, 1, 1], [], []>} : vector<40x4xbf16>, vector<4x32xbf16>, vector<40x32xf32> -> vector<40x32xf32>
    %c0_3 = arith.constant 0 : index
    %c0_4 = arith.constant 0 : index
    %4 = vector.load %arg3[%c0_3, %c0_4] : memref<1x32xf32, #tpu.memory_space<vmem>>, vector<1x32xf32>
    %5 = vector.broadcast %4 : vector<1x32xf32> to vector<40x32xf32>
    %6 = arith.addf %3, %5 : vector<40x32xf32>
    %c0_5 = arith.constant 0 : index
    %c0_6 = arith.constant 0 : index
    %7 = vector.load %arg4[%c0_5, %c0_6] : memref<40x32xf32, #tpu.memory_space<vmem>>, vector<40x32xf32>
    tpu.vector_store %arg4[%c0_5, %c0_6], %6 {strides = array<i32>} : memref<40x32xf32, #tpu.memory_space<vmem>>, vector<40x32xf32>,
    return
  }
  func.func @transform_0(%arg0: i32) -> (i32, i32) {
    %c0_i32 = arith.constant 0 : i32
    %c0_i32_0 = arith.constant 0 : i32
    return %arg0, %c0_i32 : i32, i32
  }
  func.func @transform_1(%arg0: i32) -> (i32, i32) {
    %c0_i32 = arith.constant 0 : i32
    %c0_i32_0 = arith.constant 0 : i32
    %c0_i32_1 = arith.constant 0 : i32
    return %c0_i32, %c0_i32_0 : i32, i32
  }
  func.func @transform_2(%arg0: i32) -> (i32, i32) {
    %c0_i32 = arith.constant 0 : i32
    %c0_i32_0 = arith.constant 0 : i32
    %c0_i32_1 = arith.constant 0 : i32
    return %c0_i32, %c0_i32_0 : i32, i32
  }
  func.func @transform_3(%arg0: i32) -> (i32, i32) {
    %c0_i32 = arith.constant 0 : i32
    %c0_i32_0 = arith.constant 0 : i32
    return %arg0, %c0_i32 : i32, i32
  }
}

module attributes {stable_mosaic.version = 11 : i64} {
  func.func @_mlp2_mask_kernel(%arg0: i32, %arg1: memref<40x32xf32, #tpu.memory_space<vmem>>, %arg2: memref<32x32xbf16, #tpu.memory_space<vmem>>, %arg3: memref<1x32xf32, #tpu.memory_space<vmem>>, %arg4: memref<32x32xbf16, #tpu.memory_space<vmem>>, %arg5: memref<1x32xf32, #tpu.memory_space<vmem>>, %arg6: memref<40x1xf32, #tpu.memory_space<vmem>>, %arg7: memref<40x32xf32, #tpu.memory_space<vmem>>) attributes {dimension_semantics = [#tpu.dimension_semantics<parallel>], iteration_bounds = array<i64: 1>, scalar_prefetch = 0 : i64, scratch_operands = 0 : i64, tpu.core_type = #tpu.core_type<tc>, window_params = [{transform_indices = @transform_0, window_bounds = array<i64: 40, 32>}, {pipeline_mode = #tpu.pipeline_mode<synchronous>, transform_indices = @transform_1, window_bounds = array<i64: 32, 32>}, {pipeline_mode = #tpu.pipeline_mode<synchronous>, transform_indices = @transform_2, window_bounds = array<i64: 1, 32>}, {pipeline_mode = #tpu.pipeline_mode<synchronous>, transform_indices = @transform_3, window_bounds = array<i64: 32, 32>}, {pipeline_mode = #tpu.pipeline_mode<synchronous>, transform_indices = @transform_4, window_bounds = array<i64: 1, 32>}, {transform_indices = @transform_5, window_bounds = array<i64: 40, 1>}, {transform_indices = @transform_6, window_bounds = array<i64: 40, 32>}]} {
    %c0 = arith.constant 0 : index
    %c0_0 = arith.constant 0 : index
    %0 = vector.load %arg1[%c0, %c0_0] : memref<40x32xf32, #tpu.memory_space<vmem>>, vector<40x32xf32>
    %c0_1 = arith.constant 0 : index
    %c0_2 = arith.constant 0 : index
    %1 = vector.load %arg2[%c0_1, %c0_2] : memref<32x32xbf16, #tpu.memory_space<vmem>>, vector<32x32xbf16>
    %2 = arith.truncf %0 : vector<40x32xf32> to vector<40x32xbf16>
    %cst = arith.constant dense<0.000000e+00> : vector<40x32xf32>
    %3 = tpu.matmul %2, %1, %cst {dimension_numbers = #tpu.dot_dimension_numbers<[1], [0], [0], [1], [0, 0, 1, 1], [], []>} : vector<40x32xbf16>, vector<32x32xbf16>, vector<40x32xf32> -> vector<40x32xf32>
    %c0_3 = arith.constant 0 : index
    %c0_4 = arith.constant 0 : index
    %4 = vector.load %arg3[%c0_3, %c0_4] : memref<1x32xf32, #tpu.memory_space<vmem>>, vector<1x32xf32>
    %5 = vector.broadcast %4 : vector<1x32xf32> to vector<40x32xf32>
    %6 = arith.addf %3, %5 : vector<40x32xf32>
    %7 = arith.negf %6 : vector<40x32xf32>
    %8 = math.exp %7 : vector<40x32xf32>
    %cst_5 = arith.constant 1.000000e+00 : f32
    %9 = vector.broadcast %cst_5 : f32 to vector<40x32xf32>
    %10 = arith.addf %9, %8 : vector<40x32xf32>
    %11 = arith.divf %9, %10 : vector<40x32xf32>
    %12 = arith.mulf %6, %11 : vector<40x32xf32>
    %c0_6 = arith.constant 0 : index
    %c0_7 = arith.constant 0 : index
    %13 = vector.load %arg4[%c0_6, %c0_7] : memref<32x32xbf16, #tpu.memory_space<vmem>>, vector<32x32xbf16>
    %14 = arith.truncf %12 : vector<40x32xf32> to vector<40x32xbf16>
    %cst_8 = arith.constant dense<0.000000e+00> : vector<40x32xf32>
    %15 = tpu.matmul %14, %13, %cst_8 {dimension_numbers = #tpu.dot_dimension_numbers<[1], [0], [0], [1], [0, 0, 1, 1], [], []>} : vector<40x32xbf16>, vector<32x32xbf16>, vector<40x32xf32> -> vector<40x32xf32>
    %c0_9 = arith.constant 0 : index
    %c0_10 = arith.constant 0 : index
    %16 = vector.load %arg5[%c0_9, %c0_10] : memref<1x32xf32, #tpu.memory_space<vmem>>, vector<1x32xf32>
    %17 = vector.broadcast %16 : vector<1x32xf32> to vector<40x32xf32>
    %18 = arith.addf %15, %17 : vector<40x32xf32>
    %c0_11 = arith.constant 0 : index
    %c0_12 = arith.constant 0 : index
    %19 = vector.load %arg6[%c0_11, %c0_12] : memref<40x1xf32, #tpu.memory_space<vmem>>, vector<40x1xf32>
    %20 = vector.broadcast %19 : vector<40x1xf32> to vector<40x32xf32>
    %21 = arith.mulf %18, %20 : vector<40x32xf32>
    %c0_13 = arith.constant 0 : index
    %c0_14 = arith.constant 0 : index
    %22 = vector.load %arg7[%c0_13, %c0_14] : memref<40x32xf32, #tpu.memory_space<vmem>>, vector<40x32xf32>
    tpu.vector_store %arg7[%c0_13, %c0_14], %21 {strides = array<i32>} : memref<40x32xf32, #tpu.memory_space<vmem>>, vector<40x32xf32>,
    return
  }
  func.func @transform_0(%arg0: i32) -> (i32, i32) {
    %c0_i32 = arith.constant 0 : i32
    %c0_i32_0 = arith.constant 0 : i32
    return %arg0, %c0_i32 : i32, i32
  }
  func.func @transform_1(%arg0: i32) -> (i32, i32) {
    %c0_i32 = arith.constant 0 : i32
    %c0_i32_0 = arith.constant 0 : i32
    %c0_i32_1 = arith.constant 0 : i32
    return %c0_i32, %c0_i32_0 : i32, i32
  }
  func.func @transform_2(%arg0: i32) -> (i32, i32) {
    %c0_i32 = arith.constant 0 : i32
    %c0_i32_0 = arith.constant 0 : i32
    %c0_i32_1 = arith.constant 0 : i32
    return %c0_i32, %c0_i32_0 : i32, i32
  }
  func.func @transform_3(%arg0: i32) -> (i32, i32) {
    %c0_i32 = arith.constant 0 : i32
    %c0_i32_0 = arith.constant 0 : i32
    %c0_i32_1 = arith.constant 0 : i32
    return %c0_i32, %c0_i32_0 : i32, i32
  }
  func.func @transform_4(%arg0: i32) -> (i32, i32) {
    %c0_i32 = arith.constant 0 : i32
    %c0_i32_0 = arith.constant 0 : i32
    %c0_i32_1 = arith.constant 0 : i32
    return %c0_i32, %c0_i32_0 : i32, i32
  }
  func.func @transform_5(%arg0: i32) -> (i32, i32) {
    %c0_i32 = arith.constant 0 : i32
    %c0_i32_0 = arith.constant 0 : i32
    return %arg0, %c0_i32 : i32, i32
  }
  func.func @transform_6(%arg0: i32) -> (i32, i32) {
    %c0_i32 = arith.constant 0 : i32
    %c0_i32_0 = arith.constant 0 : i32
    return %arg0, %c0_i32 : i32, i32
  }
}

module attributes {stable_mosaic.version = 11 : i64} {
  func.func @_gcl_stack_kernel(%arg0: i32, %arg1: i32, %arg2: memref<40x32xf32, #tpu.memory_space<vmem>>, %arg3: memref<40x4xf32, #tpu.memory_space<vmem>>, %arg4: memref<128x1xi32, #tpu.memory_space<vmem>>, %arg5: memref<128x1xi32, #tpu.memory_space<vmem>>, %arg6: memref<1x128xi32, #tpu.memory_space<vmem>>, %arg7: memref<128x1xf32, #tpu.memory_space<vmem>>, %arg8: memref<128x2xf32, #tpu.memory_space<vmem>>, %arg9: memref<128x1xf32, #tpu.memory_space<vmem>>, %arg10: memref<1x32x32xbf16, #tpu.memory_space<vmem>>, %arg11: memref<1x32x32xbf16, #tpu.memory_space<vmem>>, %arg12: memref<1x1x32xf32, #tpu.memory_space<vmem>>, %arg13: memref<1x2x32xbf16, #tpu.memory_space<vmem>>, %arg14: memref<1x1x32xf32, #tpu.memory_space<vmem>>, %arg15: memref<1x32x32xbf16, #tpu.memory_space<vmem>>, %arg16: memref<1x1x32xf32, #tpu.memory_space<vmem>>, %arg17: memref<1x1x32xf32, #tpu.memory_space<vmem>>, %arg18: memref<1x1x1xf32, #tpu.memory_space<vmem>>, %arg19: memref<1x32x32xbf16, #tpu.memory_space<vmem>>, %arg20: memref<1x32x32xbf16, #tpu.memory_space<vmem>>, %arg21: memref<1x4x32xbf16, #tpu.memory_space<vmem>>, %arg22: memref<1x1x32xf32, #tpu.memory_space<vmem>>, %arg23: memref<1x32x32xbf16, #tpu.memory_space<vmem>>, %arg24: memref<1x1x32xf32, #tpu.memory_space<vmem>>, %arg25: memref<40x32xf32, #tpu.memory_space<vmem>>, %arg26: memref<40x32xf32, #tpu.memory_space<vmem>>, %arg27: memref<40x32xf32, #tpu.memory_space<vmem>>) attributes {dimension_semantics = [#tpu.dimension_semantics<arbitrary>, #tpu.dimension_semantics<arbitrary>], iteration_bounds = array<i64: 2, 3>, scalar_prefetch = 0 : i64, scratch_operands = 2 : i64, tpu.core_type = #tpu.core_type<tc>, window_params = [{pipeline_mode = #tpu.pipeline_mode<synchronous>, transform_indices = @transform_0, window_bounds = array<i64: 40, 32>}, {pipeline_mode = #tpu.pipeline_mode<synchronous>, transform_indices = @transform_1, window_bounds = array<i64: 40, 4>}, {transform_indices = @transform_2, window_bounds = array<i64: 128, 1>}, {transform_indices = @transform_3, window_bounds = array<i64: 128, 1>}, {transform_indices = @transform_4, window_bounds = array<i64: 1, 128>}, {transform_indices = @transform_5, window_bounds = array<i64: 128, 1>}, {transform_indices = @transform_6, window_bounds = array<i64: 128, 2>}, {transform_indices = @transform_7, window_bounds = array<i64: 128, 1>}, {transform_indices = @transform_8, window_bounds = array<i64: 1, 32, 32>}, {transform_indices = @transform_9, window_bounds = array<i64: 1, 32, 32>}, {transform_indices = @transform_10, window_bounds = array<i64: 1, 1, 32>}, {transform_indices = @transform_11, window_bounds = array<i64: 1, 2, 32>}, {transform_indices = @transform_12, window_bounds = array<i64: 1, 1, 32>}, {transform_indices = @transform_13, window_bounds = array<i64: 1, 32, 32>}, {transform_indices = @transform_14, window_bounds = array<i64: 1, 1, 32>}, {transform_indices = @transform_15, window_bounds = array<i64: 1, 1, 32>}, {transform_indices = @transform_16, window_bounds = array<i64: 1, 1, 1>}, {transform_indices = @transform_17, window_bounds = array<i64: 1, 32, 32>}, {transform_indices = @transform_18, window_bounds = array<i64: 1, 32, 32>}, {transform_indices = @transform_19, window_bounds = array<i64: 1, 4, 32>}, {transform_indices = @transform_20, window_bounds = array<i64: 1, 1, 32>}, {transform_indices = @transform_21, window_bounds = array<i64: 1, 32, 32>}, {transform_indices = @transform_22, window_bounds = array<i64: 1, 1, 32>}, {pipeline_mode = #tpu.pipeline_mode<synchronous>, transform_indices = @transform_23, window_bounds = array<i64: 40, 32>}]} {
    %c0_i32 = arith.constant 0 : i32
    %0 = arith.cmpi eq, %arg0, %c0_i32 : i32
    %c0_i32_0 = arith.constant 0 : i32
    %1 = arith.cmpi eq, %arg1, %c0_i32_0 : i32
    %2 = arith.andi %0, %1 : i1
    %3 = arith.extui %2 : i1 to i32
    %c0_i32_1 = arith.constant 0 : i32
    %4 = arith.cmpi ne, %3, %c0_i32_1 : i32
    scf.if %4 {
      %c0_59 = arith.constant 0 : index
      %c0_60 = arith.constant 0 : index
      %101 = vector.load %arg2[%c0_59, %c0_60] : memref<40x32xf32, #tpu.memory_space<vmem>>, vector<40x32xf32>
      %c0_61 = arith.constant 0 : index
      %c0_62 = arith.constant 0 : index
      %102 = vector.load %arg26[%c0_61, %c0_62] : memref<40x32xf32, #tpu.memory_space<vmem>>, vector<40x32xf32>
      tpu.vector_store %arg26[%c0_61, %c0_62], %101 {strides = array<i32>} : memref<40x32xf32, #tpu.memory_space<vmem>>, vector<40x32xf32>,
    } else {
    }
    %c0_i32_2 = arith.constant 0 : i32
    %5 = arith.cmpi eq, %arg1, %c0_i32_2 : i32
    %6 = arith.extui %5 : i1 to i32
    %c0_i32_3 = arith.constant 0 : i32
    %7 = arith.cmpi ne, %6, %c0_i32_3 : i32
    scf.if %7 {
      %cst_59 = arith.constant 0.000000e+00 : f32
      %101 = vector.broadcast %cst_59 : f32 to vector<40x32xf32>
      %c0_60 = arith.constant 0 : index
      %c0_61 = arith.constant 0 : index
      %102 = vector.load %arg27[%c0_60, %c0_61] : memref<40x32xf32, #tpu.memory_space<vmem>>, vector<40x32xf32>
      tpu.vector_store %arg27[%c0_60, %c0_61], %101 {strides = array<i32>} : memref<40x32xf32, #tpu.memory_space<vmem>>, vector<40x32xf32>,
    } else {
    }
    %c0 = arith.constant 0 : index
    %c0_4 = arith.constant 0 : index
    %8 = vector.load %arg26[%c0, %c0_4] : memref<40x32xf32, #tpu.memory_space<vmem>>, vector<40x32xf32>
    %9 = tpu.iota {dimensions = array<i32: 1>} : vector<128x40xi32>
    %c0_5 = arith.constant 0 : index
    %c0_6 = arith.constant 0 : index
    %10 = vector.load %arg4[%c0_5, %c0_6] : memref<128x1xi32, #tpu.memory_space<vmem>>, vector<128x1xi32>
    %11 = vector.broadcast %10 : vector<128x1xi32> to vector<128x40xi32>
    %12 = arith.cmpi eq, %9, %11 : vector<128x40xi32>
    %13 = arith.extui %12 : vector<128x40xi1> to vector<128x40xi32>
    %14 = arith.sitofp %13 : vector<128x40xi32> to vector<128x40xf32>
    %c0_7 = arith.constant 0 : index
    %c0_8 = arith.constant 0 : index
    %15 = vector.load %arg5[%c0_7, %c0_8] : memref<128x1xi32, #tpu.memory_space<vmem>>, vector<128x1xi32>
    %16 = vector.broadcast %15 : vector<128x1xi32> to vector<128x40xi32>
    %17 = arith.cmpi eq, %9, %16 : vector<128x40xi32>
    %18 = arith.extui %17 : vector<128x40xi1> to vector<128x40xi32>
    %19 = arith.sitofp %18 : vector<128x40xi32> to vector<128x40xf32>
    %cst = arith.constant dense<0.000000e+00> : vector<128x32xf32>
    %20 = tpu.matmul %14, %8, %cst {dimension_numbers = #tpu.dot_dimension_numbers<[1], [0], [0], [1], [0, 0, 1, 1], [], []>} : vector<128x40xf32>, vector<40x32xf32>, vector<128x32xf32> -> vector<128x32xf32>
    %cst_9 = arith.constant dense<0.000000e+00> : vector<128x32xf32>
    %21 = tpu.matmul %19, %8, %cst_9 {dimension_numbers = #tpu.dot_dimension_numbers<[1], [0], [0], [1], [0, 0, 1, 1], [], []>} : vector<128x40xf32>, vector<40x32xf32>, vector<128x32xf32> -> vector<128x32xf32>
    %c0_10 = arith.constant 0 : index
    %c0_11 = arith.constant 0 : index
    %c0_12 = arith.constant 0 : index
    %22 = vector.load %arg10[%c0_10, %c0_11, %c0_12] : memref<1x32x32xbf16, #tpu.memory_space<vmem>>, vector<1x32x32xbf16>
    %23 = vector.shape_cast %22 : vector<1x32x32xbf16> to vector<32x32xbf16>
    %24 = arith.truncf %20 : vector<128x32xf32> to vector<128x32xbf16>
    %cst_13 = arith.constant dense<0.000000e+00> : vector<128x32xf32>
    %25 = tpu.matmul %24, %23, %cst_13 {dimension_numbers = #tpu.dot_dimension_numbers<[1], [0], [0], [1], [0, 0, 1, 1], [], []>} : vector<128x32xbf16>, vector<32x32xbf16>, vector<128x32xf32> -> vector<128x32xf32>
    %c0_14 = arith.constant 0 : index
    %c0_15 = arith.constant 0 : index
    %c0_16 = arith.constant 0 : index
    %26 = vector.load %arg11[%c0_14, %c0_15, %c0_16] : memref<1x32x32xbf16, #tpu.memory_space<vmem>>, vector<1x32x32xbf16>
    %27 = vector.shape_cast %26 : vector<1x32x32xbf16> to vector<32x32xbf16>
    %28 = arith.truncf %21 : vector<128x32xf32> to vector<128x32xbf16>
    %cst_17 = arith.constant dense<0.000000e+00> : vector<128x32xf32>
    %29 = tpu.matmul %28, %27, %cst_17 {dimension_numbers = #tpu.dot_dimension_numbers<[1], [0], [0], [1], [0, 0, 1, 1], [], []>} : vector<128x32xbf16>, vector<32x32xbf16>, vector<128x32xf32> -> vector<128x32xf32>
    %30 = arith.addf %25, %29 : vector<128x32xf32>
    %c0_18 = arith.constant 0 : index
    %c0_19 = arith.constant 0 : index
    %31 = vector.load %arg7[%c0_18, %c0_19] : memref<128x1xf32, #tpu.memory_space<vmem>>, vector<128x1xf32>
    %c0_20 = arith.constant 0 : index
    %c0_21 = arith.constant 0 : index
    %c0_22 = arith.constant 0 : index
    %32 = vector.load %arg12[%c0_20, %c0_21, %c0_22] : memref<1x1x32xf32, #tpu.memory_space<vmem>>, vector<1x1x32xf32>
    %33 = vector.shape_cast %32 : vector<1x1x32xf32> to vector<1x32xf32>
    %34 = vector.broadcast %31 : vector<128x1xf32> to vector<128x32xf32>
    %35 = vector.broadcast %33 : vector<1x32xf32> to vector<128x32xf32>
    %36 = arith.mulf %34, %35 : vector<128x32xf32>
    %37 = arith.addf %30, %36 : vector<128x32xf32>
    %c0_23 = arith.constant 0 : index
    %c0_24 = arith.constant 0 : index
    %38 = vector.load %arg8[%c0_23, %c0_24] : memref<128x2xf32, #tpu.memory_space<vmem>>, vector<128x2xf32>
    %c0_25 = arith.constant 0 : index
    %c0_26 = arith.constant 0 : index
    %c0_27 = arith.constant 0 : index
    %39 = vector.load %arg13[%c0_25, %c0_26, %c0_27] : memref<1x2x32xbf16, #tpu.memory_space<vmem>>, vector<1x2x32xbf16>
    %40 = vector.shape_cast %39 : vector<1x2x32xbf16> to vector<2x32xbf16>
    %41 = arith.truncf %38 : vector<128x2xf32> to vector<128x2xbf16>
    %cst_28 = arith.constant dense<0.000000e+00> : vector<128x32xf32>
    %42 = tpu.matmul %41, %40, %cst_28 {dimension_numbers = #tpu.dot_dimension_numbers<[1], [0], [0], [1], [0, 0, 1, 1], [], []>} : vector<128x2xbf16>, vector<2x32xbf16>, vector<128x32xf32> -> vector<128x32xf32>
    %43 = arith.addf %37, %42 : vector<128x32xf32>
    %c0_29 = arith.constant 0 : index
    %c0_30 = arith.constant 0 : index
    %c0_31 = arith.constant 0 : index
    %44 = vector.load %arg14[%c0_29, %c0_30, %c0_31] : memref<1x1x32xf32, #tpu.memory_space<vmem>>, vector<1x1x32xf32>
    %45 = vector.shape_cast %44 : vector<1x1x32xf32> to vector<1x32xf32>
    %46 = vector.broadcast %45 : vector<1x32xf32> to vector<128x32xf32>
    %47 = arith.addf %43, %46 : vector<128x32xf32>
    %48 = arith.negf %47 : vector<128x32xf32>
    %49 = math.exp %48 : vector<128x32xf32>
    %cst_32 = arith.constant 1.000000e+00 : f32
    %50 = vector.broadcast %cst_32 : f32 to vector<128x32xf32>
    %51 = arith.addf %50, %49 : vector<128x32xf32>
    %52 = arith.divf %50, %51 : vector<128x32xf32>
    %53 = arith.mulf %47, %52 : vector<128x32xf32>
    %c0_33 = arith.constant 0 : index
    %c0_34 = arith.constant 0 : index
    %c0_35 = arith.constant 0 : index
    %54 = vector.load %arg15[%c0_33, %c0_34, %c0_35] : memref<1x32x32xbf16, #tpu.memory_space<vmem>>, vector<1x32x32xbf16>
    %55 = vector.shape_cast %54 : vector<1x32x32xbf16> to vector<32x32xbf16>
    %56 = arith.truncf %53 : vector<128x32xf32> to vector<128x32xbf16>
    %cst_36 = arith.constant dense<0.000000e+00> : vector<128x32xf32>
    %57 = tpu.matmul %56, %55, %cst_36 {dimension_numbers = #tpu.dot_dimension_numbers<[1], [0], [0], [1], [0, 0, 1, 1], [], []>} : vector<128x32xbf16>, vector<32x32xbf16>, vector<128x32xf32> -> vector<128x32xf32>
    %c0_37 = arith.constant 0 : index
    %c0_38 = arith.constant 0 : index
    %c0_39 = arith.constant 0 : index
    %58 = vector.load %arg16[%c0_37, %c0_38, %c0_39] : memref<1x1x32xf32, #tpu.memory_space<vmem>>, vector<1x1x32xf32>
    %59 = vector.shape_cast %58 : vector<1x1x32xf32> to vector<1x32xf32>
    %60 = vector.broadcast %59 : vector<1x32xf32> to vector<128x32xf32>
    %61 = arith.addf %57, %60 : vector<128x32xf32>
    %62 = arith.negf %61 : vector<128x32xf32>
    %63 = math.exp %62 : vector<128x32xf32>
    %cst_40 = arith.constant 1.000000e+00 : f32
    %64 = vector.broadcast %cst_40 : f32 to vector<128x32xf32>
    %65 = arith.addf %64, %63 : vector<128x32xf32>
    %66 = arith.divf %64, %65 : vector<128x32xf32>
    %67 = arith.mulf %61, %66 : vector<128x32xf32>
    %c0_41 = arith.constant 0 : index
    %c0_42 = arith.constant 0 : index
    %c0_43 = arith.constant 0 : index
    %68 = vector.load %arg17[%c0_41, %c0_42, %c0_43] : memref<1x1x32xf32, #tpu.memory_space<vmem>>, vector<1x1x32xf32>
    %69 = vector.shape_cast %68 : vector<1x1x32xf32> to vector<1x32xf32>
    %70 = vector.broadcast %69 : vector<1x32xf32> to vector<128x32xf32>
    %71 = arith.mulf %67, %70 : vector<128x32xf32>
    %cst_44 = arith.constant dense<0.000000e+00> : vector<128xf32>
    %72 = vector.multi_reduction <add>, %71, %cst_44 [1] : vector<128x32xf32> to vector<128xf32>
    %73 = vector.shape_cast %72 : vector<128xf32> to vector<128x1xf32>
    %c0_45 = arith.constant 0 : index
    %c0_46 = arith.constant 0 : index
    %c0_47 = arith.constant 0 : index
    %74 = vector.load %arg18[%c0_45, %c0_46, %c0_47] : memref<1x1x1xf32, #tpu.memory_space<vmem>>, vector<1x1x1xf32>
    %75 = vector.shape_cast %74 : vector<1x1x1xf32> to vector<1x1xf32>
    %76 = vector.broadcast %75 : vector<1x1xf32> to vector<128x1xf32>
    %77 = arith.addf %73, %76 : vector<128x1xf32>
    %78 = arith.negf %77 : vector<128x1xf32>
    %79 = math.exp %78 : vector<128x1xf32>
    %cst_48 = arith.constant 1.000000e+00 : f32
    %80 = vector.broadcast %cst_48 : f32 to vector<128x1xf32>
    %81 = arith.addf %80, %79 : vector<128x1xf32>
    %82 = arith.divf %80, %81 : vector<128x1xf32>
    %83 = vector.broadcast %82 : vector<128x1xf32> to vector<128x32xf32>
    %84 = arith.mulf %67, %83 : vector<128x32xf32>
    %c0_49 = arith.constant 0 : index
    %c0_50 = arith.constant 0 : index
    %85 = vector.load %arg9[%c0_49, %c0_50] : memref<128x1xf32, #tpu.memory_space<vmem>>, vector<128x1xf32>
    %86 = vector.broadcast %85 : vector<128x1xf32> to vector<128x32xf32>
    %87 = arith.mulf %84, %86 : vector<128x32xf32>
    %88 = tpu.iota {dimensions = array<i32: 0>} : vector<40x128xi32>
    %c0_51 = arith.constant 0 : index
    %c0_52 = arith.constant 0 : index
    %89 = vector.load %arg6[%c0_51, %c0_52] : memref<1x128xi32, #tpu.memory_space<vmem>>, vector<1x128xi32>
    %90 = vector.broadcast %89 : vector<1x128xi32> to vector<40x128xi32>
    %91 = arith.cmpi eq, %88, %90 : vector<40x128xi32>
    %92 = arith.extui %91 : vector<40x128xi1> to vector<40x128xi32>
    %93 = arith.sitofp %92 : vector<40x128xi32> to vector<40x128xf32>
    %c0_53 = arith.constant 0 : index
    %c0_54 = arith.constant 0 : index
    %94 = vector.load %arg27[%c0_53, %c0_54] : memref<40x32xf32, #tpu.memory_space<vmem>>, vector<40x32xf32>
    %cst_55 = arith.constant dense<0.000000e+00> : vector<40x32xf32>
    %95 = tpu.matmul %93, %87, %cst_55 {dimension_numbers = #tpu.dot_dimension_numbers<[1], [0], [0], [1], [0, 0, 1, 1], [], []>} : vector<40x128xf32>, vector<128x32xf32>, vector<40x32xf32> -> vector<40x32xf32>
    %96 = arith.addf %94, %95 : vector<40x32xf32>
    %c0_56 = arith.constant 0 : index
    %c0_57 = arith.constant 0 : index
    %97 = vector.load %arg27[%c0_56, %c0_57] : memref<40x32xf32, #tpu.memory_space<vmem>>, vector<40x32xf32>
    tpu.vector_store %arg27[%c0_56, %c0_57], %96 {strides = array<i32>} : memref<40x32xf32, #tpu.memory_space<vmem>>, vector<40x32xf32>,
    %c2_i32 = arith.constant 2 : i32
    %98 = arith.cmpi eq, %arg1, %c2_i32 : i32
    %99 = arith.extui %98 : i1 to i32
    %c0_i32_58 = arith.constant 0 : i32
    %100 = arith.cmpi ne, %99, %c0_i32_58 : i32
    scf.if %100 {
      %c0_59 = arith.constant 0 : index
      %c0_60 = arith.constant 0 : index
      %c0_61 = arith.constant 0 : index
      %101 = vector.load %arg19[%c0_59, %c0_60, %c0_61] : memref<1x32x32xbf16, #tpu.memory_space<vmem>>, vector<1x32x32xbf16>
      %102 = vector.shape_cast %101 : vector<1x32x32xbf16> to vector<32x32xbf16>
      %103 = arith.truncf %8 : vector<40x32xf32> to vector<40x32xbf16>
      %cst_62 = arith.constant dense<0.000000e+00> : vector<40x32xf32>
      %104 = tpu.matmul %103, %102, %cst_62 {dimension_numbers = #tpu.dot_dimension_numbers<[1], [0], [0], [1], [0, 0, 1, 1], [], []>} : vector<40x32xbf16>, vector<32x32xbf16>, vector<40x32xf32> -> vector<40x32xf32>
      %c0_63 = arith.constant 0 : index
      %c0_64 = arith.constant 0 : index
      %105 = vector.load %arg27[%c0_63, %c0_64] : memref<40x32xf32, #tpu.memory_space<vmem>>, vector<40x32xf32>
      %c0_65 = arith.constant 0 : index
      %c0_66 = arith.constant 0 : index
      %c0_67 = arith.constant 0 : index
      %106 = vector.load %arg20[%c0_65, %c0_66, %c0_67] : memref<1x32x32xbf16, #tpu.memory_space<vmem>>, vector<1x32x32xbf16>
      %107 = vector.shape_cast %106 : vector<1x32x32xbf16> to vector<32x32xbf16>
      %108 = arith.truncf %105 : vector<40x32xf32> to vector<40x32xbf16>
      %cst_68 = arith.constant dense<0.000000e+00> : vector<40x32xf32>
      %109 = tpu.matmul %108, %107, %cst_68 {dimension_numbers = #tpu.dot_dimension_numbers<[1], [0], [0], [1], [0, 0, 1, 1], [], []>} : vector<40x32xbf16>, vector<32x32xbf16>, vector<40x32xf32> -> vector<40x32xf32>
      %110 = arith.addf %104, %109 : vector<40x32xf32>
      %c0_69 = arith.constant 0 : index
      %c0_70 = arith.constant 0 : index
      %111 = vector.load %arg3[%c0_69, %c0_70] : memref<40x4xf32, #tpu.memory_space<vmem>>, vector<40x4xf32>
      %c0_71 = arith.constant 0 : index
      %c0_72 = arith.constant 0 : index
      %c0_73 = arith.constant 0 : index
      %112 = vector.load %arg21[%c0_71, %c0_72, %c0_73] : memref<1x4x32xbf16, #tpu.memory_space<vmem>>, vector<1x4x32xbf16>
      %113 = vector.shape_cast %112 : vector<1x4x32xbf16> to vector<4x32xbf16>
      %114 = arith.truncf %111 : vector<40x4xf32> to vector<40x4xbf16>
      %cst_74 = arith.constant dense<0.000000e+00> : vector<40x32xf32>
      %115 = tpu.matmul %114, %113, %cst_74 {dimension_numbers = #tpu.dot_dimension_numbers<[1], [0], [0], [1], [0, 0, 1, 1], [], []>} : vector<40x4xbf16>, vector<4x32xbf16>, vector<40x32xf32> -> vector<40x32xf32>
      %116 = arith.addf %110, %115 : vector<40x32xf32>
      %c0_75 = arith.constant 0 : index
      %c0_76 = arith.constant 0 : index
      %c0_77 = arith.constant 0 : index
      %117 = vector.load %arg22[%c0_75, %c0_76, %c0_77] : memref<1x1x32xf32, #tpu.memory_space<vmem>>, vector<1x1x32xf32>
      %118 = vector.shape_cast %117 : vector<1x1x32xf32> to vector<1x32xf32>
      %119 = vector.broadcast %118 : vector<1x32xf32> to vector<40x32xf32>
      %120 = arith.addf %116, %119 : vector<40x32xf32>
      %121 = arith.negf %120 : vector<40x32xf32>
      %122 = math.exp %121 : vector<40x32xf32>
      %cst_78 = arith.constant 1.000000e+00 : f32
      %123 = vector.broadcast %cst_78 : f32 to vector<40x32xf32>
      %124 = arith.addf %123, %122 : vector<40x32xf32>
      %125 = arith.divf %123, %124 : vector<40x32xf32>
      %126 = arith.mulf %120, %125 : vector<40x32xf32>
      %c0_79 = arith.constant 0 : index
      %c0_80 = arith.constant 0 : index
      %c0_81 = arith.constant 0 : index
      %127 = vector.load %arg23[%c0_79, %c0_80, %c0_81] : memref<1x32x32xbf16, #tpu.memory_space<vmem>>, vector<1x32x32xbf16>
      %128 = vector.shape_cast %127 : vector<1x32x32xbf16> to vector<32x32xbf16>
      %129 = arith.truncf %126 : vector<40x32xf32> to vector<40x32xbf16>
      %cst_82 = arith.constant dense<0.000000e+00> : vector<40x32xf32>
      %130 = tpu.matmul %129, %128, %cst_82 {dimension_numbers = #tpu.dot_dimension_numbers<[1], [0], [0], [1], [0, 0, 1, 1], [], []>} : vector<40x32xbf16>, vector<32x32xbf16>, vector<40x32xf32> -> vector<40x32xf32>
      %131 = arith.addf %8, %130 : vector<40x32xf32>
      %c0_83 = arith.constant 0 : index
      %c0_84 = arith.constant 0 : index
      %c0_85 = arith.constant 0 : index
      %132 = vector.load %arg24[%c0_83, %c0_84, %c0_85] : memref<1x1x32xf32, #tpu.memory_space<vmem>>, vector<1x1x32xf32>
      %133 = vector.shape_cast %132 : vector<1x1x32xf32> to vector<1x32xf32>
      %134 = vector.broadcast %133 : vector<1x32xf32> to vector<40x32xf32>
      %135 = arith.addf %131, %134 : vector<40x32xf32>
      %c0_86 = arith.constant 0 : index
      %c0_87 = arith.constant 0 : index
      %136 = vector.load %arg26[%c0_86, %c0_87] : memref<40x32xf32, #tpu.memory_space<vmem>>, vector<40x32xf32>
      tpu.vector_store %arg26[%c0_86, %c0_87], %135 {strides = array<i32>} : memref<40x32xf32, #tpu.memory_space<vmem>>, vector<40x32xf32>,
      %c1_i32 = arith.constant 1 : i32
      %137 = arith.cmpi eq, %arg0, %c1_i32 : i32
      %138 = arith.extui %137 : i1 to i32
      %c0_i32_88 = arith.constant 0 : i32
      %139 = arith.cmpi ne, %138, %c0_i32_88 : i32
      scf.if %139 {
        %c0_89 = arith.constant 0 : index
        %c0_90 = arith.constant 0 : index
        %140 = vector.load %arg25[%c0_89, %c0_90] : memref<40x32xf32, #tpu.memory_space<vmem>>, vector<40x32xf32>
        tpu.vector_store %arg25[%c0_89, %c0_90], %135 {strides = array<i32>} : memref<40x32xf32, #tpu.memory_space<vmem>>, vector<40x32xf32>,
      } else {
      }
    } else {
    }
    return
  }
  func.func @transform_0(%arg0: i32, %arg1: i32) -> (i32, i32) {
    %c0_i32 = arith.constant 0 : i32
    %c0_i32_0 = arith.constant 0 : i32
    %c0_i32_1 = arith.constant 0 : i32
    return %c0_i32, %c0_i32_0 : i32, i32
  }
  func.func @transform_1(%arg0: i32, %arg1: i32) -> (i32, i32) {
    %c0_i32 = arith.constant 0 : i32
    %c0_i32_0 = arith.constant 0 : i32
    %c0_i32_1 = arith.constant 0 : i32
    return %c0_i32, %c0_i32_0 : i32, i32
  }
  func.func @transform_2(%arg0: i32, %arg1: i32) -> (i32, i32) {
    %c0_i32 = arith.constant 0 : i32
    %c0_i32_0 = arith.constant 0 : i32
    return %arg1, %c0_i32 : i32, i32
  }
  func.func @transform_3(%arg0: i32, %arg1: i32) -> (i32, i32) {
    %c0_i32 = arith.constant 0 : i32
    %c0_i32_0 = arith.constant 0 : i32
    return %arg1, %c0_i32 : i32, i32
  }
  func.func @transform_4(%arg0: i32, %arg1: i32) -> (i32, i32) {
    %c0_i32 = arith.constant 0 : i32
    %c0_i32_0 = arith.constant 0 : i32
    return %c0_i32, %arg1 : i32, i32
  }
  func.func @transform_5(%arg0: i32, %arg1: i32) -> (i32, i32) {
    %c0_i32 = arith.constant 0 : i32
    %c0_i32_0 = arith.constant 0 : i32
    return %arg1, %c0_i32 : i32, i32
  }
  func.func @transform_6(%arg0: i32, %arg1: i32) -> (i32, i32) {
    %c0_i32 = arith.constant 0 : i32
    %c0_i32_0 = arith.constant 0 : i32
    return %arg1, %c0_i32 : i32, i32
  }
  func.func @transform_7(%arg0: i32, %arg1: i32) -> (i32, i32) {
    %c0_i32 = arith.constant 0 : i32
    %c0_i32_0 = arith.constant 0 : i32
    return %arg1, %c0_i32 : i32, i32
  }
  func.func @transform_8(%arg0: i32, %arg1: i32) -> (i32, i32, i32) {
    %c0_i32 = arith.constant 0 : i32
    %c0_i32_0 = arith.constant 0 : i32
    %c0_i32_1 = arith.constant 0 : i32
    return %arg0, %c0_i32, %c0_i32_0 : i32, i32, i32
  }
  func.func @transform_9(%arg0: i32, %arg1: i32) -> (i32, i32, i32) {
    %c0_i32 = arith.constant 0 : i32
    %c0_i32_0 = arith.constant 0 : i32
    %c0_i32_1 = arith.constant 0 : i32
    return %arg0, %c0_i32, %c0_i32_0 : i32, i32, i32
  }
  func.func @transform_10(%arg0: i32, %arg1: i32) -> (i32, i32, i32) {
    %c0_i32 = arith.constant 0 : i32
    %c0_i32_0 = arith.constant 0 : i32
    %c0_i32_1 = arith.constant 0 : i32
    return %arg0, %c0_i32, %c0_i32_0 : i32, i32, i32
  }
  func.func @transform_11(%arg0: i32, %arg1: i32) -> (i32, i32, i32) {
    %c0_i32 = arith.constant 0 : i32
    %c0_i32_0 = arith.constant 0 : i32
    %c0_i32_1 = arith.constant 0 : i32
    return %arg0, %c0_i32, %c0_i32_0 : i32, i32, i32
  }
  func.func @transform_12(%arg0: i32, %arg1: i32) -> (i32, i32, i32) {
    %c0_i32 = arith.constant 0 : i32
    %c0_i32_0 = arith.constant 0 : i32
    %c0_i32_1 = arith.constant 0 : i32
    return %arg0, %c0_i32, %c0_i32_0 : i32, i32, i32
  }
  func.func @transform_13(%arg0: i32, %arg1: i32) -> (i32, i32, i32) {
    %c0_i32 = arith.constant 0 : i32
    %c0_i32_0 = arith.constant 0 : i32
    %c0_i32_1 = arith.constant 0 : i32
    return %arg0, %c0_i32, %c0_i32_0 : i32, i32, i32
  }
  func.func @transform_14(%arg0: i32, %arg1: i32) -> (i32, i32, i32) {
    %c0_i32 = arith.constant 0 : i32
    %c0_i32_0 = arith.constant 0 : i32
    %c0_i32_1 = arith.constant 0 : i32
    return %arg0, %c0_i32, %c0_i32_0 : i32, i32, i32
  }
  func.func @transform_15(%arg0: i32, %arg1: i32) -> (i32, i32, i32) {
    %c0_i32 = arith.constant 0 : i32
    %c0_i32_0 = arith.constant 0 : i32
    %c0_i32_1 = arith.constant 0 : i32
    return %arg0, %c0_i32, %c0_i32_0 : i32, i32, i32
  }
  func.func @transform_16(%arg0: i32, %arg1: i32) -> (i32, i32, i32) {
    %c0_i32 = arith.constant 0 : i32
    %c0_i32_0 = arith.constant 0 : i32
    %c0_i32_1 = arith.constant 0 : i32
    return %arg0, %c0_i32, %c0_i32_0 : i32, i32, i32
  }
  func.func @transform_17(%arg0: i32, %arg1: i32) -> (i32, i32, i32) {
    %c0_i32 = arith.constant 0 : i32
    %c0_i32_0 = arith.constant 0 : i32
    %c0_i32_1 = arith.constant 0 : i32
    return %arg0, %c0_i32, %c0_i32_0 : i32, i32, i32
  }
  func.func @transform_18(%arg0: i32, %arg1: i32) -> (i32, i32, i32) {
    %c0_i32 = arith.constant 0 : i32
    %c0_i32_0 = arith.constant 0 : i32
    %c0_i32_1 = arith.constant 0 : i32
    return %arg0, %c0_i32, %c0_i32_0 : i32, i32, i32
  }
  func.func @transform_19(%arg0: i32, %arg1: i32) -> (i32, i32, i32) {
    %c0_i32 = arith.constant 0 : i32
    %c0_i32_0 = arith.constant 0 : i32
    %c0_i32_1 = arith.constant 0 : i32
    return %arg0, %c0_i32, %c0_i32_0 : i32, i32, i32
  }
  func.func @transform_20(%arg0: i32, %arg1: i32) -> (i32, i32, i32) {
    %c0_i32 = arith.constant 0 : i32
    %c0_i32_0 = arith.constant 0 : i32
    %c0_i32_1 = arith.constant 0 : i32
    return %arg0, %c0_i32, %c0_i32_0 : i32, i32, i32
  }
  func.func @transform_21(%arg0: i32, %arg1: i32) -> (i32, i32, i32) {
    %c0_i32 = arith.constant 0 : i32
    %c0_i32_0 = arith.constant 0 : i32
    %c0_i32_1 = arith.constant 0 : i32
    return %arg0, %c0_i32, %c0_i32_0 : i32, i32, i32
  }
  func.func @transform_22(%arg0: i32, %arg1: i32) -> (i32, i32, i32) {
    %c0_i32 = arith.constant 0 : i32
    %c0_i32_0 = arith.constant 0 : i32
    %c0_i32_1 = arith.constant 0 : i32
    return %arg0, %c0_i32, %c0_i32_0 : i32, i32, i32
  }
  func.func @transform_23(%arg0: i32, %arg1: i32) -> (i32, i32) {
    %c0_i32 = arith.constant 0 : i32
    %c0_i32_0 = arith.constant 0 : i32
    %c0_i32_1 = arith.constant 0 : i32
    return %c0_i32, %c0_i32_0 : i32, i32
  }
}

module attributes {stable_mosaic.version = 11 : i64} {
  func.func @_mlp2_kernel(%arg0: i32, %arg1: memref<8x64xf32, #tpu.memory_space<vmem>>, %arg2: memref<64x64xbf16, #tpu.memory_space<vmem>>, %arg3: memref<1x64xf32, #tpu.memory_space<vmem>>, %arg4: memref<64x1xbf16, #tpu.memory_space<vmem>>, %arg5: memref<1x1xf32, #tpu.memory_space<vmem>>, %arg6: memref<8x1xf32, #tpu.memory_space<vmem>>) attributes {dimension_semantics = [#tpu.dimension_semantics<parallel>], iteration_bounds = array<i64: 1>, scalar_prefetch = 0 : i64, scratch_operands = 0 : i64, tpu.core_type = #tpu.core_type<tc>, window_params = [{transform_indices = @transform_0, window_bounds = array<i64: 8, 64>}, {pipeline_mode = #tpu.pipeline_mode<synchronous>, transform_indices = @transform_1, window_bounds = array<i64: 64, 64>}, {pipeline_mode = #tpu.pipeline_mode<synchronous>, transform_indices = @transform_2, window_bounds = array<i64: 1, 64>}, {pipeline_mode = #tpu.pipeline_mode<synchronous>, transform_indices = @transform_3, window_bounds = array<i64: 64, 1>}, {pipeline_mode = #tpu.pipeline_mode<synchronous>, transform_indices = @transform_4, window_bounds = array<i64: 1, 1>}, {transform_indices = @transform_5, window_bounds = array<i64: 8, 1>}]} {
    %c0 = arith.constant 0 : index
    %c0_0 = arith.constant 0 : index
    %0 = vector.load %arg1[%c0, %c0_0] : memref<8x64xf32, #tpu.memory_space<vmem>>, vector<8x64xf32>
    %c0_1 = arith.constant 0 : index
    %c0_2 = arith.constant 0 : index
    %1 = vector.load %arg2[%c0_1, %c0_2] : memref<64x64xbf16, #tpu.memory_space<vmem>>, vector<64x64xbf16>
    %2 = arith.truncf %0 : vector<8x64xf32> to vector<8x64xbf16>
    %cst = arith.constant dense<0.000000e+00> : vector<8x64xf32>
    %3 = tpu.matmul %2, %1, %cst {dimension_numbers = #tpu.dot_dimension_numbers<[1], [0], [0], [1], [0, 0, 1, 1], [], []>} : vector<8x64xbf16>, vector<64x64xbf16>, vector<8x64xf32> -> vector<8x64xf32>
    %c0_3 = arith.constant 0 : index
    %c0_4 = arith.constant 0 : index
    %4 = vector.load %arg3[%c0_3, %c0_4] : memref<1x64xf32, #tpu.memory_space<vmem>>, vector<1x64xf32>
    %5 = vector.broadcast %4 : vector<1x64xf32> to vector<8x64xf32>
    %6 = arith.addf %3, %5 : vector<8x64xf32>
    %7 = arith.negf %6 : vector<8x64xf32>
    %8 = math.exp %7 : vector<8x64xf32>
    %cst_5 = arith.constant 1.000000e+00 : f32
    %9 = vector.broadcast %cst_5 : f32 to vector<8x64xf32>
    %10 = arith.addf %9, %8 : vector<8x64xf32>
    %11 = arith.divf %9, %10 : vector<8x64xf32>
    %12 = arith.mulf %6, %11 : vector<8x64xf32>
    %c0_6 = arith.constant 0 : index
    %c0_7 = arith.constant 0 : index
    %13 = vector.load %arg4[%c0_6, %c0_7] : memref<64x1xbf16, #tpu.memory_space<vmem>>, vector<64x1xbf16>
    %14 = arith.truncf %12 : vector<8x64xf32> to vector<8x64xbf16>
    %cst_8 = arith.constant dense<0.000000e+00> : vector<8x1xf32>
    %15 = tpu.matmul %14, %13, %cst_8 {dimension_numbers = #tpu.dot_dimension_numbers<[1], [0], [0], [1], [0, 0, 1, 1], [], []>} : vector<8x64xbf16>, vector<64x1xbf16>, vector<8x1xf32> -> vector<8x1xf32>
    %c0_9 = arith.constant 0 : index
    %c0_10 = arith.constant 0 : index
    %16 = vector.load %arg5[%c0_9, %c0_10] : memref<1x1xf32, #tpu.memory_space<vmem>>, vector<1x1xf32>
    %17 = vector.broadcast %16 : vector<1x1xf32> to vector<8x1xf32>
    %18 = arith.addf %15, %17 : vector<8x1xf32>
    %c0_11 = arith.constant 0 : index
    %c0_12 = arith.constant 0 : index
    %19 = vector.load %arg6[%c0_11, %c0_12] : memref<8x1xf32, #tpu.memory_space<vmem>>, vector<8x1xf32>
    tpu.vector_store %arg6[%c0_11, %c0_12], %18 {strides = array<i32>} : memref<8x1xf32, #tpu.memory_space<vmem>>, vector<8x1xf32>,
    return
  }
  func.func @transform_0(%arg0: i32) -> (i32, i32) {
    %c0_i32 = arith.constant 0 : i32
    %c0_i32_0 = arith.constant 0 : i32
    return %arg0, %c0_i32 : i32, i32
  }
  func.func @transform_1(%arg0: i32) -> (i32, i32) {
    %c0_i32 = arith.constant 0 : i32
    %c0_i32_0 = arith.constant 0 : i32
    %c0_i32_1 = arith.constant 0 : i32
    return %c0_i32, %c0_i32_0 : i32, i32
  }
  func.func @transform_2(%arg0: i32) -> (i32, i32) {
    %c0_i32 = arith.constant 0 : i32
    %c0_i32_0 = arith.constant 0 : i32
    %c0_i32_1 = arith.constant 0 : i32
    return %c0_i32, %c0_i32_0 : i32, i32
  }
  func.func @transform_3(%arg0: i32) -> (i32, i32) {
    %c0_i32 = arith.constant 0 : i32
    %c0_i32_0 = arith.constant 0 : i32
    %c0_i32_1 = arith.constant 0 : i32
    return %c0_i32, %c0_i32_0 : i32, i32
  }
  func.func @transform_4(%arg0: i32) -> (i32, i32) {
    %c0_i32 = arith.constant 0 : i32
    %c0_i32_0 = arith.constant 0 : i32
    %c0_i32_1 = arith.constant 0 : i32
    return %c0_i32, %c0_i32_0 : i32, i32
  }
  func.func @transform_5(%arg0: i32) -> (i32, i32) {
    %c0_i32 = arith.constant 0 : i32
    %c0_i32_0 = arith.constant 0 : i32
    return %arg0, %c0_i32 : i32, i32
  }
}

</mosaic_0001>

<bundles_post_ra>
// kernel: megnn_forward.7
= control target key start
LH: loop header
LB: loop body
LE: loop exit
PB: predicated region body
PF: predicated region fallthrough
CT: control target
= control target key end

     0   :  { %vm41_vm0 = vcmask 1041408   ;;  %v137_v0 = vmov 0.0   ;;  %vm138_vm1 = vmmov 0   ;;  %vm31_vm2 = vcmask 31744   ;;  %s200_s1 = inlined_call_operand.vmem [shape: bf16[4,32], index: 1, kind: input, shape index: {}]   ;;  %s201_s0 = inlined_call_operand.vmem [shape: f32[40,4], index: 0, kind: input, shape index: {}]   ;;  %s202_s2 = inlined_call_operand.vmem [shape: f32[1,32], index: 2, kind: input, shape index: {}]   ;;  %s203_s3 = inlined_call_operand.vmem [shape: f32[40,32], index: 3, kind: output, shape index: {}]  }
   0x1   :  { %133 = vmatprep.subr.bf16.mxu1 %v137_v0  ;;  %119 = vmatprep.subr.bf16.mxu0 %v137_v0  ;;  %v20_v1 = vld [vmem:[%s200_s1] sm:$0x3]  ;;  %v17_v2 = vld [vmem:[%s201_s0 + $0x10] sm:$0xff]  ;;  %v18_v3 = vld [vmem:[%s201_s0 + $0x18] sm:$0xff]  ;;  %vm101_vm3 = vcmask 261120  }
   0x2   :  { %v43_v4 = vsel %vm41_vm0, %v20_v1, 0  ;;  %125 = vmatprep.mubr.msk.bf16.mxu1 %vm138_vm1, %v137_v0  ;;  %121 = vmatprep.mubr.msk.bf16.mxu0 %vm138_vm1, %v137_v0  ;;  %v22_v5 = vpack.c.bf16 %v18_v3, %v17_v2  ;;  %v15_v6 = vld [vmem:[%s201_s0] sm:$0xff]  ;;  %v16_v7 = vld [vmem:[%s201_s0 + $0x8] sm:$0xff] }
   0x3   :  { %134 = vmatpush3.bf16.msra.mxu1 %v43_v4  ;;  %120 = vmatpush3.bf16.msra.mxu0 %v43_v4  ;;  %v21_v8 = vpack.c.bf16 %v16_v7, %v15_v6  ;;  %v19_v9 = vld [vmem:[%s201_s0 + $0x20] sm:$0xff] }
   0x4   :  { %v23_v10 = vpack.c.bf16 %v19_v9, %v19_v9  ;;  %v111_v11 = vld [vmem:[%s202_s2] ss:$0 sm:$0xff] }
   0x6   :  { %126 = vmatmul.mubr.msk.bf16.vlgmr.msra.gmra.mxu1 %vm31_vm2, %v22_v5  ;;  %122 = vmatmul.mubr.msk.bf16.vlgmr.msra.gmra.mxu0 %vm31_vm2, %v21_v8 }
   0x7   :  { %129 = vmatprep.mubr.msk.bf16.mxu1 %vm138_vm1, %v137_v0 }
   0xe   :  { %130 = vmatmul.mubr.msk.bf16.gmra.mxu1 %vm31_vm2, %v23_v10 }
  0xc6   :  { %v87_v12 = vpop.f32.mrf.mxu1  ;;  %v79_v13 = vpop.f32.mrf.mxu0 }
  0xc7   :  { %v88_v14 = vadd.f32 %v111_v11, %v87_v12  ;;  %v80_v15 = vadd.f32 %v111_v11, %v79_v13 }
  0xc8   :  { %v127_v16 = vpop.f32.mrf.mxu1  ;;  %v123_v17 = vpop.f32.mrf.mxu0 }
  0xc9   :  { %104 = vst.msk [vmem:[%s203_s3 + $0x10] sm:$0xff] %vm101_vm3, %v88_v14  ;;  %102 = vst.msk [vmem:[%s203_s3] sm:$0xff] %vm101_vm3, %v80_v15 }
  0xca   :  { %v90_v18 = vpop.f32.mrf.mxu1  ;;  %v82_v19 = vpop.f32.mrf.mxu0 }
  0xcb   :  { %v91_v20 = vadd.f32 %v111_v11, %v90_v18  ;;  %v83_v21 = vadd.f32 %v111_v11, %v82_v19 }
  0xcc   :  { %v128_v22 = vpop.f32.mrf.mxu1  ;;  %v124_v23 = vpop.f32.mrf.mxu0 }
  0xcd   :  { %105 = vst.msk [vmem:[%s203_s3 + $0x18] sm:$0xff] %vm101_vm3, %v91_v20  ;;  %103 = vst.msk [vmem:[%s203_s3 + $0x8] sm:$0xff] %vm101_vm3, %v83_v21 }
  0xce   :  { %v95_v24 = vpop.f32.mrf.mxu1 }
  0xcf   :  { %v96_v25 = vadd.f32 %v111_v11, %v95_v24 }
  0xd0   :  { %v131_v26 = vpop.f32.mrf.mxu1 }
  0xd1   :  { %106 = vst.msk [vmem:[%s203_s3 + $0x20] sm:$0xff] %vm101_vm3, %v96_v25 }
  0xd2   :  { %v98_v27 = vpop.f32.mrf.mxu1 }
  0xd4   :  { %v132_v28 = vpop.f32.mrf.mxu1 }

// kernel: megnn_forward.9
= control target key start
LH: loop header
LB: loop body
LE: loop exit
PB: predicated region body
PF: predicated region fallthrough
CT: control target
= control target key end

     0   :  { %v379_v0 = vmov 0.0   ;;  %vm380_vm0 = vmmov 0   ;;  %vm55_vm1 = vcmask 261120   ;;  %v381_v13 = vmov 0   ;;  %s507_s1 = inlined_call_operand.vmem [shape: bf16[32,32], index: 1, kind: input, shape index: {}]   ;;  %s508_s0 = inlined_call_operand.vmem [shape: f32[40,32], index: 0, kind: input, shape index: {}]   ;;  %s509_s3 = inlined_call_operand.vmem [shape: bf16[32,32], index: 3, kind: input, shape index: {}]   ;;  %s510_s5 = inlined_call_operand.vmem [shape: f32[40,1], index: 5, kind: input, shape index: {}]   ;;  %s511_s2 = inlined_call_operand.vmem [shape: f32[1,32], index: 2, kind: input, shape index: {}]   ;;  %s512_s4 = inlined_call_operand.vmem [shape: f32[1,32], index: 4, kind: input, shape index: {}]   ;;  %s513_s6 = inlined_call_operand.vmem [shape: f32[40,32], index: 6, kind: output, shape index: {}]  }
   0x1   :  { %318 = vmatprep.subr.bf16.mxu0 %v379_v0  ;;  %v355_v1 = vld [vmem:[%s507_s1 + $0x8] sm:$0xff]   ;;  %322 = vmatprep.mubr.msk.bf16.mxu0 %vm380_vm0, %v379_v0  ;;  %v356_v2 = vld [vmem:[%s507_s1] sm:$0xff]   ;;  %v26_v6 = vld [vmem:[%s508_s0 + $0x10] sm:$0xff] }
   0x2   :  { %334 = vmatprep.subr.bf16.mxu1 %v379_v0  ;;  %338 = vmatprep.mubr.msk.bf16.mxu1 %vm380_vm0, %v379_v0  ;;  %v24_v3 = vld [vmem:[%s508_s0] sm:$0xff]  ;;  %v25_v4 = vld [vmem:[%s508_s0 + $0x8] sm:$0xff]  ;;  %v27_v7 = vld [vmem:[%s508_s0 + $0x18] sm:$0xff] }
   0x3   :  { %319 = vmatpush3.bf16.msra.mxu0 %v355_v1  ;;  %v33_v5 = vpack.c.bf16 %v25_v4, %v24_v3  ;;  %v34_v8 = vpack.c.bf16 %v27_v7, %v26_v6  ;;  %v28_v9 = vld [vmem:[%s508_s0 + $0x20] sm:$0xff]  ;;  %v357_v11 = vld [vmem:[%s509_s3 + $0x8] sm:$0xff]   ;;  %353 = vset.pattern.permute.xlu0 %v381_v13  ;;  %v249_v15 = vld [vmem:[%s510_s5 + $0x10] sm:$0xff] }
   0x4   :  { %320 = vmatprep.subr.bf16.mxu0 %v379_v0  ;;  %v35_v10 = vpack.c.bf16 %v28_v9, %v28_v9  ;;  %335 = vmatpush3.bf16.msra.mxu1 %v357_v11  ;;  %v358_v12 = vld [vmem:[%s509_s3] sm:$0xff]   ;;  %v248_v16 = vld [vmem:[%s510_s5 + $0x8] sm:$0xff]  ;;  %v250_v17 = vld [vmem:[%s510_s5 + $0x18] sm:$0xff] }
   0x5   :  { %336 = vmatprep.subr.bf16.mxu1 %v379_v0  ;;  %v247_v14 = vld [vmem:[%s510_s5] sm:$0xff]  ;;  %354 = vset.pattern.permute.xlu1 %v381_v13 }
   0x6   :  { %254 = vperm.xlu0 %353, %v247_v14   ;;  %264 = vperm.xlu1 %354, %v249_v15   ;;  %v251_v18 = vld [vmem:[%s510_s5 + $0x20] sm:$0xff] }
   0x7   :  { %321 = vmatpush3.bf16.msra.mxu0 %v356_v2  ;;  %v291_v19 = vld [vmem:[%s511_s2] ss:$0 sm:$0xff] }
   0x8   :  { %337 = vmatpush3.bf16.msra.mxu1 %v358_v12  ;;  %v302_v2 = vld [vmem:[%s512_s4] ss:$0 sm:$0xff] }
   0xa   :  { %323 = vmatmul.mubr.msk.bf16.vlgmr.msra.gmra.mxu0 %vm55_vm1, %v33_v5  ;;  %259 = vperm.xlu0 %353, %v248_v16  }
   0xb   :  { %326 = vmatprep.mubr.msk.bf16.mxu0 %vm380_vm0, %v379_v0  ;;  %269 = vperm.xlu1 %354, %v250_v17  }
   0xe   :  { %274 = vperm.xlu0 %353, %v251_v18  }
  0x12   :  { %327 = vmatmul.mubr.msk.bf16.gmra.mxu0 %vm55_vm1, %v34_v8 }
  0x13   :  { %330 = vmatprep.mubr.msk.bf16.mxu0 %vm380_vm0, %v379_v0 }
  0x1a   :  { %331 = vmatmul.mubr.msk.bf16.gmra.mxu0 %vm55_vm1, %v35_v10 }
  0x81   :  { %v255_v3 = vpop.permute.xlu0 %254  ;;  %v265_v11 = vpop.permute.xlu1 %264 }
  0x85   :  { %v260_v9 = vpop.permute.xlu0 %259 }
  0x86   :  { %v270_v18 = vpop.permute.xlu1 %269 }
  0xca   :  { %v99_v20 = vpop.f32.mrf.mxu0 }
  0xcb   :  { %v100_v21 = vadd.f32 %v291_v19, %v99_v20 }
  0xcc   :  { %v324_v22 = vpop.f32.mrf.mxu0 }
  0xcd   :  { %v297_v23 = vmul.f32 -1.442695, %v100_v21 }
  0xce   :  { %v102_v24 = vpop.f32.mrf.mxu0 }
  0xcf   :  { %359 = vpow2.f32 %v297_v23  ;;  %v103_v25 = vadd.f32 %v291_v19, %v102_v24  ;;  %v275_v24 = vpop.permute.xlu0 %274 }
  0xd0   :  { %v325_v26 = vpop.f32.mrf.mxu0 }
  0xd1   :  { %v298_v27 = vmul.f32 -1.442695, %v103_v25 }
  0xd2   :  { %v107_v28 = vpop.f32.mrf.mxu0 }
  0xd3   :  { %361 = vpow2.f32 %v298_v27  ;;  %v108_v29 = vadd.f32 %v291_v19, %v107_v28 }
  0xd4   :  { %v328_v30 = vpop.f32.mrf.mxu0 }
  0xd5   :  { %v299_v31 = vmul.f32 -1.442695, %v108_v29 }
  0xd6   :  { %v110_v32 = vpop.f32.mrf.mxu0 }
  0xd7   :  { %363 = vpow2.f32 %v299_v31  ;;  %v111_v33 = vadd.f32 %v291_v19, %v110_v32 }
  0xd8   :  { %v329_v34 = vpop.f32.mrf.mxu0 }
  0xd9   :  { %v300_v35 = vmul.f32 -1.442695, %v111_v33 }
  0xda   :  { %v115_v36 = vpop.f32.mrf.mxu0 }
  0xdb   :  { %365 = vpow2.f32 %v300_v35  ;;  %v116_v37 = vadd.f32 %v291_v19, %v115_v36 }
  0xdc   :  { %v360_v38 = vpop.eup %359  ;;  %v332_v39 = vpop.f32.mrf.mxu0 }
  0xdd   :  { %v136_v40 = vadd.f32 1.0, %v360_v38  ;;  %v301_v41 = vmul.f32 -1.442695, %v116_v37 }
  0xde   :  { %v118_v42 = vpop.f32.mrf.mxu0 }
  0xdf   :  { %367 = vpow2.f32 %v301_v41 }
  0xe0   :  { %v362_v43 = vpop.eup %361  ;;  %v333_v44 = vpop.f32.mrf.mxu0  ;;  %369 = vrcp.f32 %v136_v40 }
  0xe1   :  { %v137_v45 = vadd.f32 1.0, %v362_v43 }
  0xe3   :  { %371 = vrcp.f32 %v137_v45 }
  0xe4   :  { %v364_v46 = vpop.eup %363 }
  0xe5   :  { %v138_v47 = vadd.f32 1.0, %v364_v46 }
  0xe7   :  { %373 = vrcp.f32 %v138_v47 }
  0xe8   :  { %v366_v48 = vpop.eup %365 }
  0xe9   :  { %v139_v49 = vadd.f32 1.0, %v366_v48 }
  0xeb   :  { %375 = vrcp.f32 %v139_v49 }
  0xec   :  { %v368_v50 = vpop.eup %367 }
  0xed   :  { %v370_v51 = vpop.eup %369  ;;  %v140_v52 = vadd.f32 1.0, %v368_v50 }
  0xee   :  { %v151_v54 = vmul.f32 %v370_v51, %v100_v21 }
  0xef   :  { %377 = vrcp.f32 %v140_v52 }
  0xf0   :  { %v372_v53 = vpop.eup %371 }
  0xf1   :  { %v152_v55 = vmul.f32 %v372_v53, %v103_v25 }
  0xf3   :  { %v160_v56 = vpack.c.bf16 %v152_v55, %v151_v54 }
  0xf4   :  { %v374_v57 = vpop.eup %373 }
  0xf5   :  { %339 = vmatmul.mubr.msk.bf16.vlgmr.msra.gmra.mxu1 %vm55_vm1, %v160_v56  ;;  %v153_v59 = vmul.f32 %v374_v57, %v108_v29 }
  0xf6   :  { %342 = vmatprep.mubr.msk.bf16.mxu1 %vm380_vm0, %v379_v0 }
  0xf8   :  { %v376_v58 = vpop.eup %375 }
  0xf9   :  { %v154_v60 = vmul.f32 %v376_v58, %v111_v33 }
  0xfb   :  { %v161_v61 = vpack.c.bf16 %v154_v60, %v153_v59 }
  0xfc   :  { %v378_v62 = vpop.eup %377 }
  0xfd   :  { %343 = vmatmul.mubr.msk.bf16.gmra.mxu1 %vm55_vm1, %v161_v61  ;;  %v155_v63 = vmul.f32 %v378_v62, %v116_v37 }
  0xfe   :  { %346 = vmatprep.mubr.msk.bf16.mxu1 %vm380_vm0, %v379_v0 }
  0xff   :  { %v162_v1 = vpack.c.bf16 %v155_v63, %v155_v63 }
 0x105   :  { %347 = vmatmul.mubr.msk.bf16.gmra.mxu1 %vm55_vm1, %v162_v1 }
 0x1b5   :  { %v225_v4 = vpop.f32.mrf.mxu1 }
 0x1b6   :  { %v226_v5 = vadd.f32 %v302_v2, %v225_v4 }
 0x1b7   :  { %v340_v6 = vpop.f32.mrf.mxu1 }
 0x1b8   :  { %v277_v7 = vmul.f32 %v255_v3, %v226_v5 }
 0x1b9   :  { %v228_v8 = vpop.f32.mrf.mxu1 }
 0x1ba   :  { %282 = vst.msk [vmem:[%s513_s6] sm:$0xff] %vm55_vm1, %v277_v7  ;;  %v229_v0 = vadd.f32 %v302_v2, %v228_v8 }
 0x1bb   :  { %v341_v10 = vpop.f32.mrf.mxu1 }
 0x1bc   :  { %v278_v12 = vmul.f32 %v260_v9, %v229_v0 }
 0x1bd   :  { %v233_v13 = vpop.f32.mrf.mxu1 }
 0x1be   :  { %283 = vst.msk [vmem:[%s513_s6 + $0x8] sm:$0xff] %vm55_vm1, %v278_v12  ;;  %v234_v14 = vadd.f32 %v302_v2, %v233_v13 }
 0x1bf   :  { %v344_v15 = vpop.f32.mrf.mxu1 }
 0x1c0   :  { %v279_v16 = vmul.f32 %v265_v11, %v234_v14 }
 0x1c1   :  { %v236_v17 = vpop.f32.mrf.mxu1 }
 0x1c2   :  { %284 = vst.msk [vmem:[%s513_s6 + $0x10] sm:$0xff] %vm55_vm1, %v279_v16  ;;  %v237_v19 = vadd.f32 %v302_v2, %v236_v17 }
 0x1c3   :  { %v345_v20 = vpop.f32.mrf.mxu1 }
 0x1c4   :  { %v280_v21 = vmul.f32 %v270_v18, %v237_v19 }
 0x1c5   :  { %v241_v22 = vpop.f32.mrf.mxu1 }
 0x1c6   :  { %285 = vst.msk [vmem:[%s513_s6 + $0x18] sm:$0xff] %vm55_vm1, %v280_v21  ;;  %v242_v23 = vadd.f32 %v302_v2, %v241_v22 }
 0x1c7   :  { %v348_v25 = vpop.f32.mrf.mxu1 }
 0x1c8   :  { %v281_v26 = vmul.f32 %v275_v24, %v242_v23 }
 0x1c9   :  { %v244_v27 = vpop.f32.mrf.mxu1 }
 0x1ca   :  { %286 = vst.msk [vmem:[%s513_s6 + $0x20] sm:$0xff] %vm55_vm1, %v281_v26 }
 0x1cb   :  { %v349_v28 = vpop.f32.mrf.mxu1 }

// kernel: megnn_forward.13
= control target key start
LH: loop header
LB: loop body
LE: loop exit
PB: predicated region body
PF: predicated region fallthrough
CT: control target
= control target key end

     0   :  { %v265_v0 = vmov 0.0   ;;  %vm266_vm0 = vmmov 0   ;;  %vm64_vm1 = vcmask 523264   ;;  %vm198_vm2 = vcmask 7168   ;;  %s335_s1 = inlined_call_operand.vmem [shape: bf16[64,64], index: 1, kind: input, shape index: {}]   ;;  %s336_s0 = inlined_call_operand.vmem [shape: f32[8,64], index: 0, kind: input, shape index: {}]   ;;  %s337_s3 = inlined_call_operand.vmem [shape: bf16[64,1], index: 3, kind: input, shape index: {}]   ;;  %s338_s4 = inlined_call_operand.<no memory space> [shape: f32[1,1], index: 4, kind: input, shape index: {}]   ;;  %s339_s2 = inlined_call_operand.vmem [shape: f32[1,64], index: 2, kind: input, shape index: {}]   ;;  %s340_s5 = inlined_call_operand.vmem [shape: f32[8,1], index: 5, kind: output, shape index: {}]  }
   0x1   :  { %227 = vmatprep.subr.bf16.mxu0 %v265_v0  ;;  %v253_v1 = vld [vmem:[%s335_s1 + $0x18] sm:$0xff]   ;;  %235 = vmatprep.mubr.msk.bf16.mxu0 %vm266_vm0, %v265_v0  ;;  %v254_v2 = vld [vmem:[%s335_s1 + $0x10] sm:$0xff]   ;;  %v255_v3 = vld [vmem:[%s335_s1 + $0x8] sm:$0xff]   ;;  %v10_v11 = vstv %s338_s4 }
   0x2   :  { %239 = vmatprep.subr.bf16.mxu1 %v265_v0  ;;  %247 = vmatprep.mubr.msk.bf16.mxu1 %vm266_vm0, %v265_v0  ;;  %v256_v4 = vld [vmem:[%s335_s1] sm:$0xff]   ;;  %v257_v7 = vld [vmem:[%s337_s3 + $0x18] sm:$0xff]   ;;  %v258_v8 = vld [vmem:[%s337_s3 + $0x10] sm:$0xff]   ;;  %11 = vst [vmem:[#allocation2] sm:$0x1] %v10_v11 }
   0x3   :  { %228 = vmatpush3.bf16.msra.mxu0 %v253_v1  ;;  %v23_v5 = vld [vmem:[%s336_s0] sm:$0xff]  ;;  %240 = vmatpush3.bf16.msra.mxu1 %v257_v7  ;;  %v259_v9 = vld [vmem:[%s337_s3 + $0x8] sm:$0xff]  }
   0x4   :  { %229 = vmatprep.subr.bf16.mxu0 %v265_v0  ;;  %v32_v6 = vpack.c.bf16 %v23_v5, %v23_v5  ;;  %241 = vmatprep.subr.bf16.mxu1 %v265_v0  ;;  %v260_v10 = vld [vmem:[%s337_s3] sm:$0xff]  }
   0x5   :  { %v204_v12 = vld [vmem:[%s339_s2] ss:$0 sm:$0xff] }
   0x7   :  { %230 = vmatpush3.bf16.msra.mxu0 %v254_v2  ;;  %242 = vmatpush3.bf16.msra.mxu1 %v258_v8 }
   0x8   :  { %231 = vmatprep.subr.bf16.mxu0 %v265_v0  ;;  %243 = vmatprep.subr.bf16.mxu1 %v265_v0 }
   0x9   :  { %v211_v24 = vld [vmem:[#allocation2] ss:$0 sm:$0xff] }
   0xb   :  { %232 = vmatpush3.bf16.msra.mxu0 %v255_v3  ;;  %244 = vmatpush3.bf16.msra.mxu1 %v259_v9 }
   0xc   :  { %233 = vmatprep.subr.bf16.mxu0 %v265_v0  ;;  %245 = vmatprep.subr.bf16.mxu1 %v265_v0 }
   0xf   :  { %234 = vmatpush3.bf16.msra.mxu0 %v256_v4  ;;  %246 = vmatpush3.bf16.msra.mxu1 %v260_v10 }
  0x12   :  { %236 = vmatmul.mubr.msk.bf16.vlgmr.msra.gmra.mxu0 %vm64_vm1, %v32_v6 }
  0xd2   :  { %v102_v13 = vpop.f32.mrf.mxu0 }
  0xd3   :  { %v103_v14 = vadd.f32 %v204_v12, %v102_v13 }
  0xd4   :  { %v237_v15 = vpop.f32.mrf.mxu0 }
  0xd5   :  { %v210_v16 = vmul.f32 -1.442695, %v103_v14 }
  0xd6   :  { %v105_v17 = vpop.f32.mrf.mxu0 }
  0xd7   :  { %261 = vpow2.f32 %v210_v16 }
  0xd8   :  { %v238_v18 = vpop.f32.mrf.mxu0 }
  0xe4   :  { %v262_v19 = vpop.eup %261 }
  0xe5   :  { %v111_v20 = vadd.f32 1.0, %v262_v19 }
  0xe7   :  { %263 = vrcp.f32 %v111_v20 }
  0xf4   :  { %v264_v21 = vpop.eup %263 }
  0xf5   :  { %v114_v22 = vmul.f32 %v264_v21, %v103_v14 }
  0xf7   :  { %v123_v23 = vpack.c.bf16 %v114_v22, %v114_v22 }
  0xf9   :  { %248 = vmatmul.mubr.msk.bf16.vlgmr.msra.gmra.mxu1 %vm64_vm1, %v123_v23 }
 0x1b9   :  { %v192_v25 = vpop.f32.mrf.mxu1 }
 0x1ba   :  { %v193_v26 = vadd.f32 %v211_v24, %v192_v25 }
 0x1bb   :  { %v249_v27 = vpop.f32.mrf.mxu1 }
 0x1bc   :  { %199 = vst.msk [vmem:[%s340_s5] sm:$0xff] %vm198_vm2, %v193_v26 }
 0x1bd   :  { %v195_v28 = vpop.f32.mrf.mxu1 }
 0x1bf   :  { %v250_v29 = vpop.f32.mrf.mxu1 }

// kernel: megnn_forward.8
= control target key start
LH: loop header
LB: loop body
LE: loop exit
PB: predicated region body
PF: predicated region fallthrough
CT: control target
= control target key end

     0   :  { %s4960_s30 = smov 0   ;;  %s4962_s24 = smov 0   ;;  %s5906_s0 = inlined_call_operand.vmem [shape: f32[40,32], index: 0, kind: input, shape index: {}]   ;;  %s5907_s1 = inlined_call_operand.vmem [shape: f32[40,4], index: 1, kind: input, shape index: {}]   ;;  %s5908_s2 = inlined_call_operand.vmem [shape: s32[384,1], index: 2, kind: input, shape index: {}]   ;;  %s5909_s3 = inlined_call_operand.vmem [shape: s32[384,1], index: 3, kind: input, shape index: {}]   ;;  %s5910_s4 = inlined_call_operand.vmem [shape: s32[1,384], index: 4, kind: input, shape index: {}]   ;;  %s5911_s5 = inlined_call_operand.vmem [shape: f32[384,1], index: 5, kind: input, shape index: {}]   ;;  %s5912_s6 = inlined_call_operand.vmem [shape: f32[384,2], index: 6, kind: input, shape index: {}]   ;;  %s5913_s7 = inlined_call_operand.vmem [shape: f32[384,1], index: 7, kind: input, shape index: {}]   ;;  %s5914_s8 = inlined_call_operand.vmem [shape: bf16[2,32,32], index: 8, kind: input, shape index: {}]   ;;  %s5915_s9 = inlined_call_operand.vmem [shape: bf16[2,32,32], index: 9, kind: input, shape index: {}]   ;;  %s5916_s10 = inlined_call_operand.vmem [shape: f32[2,1,32], index: 10, kind: input, shape index: {}]   ;;  %s5917_s11 = inlined_call_operand.vmem [shape: bf16[2,2,32], index: 11, kind: input, shape index: {}]   ;;  %s5918_s12 = inlined_call_operand.vmem [shape: f32[2,1,32], index: 12, kind: input, shape index: {}]   ;;  %s5919_s13 = inlined_call_operand.vmem [shape: bf16[2,32,32], index: 13, kind: input, shape index: {}]   ;;  %s5920_s14 = inlined_call_operand.vmem [shape: f32[2,1,32], index: 14, kind: input, shape index: {}]   ;;  %s5921_s15 = inlined_call_operand.vmem [shape: f32[2,1,32], index: 15, kind: input, shape index: {}]   ;;  %s5922_s16 = inlined_call_operand.vmem [shape: f32[2,1,1], index: 16, kind: input, shape index: {}]   ;;  %s5923_s17 = inlined_call_operand.vmem [shape: bf16[2,32,32], index: 17, kind: input, shape index: {}]   ;;  %s5924_s18 = inlined_call_operand.vmem [shape: bf16[2,32,32], index: 18, kind: input, shape index: {}]   ;;  %s5925_s19 = inlined_call_operand.vmem [shape: bf16[2,4,32], index: 19, kind: input, shape index: {}]   ;;  %s5926_s20 = inlined_call_operand.vmem [shape: f32[2,1,32], index: 20, kind: input, shape index: {}]   ;;  %s5927_s21 = inlined_call_operand.vmem [shape: bf16[2,32,32], index: 21, kind: input, shape index: {}]   ;;  %s5928_s22 = inlined_call_operand.vmem [shape: f32[2,1,32], index: 22, kind: input, shape index: {}]   ;;  %s5929_s23 = inlined_call_operand.vmem [shape: f32[40,32], index: 23, kind: output, shape index: {}]  }
   0x1   :  { %5942 = sst [smem:[#allocation15_spill]] %s5906_s0  ;;  %s4964_s25 = smov 0  }
   0x2   :  { %5943 = sst [smem:[#allocation16_spill]] %s5907_s1 }
   0x3   :  { %5944 = sst [smem:[#allocation17_spill]] %s5908_s2 }
   0x4   :  { %5945 = sst [smem:[#allocation18_spill]] %s5909_s3 }
   0x5   :  { %5946 = sst [smem:[#allocation19_spill]] %s5910_s4  ;;  %s4958_s4 = smov 0  }
   0x6   :  { %5947 = sst [smem:[#allocation20_spill]] %s5911_s5  ;;  %s4966_s5 = smov 0  }
   0x7   :  { %5948 = sst [smem:[#allocation21_spill]] %s5912_s6 }
   0x8   :  { %5949 = sst [smem:[#allocation22_spill]] %s5913_s7 }
   0x9   :  { %5950 = sst [smem:[#allocation23_spill]] %s5914_s8 }
   0xa   :  { %5951 = sst [smem:[#allocation24_spill]] %s5915_s9 }
   0xb   :  { %5952 = sst [smem:[#allocation25_spill]] %s5916_s10 }
   0xc   :  { %5953 = sst [smem:[#allocation26_spill]] %s5919_s13 }
   0xd   :  { %5954 = sst [smem:[#allocation27_spill]] %s5920_s14 }
   0xe   :  { %5955 = sst [smem:[#allocation28_spill]] %s5921_s15 }
   0xf   :  { %5956 = sst [smem:[#allocation29_spill]] %s5923_s17 }
  0x10   :  { %5957 = sst [smem:[#allocation30_spill]] %s5924_s18 }
  0x11   :  { %5958 = sst [smem:[#allocation31_spill]] %s5925_s19 }
  0x12   :  { %5959 = sst [smem:[#allocation32_spill]] %s5926_s20 }
  0x13   :  { %5960 = sst [smem:[#allocation33_spill]] %s5927_s21 }
  0x14   :  { %5961 = sst [smem:[#allocation34_spill]] %s5928_s22 }
  0x15   :  { %5962 = sst [smem:[#allocation35_spill]] %s5929_s23 }
  0x16 LB: > { %5963 = sst [smem:[#allocation4_spill]] %s4817_s30  ;;  %s42_s1 = sadd.s32 1, %s4821_s24  ;;  %s4829_s5 = sphi %s4966_s5, %s33_s5   ;;  %s4825_s25 = sphi %s4964_s25, %s6019_s25   ;;  %s4821_s24 = sphi %s4962_s24, %s6018_s24   ;;  %s4817_s30 = sphi %s4960_s30, %s6017_s30   ;;  %s4813_s4 = sphi %s4958_s4, %s6016_s4  }
  0x17   : > { %5964 = sst [smem:[#allocation5_spill]] %s4821_s24  ;;  %s45_s26 = sadd.s32 1, %s4825_s25 }
  0x18   : > { %5965 = sst [smem:[#allocation6_spill]] %s4825_s25  ;;  %p43_p0 = scmp.ge.s32.totalorder %s42_s1, 3 }
  0x19   : > { %5966 = sst [smem:[#allocation7_spill]] %s4829_s5  ;;  %p3905_p1 = scmp.ge.s32.totalorder %s4829_s5, 1 }
  0x1a   : > { %p830_p2 = scmp.lt.s32.totalorder %s4829_s5, 7  ;;  %s6021_s1 = smov (%p43_p0, %s42_s1), 0 }
  0x1b   : > { %5967 = sst [smem:[#allocation8_spill]] %s6021_s1  ;;  %s6023_s26 = smov (!%p43_p0, %s45_s26), %s4825_s25 }
  0x1c   : > { %p831_p3 = pnand %p3905_p1, %p830_p2  ;;  %p47_p4 = scmp.ge.s32.totalorder %s6023_s26, 2 }
  0x1e   : > { %s6025_s26 = smov (%p47_p4, %s6023_s26), 0  ;;  %834 = sbr.rel (%p831_p3) target bundleno = 2038 (0x7f6), region = 112 }
  0x1f   : > { %5968 = sst [smem:[#allocation9_spill]] %s6025_s26 }
  0x23   : > { %s3906_s2 = sshll.u32 %s4813_s4, 4  ;;  %p982_p5 = scmp.lt.s32.totalorder %s4813_s4, 2 }
  0x24   : > { %p971_p6 = scmp.lt.s32.totalorder %s3906_s2, 47  ;;  %p1003_p7 = scmp.lt.s32.totalorder %s4817_s30, 1 }
  0x25   : > { %s4996_s6 = scalar_select %p982_p5, %s4813_s4, 2 }
  0x26   : > { %s6027_s2 = smov (!%p971_p6, %s3906_s2), 47  ;;  %p1062_p8 = scmp.eq.s32.totalorder %s4817_s30, 0 }
  0x27   : > { %5969 = sst [smem:[#allocation10_spill]] %s4996_s6  ;;  %s3907_s3 = sshll.u32 %s6027_s2, 3 }
  0x28   : > { %p1063_p9 = scmp.eq.s32.totalorder %s4813_s4, 0  ;;  %s5971_s1 = sld [smem:[#allocation17_spill]] }
  0x29   : > { %s5972_s23 = sld [smem:[#allocation18_spill]] }
  0x2a   : > { %s5973_s20 = sld [smem:[#allocation20_spill]]  ;;  %p5029_p10 = pnand %p1063_p9, %p1062_p8 }
  0x2b   : > { %s5974_s28 = sld [smem:[#allocation21_spill]] }
  0x2c   : > { %s5976_s26 = sld [smem:[#allocation22_spill]] }
  0x2d   : > { %s5980_s8 = sld [smem:[#allocation23_spill]] }
  0x2e   : > { %s5007_s25 = scalar_lea.vmem %s5971_s1, %s3907_s3  ;;  %s5982_s9 = sld [smem:[#allocation24_spill]] }
  0x2f   : > { %s5012_s22 = scalar_lea.vmem %s5972_s23, %s3907_s3  ;;  %s5983_s13 = sld [smem:[#allocation26_spill]] }
  0x30   : > { %s5017_s18 = scalar_lea.vmem %s5973_s20, %s3907_s3  ;;  %s5986_s17 = sld [smem:[#allocation29_spill]] }
  0x31   : > { %s5022_s2 = scalar_lea.vmem %s5974_s28, %s3907_s3  ;;  %s5988_s20 = sld [smem:[#allocation30_spill]] }
  0x32   : > { %5975 = sst [smem:[#allocation11_spill]] %s5022_s2  ;;  %s5027_s1 = scalar_lea.vmem %s5976_s26, %s3907_s3 }
  0x33   : > { %5977 = sst [smem:[#allocation12_spill]] %s5027_s1 }
  0x34   : > { %s5036_s23 = scalar_select %p1003_p7, %s4817_s30, 1 }
  0x35   : > { %s5989_s14 = sld [smem:[#allocation32_spill]] }
  0x36   : > { %s4125_s19 = sshll.u32 %s5036_s23, 4  ;;  %s3926_s5 = sshll.u32 %s5036_s23, 1 }
  0x37   : > { %s5046_s29 = scalar_lea.vmem %s5980_s8, %s4125_s19  ;;  %s5051_s7 = scalar_lea.vmem %s5982_s9, %s4125_s19 }
  0x38   : > { %5981 = sst [smem:[#allocation13_spill]] %s5046_s29  ;;  %s5064_s10 = scalar_lea.vmem %s5983_s13, %s4125_s19 }
  0x39   : > { %s5081_s1 = scalar_lea.vmem %s5986_s17, %s4125_s19  ;;  %s5086_s13 = scalar_lea.vmem %s5988_s20, %s4125_s19 }
  0x3a   : > { %5987 = sst [smem:[#allocation14_spill]] %s5081_s1 }
  0x3b   : > { %s1052_s3 = scalar_lea.vmem %s5989_s14, %s5036_s23  ;;  %s5990_s15 = sld [smem:[#allocation31_spill]] }
  0x3c   : > { %s5991_s30 = sld [smem:[#allocation33_spill]] }
  0x3d   : > { %s5992_s24 = sld [smem:[#allocation34_spill]] }
  0x3e   : > { %s5993_s14 = sld [smem:[#allocation15_spill]] (!%p5029_p10) }
  0x3f   : > { %1067 = sbr.rel (%p5029_p10) target bundleno = 72 (0x48), region = 116 }
  0x41   : > { %s5096_s29 = scalar_lea.vmem %s5990_s15, %s3926_s5 }
  0x42   : > { %s5101_s2 = scalar_lea.vmem %s5991_s30, %s4125_s19 }
  0x43   : > { %s1060_s20 = scalar_lea.vmem %s5992_s24, %s5036_s23 }
  0x44   : > { %v1068_v0 = vld [vmem:[%s5993_s14] sm:$0xff]  ;;  %vm1073_vm0 = vcmask 261120   ;;  %v1069_v1 = vld [vmem:[%s5993_s14 + $0x8] sm:$0xff]  ;;  %v1070_v2 = vld [vmem:[%s5993_s14 + $0x10] sm:$0xff] }
  0x45   : > { %1074 = vst.msk [vmem:[#allocation2] sm:$0xff] %vm1073_vm0, %v1068_v0  ;;  %1075 = vst.msk [vmem:[#allocation2 + $0x8] sm:$0xff] %vm1073_vm0, %v1069_v1  ;;  %v1071_v3 = vld [vmem:[%s5993_s14 + $0x18] sm:$0xff]  ;;  %v1072_v4 = vld [vmem:[%s5993_s14 + $0x20] sm:$0xff] }
  0x46   : > { %1076 = vst.msk [vmem:[#allocation2 + $0x10] sm:$0xff] %vm1073_vm0, %v1070_v2  ;;  %1077 = vst.msk [vmem:[#allocation2 + $0x18] sm:$0xff] %vm1073_vm0, %v1071_v3 }
  0x47   : > { %1078 = vst.msk [vmem:[#allocation2 + $0x20] sm:$0xff] %vm1073_vm0, %v1072_v4 }
  0x48 PF: > { %p3929_p11 = scmp.ne.s32.totalorder %s4813_s4, 0 }
  0x4a   : > { %1081 = sbr.rel (%p3929_p11) target bundleno = 83 (0x53), region = 120 }
  0x4f   : > { %vm1082_vm1 = vcmask 261120   ;;  %v4831_v5 = vmov 0.0  }
  0x50   : > { %1083 = vst.msk [vmem:[#allocation3] sm:$0xff] %vm1082_vm1, %v4831_v5  ;;  %1084 = vst.msk [vmem:[#allocation3 + $0x8] sm:$0xff] %vm1082_vm1, %v4831_v5 }
  0x51   : > { %1085 = vst.msk [vmem:[#allocation3 + $0x10] sm:$0xff] %vm1082_vm1, %v4831_v5  ;;  %1086 = vst.msk [vmem:[#allocation3 + $0x18] sm:$0xff] %vm1082_vm1, %v4831_v5 }
  0x52   : > { %1087 = vst.msk [vmem:[#allocation3 + $0x20] sm:$0xff] %vm1082_vm1, %v4831_v5 }
  0x53 PF: > { %v1109_v6 = vld [vmem:[%s5007_s25 + $0x70] sm:$0xff]  ;;  %v1107_v7 = vld [vmem:[%s5007_s25 + $0x60] sm:$0xff]  ;;  %v4832_v8 = vmov 0   ;;  %v1110_v9 = vld [vmem:[%s5007_s25 + $0x78] sm:$0xff]  ;;  %v1093_v61 = vlaneseq  ;;  %vm1319_vm2 = vcmask 326656   ;;  %v4833_v1 = vmov 0.0   ;;  %s5995_s6 = scalar_lea.vmem %s5917_s11, %s5036_s23  ;;  %s5999_s8 = scalar_lea.vmem %s5918_s12, %s5036_s23 }
  0x54   : > { %4566 = vset.pattern.permute.xlu1 %v4832_v8  ;;  %4565 = vset.pattern.permute.xlu0 %v4832_v8  ;;  %v1108_v10 = vld [vmem:[%s5007_s25 + $0x68] sm:$0xff]  ;;  %v1207_v12 = vld [vmem:[%s5012_s22] sm:$0xff]  ;;  %v1210_v13 = vld [vmem:[%s5012_s22 + $0x18] sm:$0xff]  ;;  %s5997_s28 = sld [smem:[#allocation25_spill]]  ;;  %p4096_p12 = scmp.ne.s32.totalorder %s4813_s4, 2 }
  0x55   : > { %1154 = vperm.xlu1 %4566, %v1109_v6   ;;  %1148 = vperm.xlu0 %4565, %v1107_v7   ;;  %v1208_v11 = vld [vmem:[%s5012_s22 + $0x8] sm:$0xff]  ;;  %v1209_v14 = vld [vmem:[%s5012_s22 + $0x10] sm:$0xff]  ;;  %v1211_v16 = vld [vmem:[%s5012_s22 + $0x20] sm:$0xff]  ;;  %v5209_v62 = vand.u32 127, %v1093_v61  ;;  %s6000_s5 = sld [smem:[#allocation27_spill]] }
  0x56   : > { %v1212_v15 = vld [vmem:[%s5012_s22 + $0x28] sm:$0xff]  ;;  %v5135_v17 = vld [vmem:[#allocation2 + $0x20] sm:$0xff]  ;;  %v1214_v18 = vld [vmem:[%s5012_s22 + $0x38] sm:$0xff]  ;;  %s6002_s0 = sld [smem:[#allocation28_spill]] }
  0x57   : > { %v1213_v19 = vld [vmem:[%s5012_s22 + $0x30] sm:$0xff]  ;;  %4507 = vmatprep.subr.mxu1 %v5135_v17  ;;  %v5140_v20 = vld [vmem:[#allocation2 + $0x18] sm:$0xff]  ;;  %4252 = vmatprep.subr.mxu0 %v5135_v17  ;;  %v5151_v22 = vld [vmem:[#allocation2 + $0x8] sm:$0xff]  ;;  %s6009_s24 = sld [smem:[#allocation14_spill]] (!%p4096_p12) }
  0x58   : > { %v5143_v21 = vld [vmem:[#allocation2 + $0x10] sm:$0xff]  ;;  %4512 = vmatpush3.msra.mxu1 %v5135_v17  ;;  %4253 = vmatpush3.msra.mxu0 %v5135_v17  ;;  %v1216_v23 = vld [vmem:[%s5012_s22 + $0x48] sm:$0xff]  ;;  %v1215_v24 = vld [vmem:[%s5012_s22 + $0x40] sm:$0xff] }
  0x59   : > { %1157 = vperm.xlu1 %4566, %v1110_v9   ;;  %1151 = vperm.xlu0 %4565, %v1108_v10   ;;  %v5160_v25 = vld [vmem:[#allocation2] sm:$0xff]  ;;  %v1218_v26 = vld [vmem:[%s5012_s22 + $0x58] sm:$0xff]  ;;  %v1217_v27 = vld [vmem:[%s5012_s22 + $0x50] sm:$0xff] }
  0x5a   : > { %4508 = vmatprep.subr.mxu1 %v5140_v20  ;;  %4254 = vmatprep.subr.mxu0 %v5140_v20  ;;  %v1220_v28 = vld [vmem:[%s5012_s22 + $0x68] sm:$0xff]  ;;  %v1219_v29 = vld [vmem:[%s5012_s22 + $0x60] sm:$0xff]  ;;  %v1221_v30 = vld [vmem:[%s5012_s22 + $0x70] sm:$0xff]  ;;  %s5998_s30 = scalar_lea.vmem %s5997_s28, %s5036_s23  ;;  %s6007_s28 = sld [smem:[#allocation19_spill]] }
  0x5b   : > { %4513 = vmatpush3.msra.mxu1 %v5140_v20  ;;  %4255 = vmatpush3.msra.mxu0 %v5140_v20  ;;  %v1095_v31 = vld [vmem:[%s5007_s25] sm:$0xff]  ;;  %v1222_v32 = vld [vmem:[%s5012_s22 + $0x78] sm:$0xff]  ;;  %v1096_v33 = vld [vmem:[%s5007_s25 + $0x8] sm:$0xff]  ;;  %s6001_s26 = scalar_lea.vmem %s6000_s5, %s5036_s23 }
  0x5c   : > { %4509 = vmatprep.subr.mxu1 %v5143_v21  ;;  %4256 = vmatprep.subr.mxu0 %v5143_v21  ;;  %v1098_v34 = vld [vmem:[%s5007_s25 + $0x18] sm:$0xff]  ;;  %v1097_v35 = vld [vmem:[%s5007_s25 + $0x10] sm:$0xff]  ;;  %v1100_v36 = vld [vmem:[%s5007_s25 + $0x28] sm:$0xff]  ;;  %s6003_s1 = scalar_lea.vmem %s6002_s0, %s5036_s23 }
  0x5d   : > { %1227 = vperm.xlu1 %4566, %v1208_v11   ;;  %1224 = vperm.xlu0 %4565, %v1207_v12   ;;  %v1099_v37 = vld [vmem:[%s5007_s25 + $0x20] sm:$0xff]  ;;  %v1102_v38 = vld [vmem:[%s5007_s25 + $0x38] sm:$0xff]  ;;  %v1101_v39 = vld [vmem:[%s5007_s25 + $0x30] sm:$0xff] }
  0x5e   : > { %4514 = vmatpush3.msra.mxu1 %v5143_v21  ;;  %4257 = vmatpush3.msra.mxu0 %v5143_v21  ;;  %v1104_v40 = vld [vmem:[%s5007_s25 + $0x48] sm:$0xff]  ;;  %v1103_v41 = vld [vmem:[%s5007_s25 + $0x40] sm:$0xff]  ;;  %v1106_v42 = vld [vmem:[%s5007_s25 + $0x58] sm:$0xff] }
  0x5f   : > { %4510 = vmatprep.subr.mxu1 %v5151_v22  ;;  %4258 = vmatprep.subr.mxu0 %v5151_v22  ;;  %v1105_v43 = vld [vmem:[%s5007_s25 + $0x50] sm:$0xff]  ;;  %v1998_v44 = vld [vmem:[%s5017_s18 + $0x8] sm:$0xff]  ;;  %v1997_v45 = vld [vmem:[%s5017_s18] sm:$0xff] }
  0x60   : > { %4515 = vmatpush3.msra.mxu1 %v5151_v22  ;;  %4259 = vmatpush3.msra.mxu0 %v5151_v22  ;;  %v2000_v46 = vld [vmem:[%s5017_s18 + $0x18] sm:$0xff]  ;;  %v1999_v47 = vld [vmem:[%s5017_s18 + $0x10] sm:$0xff]  ;;  %v2002_v48 = vld [vmem:[%s5017_s18 + $0x28] sm:$0xff] }
  0x61   : > { %1233 = vperm.xlu1 %4566, %v1210_v13   ;;  %1230 = vperm.xlu0 %4565, %v1209_v14   ;;  %v2001_v49 = vld [vmem:[%s5017_s18 + $0x20] sm:$0xff]  ;;  %v2004_v50 = vld [vmem:[%s5017_s18 + $0x38] sm:$0xff]  ;;  %v2003_v51 = vld [vmem:[%s5017_s18 + $0x30] sm:$0xff] }
  0x62   : > { %4511 = vmatprep.subr.mxu1 %v5160_v25  ;;  %4260 = vmatprep.subr.mxu0 %v5160_v25  ;;  %v2006_v52 = vld [vmem:[%s5017_s18 + $0x48] sm:$0xff]  ;;  %v2005_v53 = vld [vmem:[%s5017_s18 + $0x40] sm:$0xff]  ;;  %v2008_v54 = vld [vmem:[%s5017_s18 + $0x58] sm:$0xff] }
  0x63   : > { %4516 = vmatpush3.msra.mxu1 %v5160_v25  ;;  %4261 = vmatpush3.msra.mxu0 %v5160_v25  ;;  %v2007_v55 = vld [vmem:[%s5017_s18 + $0x50] sm:$0xff]  ;;  %v2010_v56 = vld [vmem:[%s5017_s18 + $0x68] sm:$0xff]  ;;  %v2009_v57 = vld [vmem:[%s5017_s18 + $0x60] sm:$0xff] }
  0x64   : > { %4286 = vmatprep.subr.mxu1 %v5135_v17  ;;  %v5203_v58 = vld [vmem:[%s5051_s7 + $0x8] sm:$0xff]   ;;  %v2012_v59 = vld [vmem:[%s5017_s18 + $0x78] sm:$0xff]  ;;  %v2011_v60 = vld [vmem:[%s5017_s18 + $0x70] sm:$0xff]  ;;  %s5994_s18 = sld [smem:[#allocation13_spill]] }
  0x65   : > { %1239 = vperm.xlu1 %4566, %v1212_v15   ;;  %1236 = vperm.xlu0 %4565, %v1211_v16  }
  0x66   : > { %4320 = vmatprep.subr.bf16.mxu0 %v5203_v58 }
  0x69   : > { %1245 = vperm.xlu1 %4566, %v1214_v18   ;;  %1242 = vperm.xlu0 %4565, %v1213_v19  }
  0x6d   : > { %1251 = vperm.xlu1 %4566, %v1216_v23   ;;  %1248 = vperm.xlu0 %4565, %v1215_v24  }
  0x71   : > { %1257 = vperm.xlu1 %4566, %v1218_v26   ;;  %1254 = vperm.xlu0 %4565, %v1217_v27  }
  0x75   : > { %1263 = vperm.xlu1 %4566, %v1220_v28   ;;  %1260 = vperm.xlu0 %4565, %v1219_v29  }
  0x79   : > { %1266 = vperm.xlu1 %4566, %v1221_v30   ;;  %1112 = vperm.xlu0 %4565, %v1095_v31  }
  0x7d   : > { %1269 = vperm.xlu1 %4566, %v1222_v32   ;;  %1115 = vperm.xlu0 %4565, %v1096_v33  }
  0x81   : > { %1121 = vperm.xlu1 %4566, %v1098_v34   ;;  %1118 = vperm.xlu0 %4565, %v1097_v35  }
  0x85   : > { %1127 = vperm.xlu1 %4566, %v1100_v36   ;;  %1124 = vperm.xlu0 %4565, %v1099_v37  }
  0x89   : > { %1133 = vperm.xlu1 %4566, %v1102_v38   ;;  %1130 = vperm.xlu0 %4565, %v1101_v39  }
  0x8d   : > { %1139 = vperm.xlu1 %4566, %v1104_v40   ;;  %1136 = vperm.xlu0 %4565, %v1103_v41  }
  0x91   : > { %1145 = vperm.xlu1 %4566, %v1106_v42   ;;  %1142 = vperm.xlu0 %4565, %v1105_v43  }
  0x95   : > { %2021 = vperm.xlu1 %4566, %v1998_v44   ;;  %2016 = vperm.xlu0 %4565, %v1997_v45  }
  0x99   : > { %2031 = vperm.xlu1 %4566, %v2000_v46   ;;  %2026 = vperm.xlu0 %4565, %v1999_v47  }
  0x9d   : > { %2041 = vperm.xlu1 %4566, %v2002_v48   ;;  %2036 = vperm.xlu0 %4565, %v2001_v49  }
  0xa1   : > { %2051 = vperm.xlu1 %4566, %v2004_v50   ;;  %2046 = vperm.xlu0 %4565, %v2003_v51  }
  0xa5   : > { %2061 = vperm.xlu1 %4566, %v2006_v52   ;;  %2056 = vperm.xlu0 %4565, %v2005_v53  }
  0xa9   : > { %2071 = vperm.xlu1 %4566, %v2008_v54   ;;  %2066 = vperm.xlu0 %4565, %v2007_v55  }
  0xad   : > { %2081 = vperm.xlu1 %4566, %v2010_v56   ;;  %2076 = vperm.xlu0 %4565, %v2009_v57  }
  0xb1   : > { %2091 = vperm.xlu1 %4566, %v2012_v59   ;;  %2086 = vperm.xlu0 %4565, %v2011_v60  }
  0xd0   : > { %v1155_v63 = vpop.permute.xlu1 %1154  ;;  %v1149_v0 = vpop.permute.xlu0 %1148 }
  0xd1   : > { %vm1171_vm3 = vcmp.eq.s32.totalorder %v5209_v62, %v1149_v0  ;;  %vm1173_vm4 = vcmp.eq.s32.totalorder %v5209_v62, %v1155_v63 }
  0xd2   : > { %v3942_v2 = vsel %vm1171_vm3, 1.0, %v4833_v1  ;;  %v3944_v6 = vsel %vm1173_vm4, 1.0, %v4833_v1 }
  0xd3   : > { %4280 = vmatprep.mubr.msk.f32.mxu1 %vm1319_vm2, %v3942_v2 }
  0xd4   : > { %v1158_v3 = vpop.permute.xlu1 %1157  ;;  %v1152_v4 = vpop.permute.xlu0 %1151 }
  0xd5   : > { %vm1172_vm5 = vcmp.eq.s32.totalorder %v5209_v62, %v1152_v4  ;;  %vm1174_vm6 = vcmp.eq.s32.totalorder %v5209_v62, %v1158_v3 }
  0xd6   : > { %v3943_v5 = vsel %vm1172_vm5, 1.0, %v4833_v1  ;;  %v3945_v9 = vsel %vm1174_vm6, 1.0, %v4833_v1 }
  0xd7   : > { %4281 = vmatmul.mubr.msk.f32.vlgmr.msra.gmra.mxu1 %vm1319_vm2, %v3943_v5 }
  0xd8   : > { %4287 = vmatpush3.msra.mxu1 %v5135_v17  ;;  %v1228_v7 = vpop.permute.xlu1 %1227  ;;  %v1225_v8 = vpop.permute.xlu0 %1224  ;;  %4283 = vmatprep.mubr.msk.f32.mxu1 %vm1319_vm2, %v3944_v6 }
  0xd9   : > { %vm1271_vm7 = vcmp.eq.s32.totalorder %v5209_v62, %v1225_v8  ;;  %4288 = vmatprep.subr.mxu1 %v5140_v20  ;;  %vm1272_vm8 = vcmp.eq.s32.totalorder %v5209_v62, %v1228_v7  ;;  %v4568_v8 = vld [vmem:[%s5051_s7] sm:$0xff]   ;;  %s5996_s7 = sld [smem:[#allocation11_spill]] }
  0xda   : > { %v3946_v10 = vsel %vm1271_vm7, 1.0, %v4833_v1  ;;  %4289 = vmatpush3.msra.mxu1 %v5140_v20  ;;  %v3947_v13 = vsel %vm1272_vm8, 1.0, %v4833_v1 }
  0xdb   : > { %4290 = vmatprep.subr.mxu1 %v5143_v21  ;;  %4284 = vmatmul.mubr.msk.f32.gmra.mxu1 %vm1319_vm2, %v3945_v9  ;;  %v4569_v9 = vld [vmem:[%s5994_s18 + $0x8] sm:$0xff]  }
  0xdc   : > { %4291 = vmatpush3.msra.mxu1 %v5143_v21  ;;  %v1234_v11 = vpop.permute.xlu1 %1233  ;;  %v1231_v12 = vpop.permute.xlu0 %1230  ;;  %4296 = vmatprep.mubr.msk.f32.mxu1 %vm1319_vm2, %v3946_v10  ;;  %v2148_v10 = vld [vmem:[%s5995_s6] sm:$0x1]  ;;  %s6005_s6 = scalar_lea.vmem %s5922_s16, %s5036_s23  ;;  %s6013_s23 = sld [smem:[#allocation4_spill]] (!%p4096_p12) }
  0xdd   : > { %4292 = vmatprep.subr.mxu1 %v5151_v22  ;;  %vm1273_vm9 = vcmp.eq.s32.totalorder %v5209_v62, %v1231_v12  ;;  %vm1274_vm10 = vcmp.eq.s32.totalorder %v5209_v62, %v1234_v11  ;;  %v4570_v11 = vld [vmem:[%s5994_s18] sm:$0xff]   ;;  %s6004_s18 = sld [smem:[#allocation12_spill]] }
  0xde   : > { %4293 = vmatpush3.msra.mxu1 %v5151_v22  ;;  %v3948_v16 = vsel %vm1273_vm9, 1.0, %v4833_v1  ;;  %v3949_v18 = vsel %vm1274_vm10, 1.0, %v4833_v1 }
  0xdf   : > { %4294 = vmatprep.subr.mxu1 %v5160_v25 }
  0xe0   : > { %4295 = vmatpush3.msra.mxu1 %v5160_v25  ;;  %v1240_v14 = vpop.permute.xlu1 %1239  ;;  %v1237_v15 = vpop.permute.xlu0 %1236 }
  0xe1   : > { %4297 = vmatmul.mubr.msk.f32.vlgmr.msra.gmra.mxu1 %vm1319_vm2, %v3947_v13  ;;  %vm1275_vm11 = vcmp.eq.s32.totalorder %v5209_v62, %v1237_v15  ;;  %vm1276_vm12 = vcmp.eq.s32.totalorder %v5209_v62, %v1240_v14  ;;  %4340 = vmatprep.subr.bf16.mxu1 %v4569_v9 }
  0xe2   : > { %4299 = vmatprep.mubr.msk.f32.mxu1 %vm1319_vm2, %v3948_v16  ;;  %v3950_v24 = vsel %vm1275_vm11, 1.0, %v4833_v1  ;;  %v3951_v26 = vsel %vm1276_vm12, 1.0, %v4833_v1  ;;  %4341 = vmatpush3.bf16.msra.mxu1 %v4569_v9  ;;  %v2141_v9 = vld [vmem:[%s5996_s7 + $0x48] sm:$0xff]  ;;  %p4122_p13 = scmp.ne.s32.totalorder (!%p4096_p12), %s6013_s23, 1 }
  0xe3   : > { %4342 = vmatprep.subr.bf16.mxu1 %v4570_v11 }
  0xe4   : > { %v1246_v19 = vpop.permute.xlu1 %1245  ;;  %v1243_v23 = vpop.permute.xlu0 %1242 }
  0xe5   : > { %4300 = vmatmul.mubr.msk.f32.gmra.mxu1 %vm1319_vm2, %v3949_v18  ;;  %vm1277_vm13 = vcmp.eq.s32.totalorder %v5209_v62, %v1243_v23  ;;  %vm1278_vm14 = vcmp.eq.s32.totalorder %v5209_v62, %v1246_v19 }
  0xe6   : > { %4302 = vmatprep.mubr.msk.f32.mxu1 %vm1319_vm2, %v3950_v24  ;;  %v3952_v29 = vsel %vm1277_vm13, 1.0, %v4833_v1  ;;  %v3953_v30 = vsel %vm1278_vm14, 1.0, %v4833_v1  ;;  %4343 = vmatpush3.bf16.msra.mxu1 %v4570_v11 }
  0xe8   : > { %v1252_v27 = vpop.permute.xlu1 %1251  ;;  %v1249_v28 = vpop.permute.xlu0 %1248 }
  0xe9   : > { %4303 = vmatmul.mubr.msk.f32.gmra.mxu1 %vm1319_vm2, %v3951_v26  ;;  %vm1279_vm15 = vcmp.eq.s32.totalorder %v5209_v62, %v1249_v28  ;;  %vm1280_vm0 = vcmp.eq.s32.totalorder %v5209_v62, %v1252_v27 }
  0xea   : > { %4305 = vmatprep.mubr.msk.f32.mxu1 %vm1319_vm2, %v3952_v29  ;;  %v3954_v33 = vsel %vm1279_vm15, 1.0, %v4833_v1  ;;  %v3955_v34 = vsel %vm1280_vm0, 1.0, %v4833_v1 }
  0xec   : > { %v1258_v31 = vpop.permute.xlu1 %1257  ;;  %v1255_v32 = vpop.permute.xlu0 %1254 }
  0xed   : > { %4306 = vmatmul.mubr.msk.f32.gmra.mxu1 %vm1319_vm2, %v3953_v30  ;;  %vm1281_vm1 = vcmp.eq.s32.totalorder %v5209_v62, %v1255_v32  ;;  %vm1282_vm3 = vcmp.eq.s32.totalorder %v5209_v62, %v1258_v31 }
  0xee   : > { %4308 = vmatprep.mubr.msk.f32.mxu1 %vm1319_vm2, %v3954_v33  ;;  %v3956_v37 = vsel %vm1281_vm1, 1.0, %v4833_v1  ;;  %v3957_v38 = vsel %vm1282_vm3, 1.0, %v4833_v1 }
  0xf0   : > { %v1264_v35 = vpop.permute.xlu1 %1263  ;;  %v1261_v36 = vpop.permute.xlu0 %1260 }
  0xf1   : > { %4309 = vmatmul.mubr.msk.f32.gmra.mxu1 %vm1319_vm2, %v3955_v34  ;;  %vm1283_vm4 = vcmp.eq.s32.totalorder %v5209_v62, %v1261_v36  ;;  %vm1284_vm5 = vcmp.eq.s32.totalorder %v5209_v62, %v1264_v35 }
  0xf2   : > { %4311 = vmatprep.mubr.msk.f32.mxu1 %vm1319_vm2, %v3956_v37  ;;  %v3958_v41 = vsel %vm1283_vm4, 1.0, %v4833_v1  ;;  %v3959_v43 = vsel %vm1284_vm5, 1.0, %v4833_v1  ;;  %vm2182_vm5 = vcmask 1040384  }
  0xf4   : > { %v1267_v39 = vpop.permute.xlu1 %1266  ;;  %v1113_v40 = vpop.permute.xlu0 %1112 }
  0xf5   : > { %vm1159_vm6 = vcmp.eq.s32.totalorder %v5209_v62, %v1113_v40  ;;  %4312 = vmatmul.mubr.msk.f32.gmra.mxu1 %vm1319_vm2, %v3957_v38  ;;  %vm1285_vm7 = vcmp.eq.s32.totalorder %v5209_v62, %v1267_v39 }
  0xf6   : > { %4314 = vmatprep.mubr.msk.f32.mxu1 %vm1319_vm2, %v3958_v41  ;;  %v3930_v42 = vsel %vm1159_vm6, 1.0, %v4833_v1  ;;  %v3960_v46 = vsel %vm1285_vm7, 1.0, %v4833_v1  ;;  %vm2157_vm6 = vcmask 15360   ;;  %vm4834_vm7 = vmmov 0  }
  0xf7   : > { %4262 = vmatprep.mubr.msk.f32.mxu0 %vm1319_vm2, %v3930_v42 }
  0xf8   : > { %v1270_v44 = vpop.permute.xlu1 %1269  ;;  %v1116_v45 = vpop.permute.xlu0 %1115 }
  0xf9   : > { %vm1286_vm8 = vcmp.eq.s32.totalorder %v5209_v62, %v1270_v44  ;;  %vm1160_vm9 = vcmp.eq.s32.totalorder %v5209_v62, %v1116_v45  ;;  %4315 = vmatmul.mubr.msk.f32.gmra.mxu1 %vm1319_vm2, %v3959_v43  ;;  %v2132_v43 = vld [vmem:[%s5996_s7] sm:$0xff]  ;;  %v2133_v44 = vld [vmem:[%s5996_s7 + $0x8] sm:$0xff] }
  0xfa   : > { %v3961_v47 = vsel %vm1286_vm8, 1.0, %v4833_v1  ;;  %v3931_v48 = vsel %vm1160_vm9, 1.0, %v4833_v1  ;;  %4317 = vmatprep.mubr.msk.f32.mxu1 %vm1319_vm2, %v3960_v46 }
  0xfb   : > { %4263 = vmatmul.mubr.msk.f32.vlgmr.msra.gmra.mxu0 %vm1319_vm2, %v3931_v48 }
  0xfc   : > { %v1122_v49 = vpop.permute.xlu1 %1121  ;;  %v1119_v50 = vpop.permute.xlu0 %1118  ;;  %4321 = vmatpush3.bf16.msra.mxu0 %v5203_v58 }
  0xfd   : > { %vm1162_vm10 = vcmp.eq.s32.totalorder %v5209_v62, %v1122_v49  ;;  %vm1161_vm11 = vcmp.eq.s32.totalorder %v5209_v62, %v1119_v50  ;;  %4318 = vmatmul.mubr.msk.f32.gmra.mxu1 %vm1319_vm2, %v3961_v47  ;;  %4322 = vmatprep.subr.bf16.mxu0 %v4568_v8  ;;  %v2149_v49 = vpack.c.bf16 %v2133_v44, %v2132_v43 }
  0xfe   : > { %v3933_v51 = vsel %vm1162_vm10, 1.0, %v4833_v1  ;;  %v3932_v52 = vsel %vm1161_vm11, 1.0, %v4833_v1 }
  0xff   : > { %4265 = vmatprep.mubr.msk.f32.mxu0 %vm1319_vm2, %v3932_v52 }
 0x100   : > { %v1128_v53 = vpop.permute.xlu1 %1127  ;;  %v1125_v54 = vpop.permute.xlu0 %1124  ;;  %4266 = vmatmul.mubr.msk.f32.gmra.mxu0 %vm1319_vm2, %v3933_v51 }
 0x101   : > { %vm1164_vm12 = vcmp.eq.s32.totalorder %v5209_v62, %v1128_v53  ;;  %vm1163_vm13 = vcmp.eq.s32.totalorder %v5209_v62, %v1125_v54  ;;  %4323 = vmatpush3.bf16.msra.mxu0 %v4568_v8  ;;  %v2134_v54 = vld [vmem:[%s5996_s7 + $0x10] sm:$0xff]  ;;  %v2140_v8 = vld [vmem:[%s5996_s7 + $0x40] sm:$0xff] }
 0x102   : > { %v3935_v55 = vsel %vm1164_vm12, 1.0, %v4833_v1  ;;  %v3934_v56 = vsel %vm1163_vm13, 1.0, %v4833_v1  ;;  %4517 = vmatprep.subr.msk.bf16.mxu0 %vm2182_vm5, %v2148_v10 }
 0x103   : > { %4268 = vmatprep.mubr.msk.f32.mxu0 %vm1319_vm2, %v3934_v56 }
 0x104   : > { %v1134_v57 = vpop.permute.xlu1 %1133  ;;  %v1131_v58 = vpop.permute.xlu0 %1130  ;;  %4269 = vmatmul.mubr.msk.f32.gmra.mxu0 %vm1319_vm2, %v3935_v55  ;;  %v2135_v55 = vld [vmem:[%s5996_s7 + $0x18] sm:$0xff] }
 0x105   : > { %vm1166_vm14 = vcmp.eq.s32.totalorder %v5209_v62, %v1134_v57  ;;  %vm1165_vm15 = vcmp.eq.s32.totalorder %v5209_v62, %v1131_v58  ;;  %v2136_v57 = vld [vmem:[%s5996_s7 + $0x20] sm:$0xff]  ;;  %v2137_v58 = vld [vmem:[%s5996_s7 + $0x28] sm:$0xff] }
 0x106   : > { %v3937_v59 = vsel %vm1166_vm14, 1.0, %v4833_v1  ;;  %v3936_v60 = vsel %vm1165_vm15, 1.0, %v4833_v1 }
 0x107   : > { %4271 = vmatprep.mubr.msk.f32.mxu0 %vm1319_vm2, %v3936_v60  ;;  %v2150_v60 = vpack.c.bf16 %v2135_v55, %v2134_v54  ;;  %v5399_v55 = vld [vmem:[%s5998_s30] ss:$0 sm:$0xff] }
 0x108   : > { %v1140_v63 = vpop.permute.xlu1 %1139  ;;  %v1137_v0 = vpop.permute.xlu0 %1136  ;;  %4272 = vmatmul.mubr.msk.f32.gmra.mxu0 %vm1319_vm2, %v3937_v59 }
 0x109   : > { %vm1168_vm0 = vcmp.eq.s32.totalorder %v5209_v62, %v1140_v63  ;;  %vm1167_vm1 = vcmp.eq.s32.totalorder %v5209_v62, %v1137_v0  ;;  %v2151_v0 = vpack.c.bf16 %v2137_v58, %v2136_v57 }
 0x10a   : > { %v3939_v2 = vsel %vm1168_vm0, 1.0, %v4833_v1  ;;  %v3938_v3 = vsel %vm1167_vm1, 1.0, %v4833_v1 }
 0x10b   : > { %4274 = vmatprep.mubr.msk.f32.mxu0 %vm1319_vm2, %v3938_v3 }
 0x10c   : > { %v1146_v4 = vpop.permute.xlu1 %1145  ;;  %v1143_v5 = vpop.permute.xlu0 %1142  ;;  %4275 = vmatmul.mubr.msk.f32.gmra.mxu0 %vm1319_vm2, %v3939_v2 }
 0x10d   : > { %vm1170_vm3 = vcmp.eq.s32.totalorder %v5209_v62, %v1146_v4  ;;  %vm1169_vm4 = vcmp.eq.s32.totalorder %v5209_v62, %v1143_v5  ;;  %v2184_v62 = vsel %vm2182_vm5, %v2148_v10, 0  ;;  %v2138_v5 = vld [vmem:[%s5996_s7 + $0x30] sm:$0xff] }
 0x10e   : > { %v3941_v6 = vsel %vm1170_vm3, 1.0, %v4833_v1  ;;  %v3940_v7 = vsel %vm1169_vm4, 1.0, %v4833_v1 }
 0x10f   : > { %4277 = vmatprep.mubr.msk.f32.mxu0 %vm1319_vm2, %v3940_v7 }
 0x110   : > { %4278 = vmatmul.mubr.msk.f32.gmra.mxu0 %vm1319_vm2, %v3941_v6  ;;  %vm1742_vm2 = vcmask 261120   ;;  %v2139_v6 = vld [vmem:[%s5996_s7 + $0x38] sm:$0xff] }
 0x197   : > { %v5325_v12 = vpop.f32.mrf.mxu1 }
 0x199   : > { %v5327_v13 = vpop.f32.mrf.mxu1 }
 0x19b   : > { %v5329_v14 = vpop.f32.mrf.mxu1 }
 0x19d   : > { %v5331_v15 = vpop.f32.mrf.mxu1 }
 0x1a1   : > { %v4298_v16 = vpop.f32.mrf.mxu1 }
 0x1a3   : > { %v1627_v18 = vpop.f32.mrf.mxu1 }
 0x1a4   : > { %v1722_v19 = vpack.c.bf16 %v4298_v16, %v1627_v18  ;;  %v2153_v16 = vpack.c.bf16 %v2141_v9, %v2140_v8 }
 0x1a5   : > { %v4301_v23 = vpop.f32.mrf.mxu1 }
 0x1a6   : > { %4324 = vmatprep.mubr.msk.bf16.mxu0 %vm1742_vm2, %v1722_v19 }
 0x1a7   : > { %v1637_v24 = vpop.f32.mrf.mxu1 }
 0x1a8   : > { %v1723_v26 = vpack.c.bf16 %v4301_v23, %v1637_v24  ;;  %v2142_v24 = vld [vmem:[%s5996_s7 + $0x50] sm:$0xff] }
 0x1a9   : > { %v4304_v27 = vpop.f32.mrf.mxu1 }
 0x1aa   : > { %4325 = vmatmul.mubr.msk.bf16.vlgmr.msra.gmra.mxu0 %vm1742_vm2, %v1723_v26  ;;  %v2143_v26 = vld [vmem:[%s5996_s7 + $0x58] sm:$0xff] }
 0x1ab   : > { %v1647_v28 = vpop.f32.mrf.mxu1  ;;  %4361 = vmatpush3.bf16.msra.mxu0 %v2184_v62  ;;  %v2152_v62 = vpack.c.bf16 %v2139_v6, %v2138_v5 }
 0x1ac   : > { %v1724_v29 = vpack.c.bf16 %v4304_v27, %v1647_v28  ;;  %4398 = vmatprep.subr.mxu0 %v4833_v1  ;;  %v1716_v27 = vpack.c.bf16 %v5325_v12, %v5327_v13  ;;  %v2144_v28 = vld [vmem:[%s5996_s7 + $0x60] sm:$0xff]  ;;  %v4571_v13 = vld [vmem:[%s5064_s10 + $0x8] sm:$0xff]  }
 0x1ad   : > { %v4307_v30 = vpop.f32.mrf.mxu1  ;;  %4378 = vmatprep.subr.bf16.mxu1 %v4571_v13 }
 0x1ae   : > { %4328 = vmatprep.mubr.msk.bf16.mxu0 %vm1742_vm2, %v1724_v29  ;;  %v2145_v29 = vld [vmem:[%s5996_s7 + $0x68] sm:$0xff] }
 0x1af   : > { %v1657_v31 = vpop.f32.mrf.mxu1 }
 0x1b0   : > { %v1725_v32 = vpack.c.bf16 %v4307_v30, %v1657_v31  ;;  %v2154_v30 = vpack.c.bf16 %v2143_v26, %v2142_v24  ;;  %v2155_v31 = vpack.c.bf16 %v2145_v29, %v2144_v28 }
 0x1b1   : > { %v4310_v33 = vpop.f32.mrf.mxu1 }
 0x1b2   : > { %4329 = vmatmul.mubr.msk.bf16.gmra.mxu0 %vm1742_vm2, %v1725_v32  ;;  %v1717_v32 = vpack.c.bf16 %v5329_v14, %v5331_v15  ;;  %v2017_v14 = vpop.permute.xlu0 %2016 }
 0x1b3   : > { %v1667_v34 = vpop.f32.mrf.mxu1 }
 0x1b4   : > { %v1726_v35 = vpack.c.bf16 %v4310_v33, %v1667_v34  ;;  %v2146_v33 = vld [vmem:[%s5996_s7 + $0x70] sm:$0xff]  ;;  %v2147_v34 = vld [vmem:[%s5996_s7 + $0x78] sm:$0xff]  ;;  %s6006_s7 = sld [smem:[#allocation10_spill]] }
 0x1b5   : > { %v4313_v36 = vpop.f32.mrf.mxu1  ;;  %v2156_v12 = vpack.c.bf16 %v2147_v34, %v2146_v33 }
 0x1b6   : > { %4332 = vmatprep.mubr.msk.bf16.mxu0 %vm1742_vm2, %v1726_v35  ;;  %v4572_v35 = vld [vmem:[%s5064_s10] sm:$0xff]   ;;  %v2027_v43 = vpop.permute.xlu0 %2026 }
 0x1b7   : > { %v1677_v37 = vpop.f32.mrf.mxu1  ;;  %v2102_v58 = vmul.f32 %v5399_v55, %v2027_v43 }
 0x1b8   : > { %v1727_v38 = vpack.c.bf16 %v4313_v36, %v1677_v37 }
 0x1b9   : > { %v4316_v39 = vpop.f32.mrf.mxu1 }
 0x1ba   : > { %4333 = vmatmul.mubr.msk.bf16.gmra.mxu0 %vm1742_vm2, %v1727_v38  ;;  %s6008_s30 = scalar_lea.vmem %s6007_s28, %s6006_s7 }
 0x1bb   : > { %v1687_v40 = vpop.f32.mrf.mxu1  ;;  %v4264_v41 = vpop.f32.mrf.mxu0 }
 0x1bc   : > { %v1728_v42 = vpack.c.bf16 %v4316_v39, %v1687_v40  ;;  %v2022_v40 = vpop.permute.xlu1 %2021 }
 0x1bd   : > { %v4319_v45 = vpop.f32.mrf.mxu1  ;;  %v1434_v46 = vpop.f32.mrf.mxu0 }
 0x1be   : > { %v1710_v47 = vpack.c.bf16 %v4264_v41, %v1434_v46  ;;  %4336 = vmatprep.mubr.msk.bf16.mxu0 %vm1742_vm2, %v1728_v42 }
 0x1bf   : > { %v1697_v48 = vpop.f32.mrf.mxu1 }
 0x1c0   : > { %v1729_v50 = vpack.c.bf16 %v4319_v45, %v1697_v48  ;;  %v4267_v51 = vpop.f32.mrf.mxu0  ;;  %4344 = vmatprep.mubr.msk.bf16.mxu1 %vm1742_vm2, %v1710_v47  ;;  %v2032_v45 = vpop.permute.xlu1 %2031 }
 0x1c1   : > { %v2037_v48 = vpop.permute.xlu0 %2036 }
 0x1c2   : > { %4337 = vmatmul.mubr.msk.bf16.gmra.mxu0 %vm1742_vm2, %v1729_v50  ;;  %v1444_v52 = vpop.f32.mrf.mxu0 }
 0x1c3   : > { %v1711_v53 = vpack.c.bf16 %v4267_v51, %v1444_v52  ;;  %4362 = vmatprep.mubr.msk.bf16.mxu0 %vm2157_vm6, %v2149_v49 }
 0x1c4   : > { %v4270_v56 = vpop.f32.mrf.mxu0  ;;  %v2042_v50 = vpop.permute.xlu1 %2041 }
 0x1c5   : > { %4345 = vmatmul.mubr.msk.bf16.vlgmr.msra.gmra.mxu1 %vm1742_vm2, %v1711_v53  ;;  %v2047_v53 = vpop.permute.xlu0 %2046 }
 0x1c6   : > { %v1454_v59 = vpop.f32.mrf.mxu0  ;;  %4379 = vmatpush3.bf16.msra.mxu1 %v4571_v13 }
 0x1c7   : > { %v1712_v63 = vpack.c.bf16 %v4270_v56, %v1454_v59  ;;  %4380 = vmatprep.subr.bf16.mxu1 %v4572_v35 }
 0x1c8   : > { %v4273_v2 = vpop.f32.mrf.mxu0  ;;  %v2052_v56 = vpop.permute.xlu1 %2051 }
 0x1c9   : > { %4348 = vmatprep.mubr.msk.bf16.mxu1 %vm1742_vm2, %v1712_v63  ;;  %v5407_v5 = vpop.permute.xlu0 %2056 }
 0x1ca   : > { %4363 = vmatmul.mubr.msk.bf16.vlgmr.msra.gmra.mxu0 %vm2157_vm6, %v2150_v60  ;;  %v1464_v3 = vpop.f32.mrf.mxu0  ;;  %4381 = vmatpush3.bf16.msra.mxu1 %v4572_v35 }
 0x1cb   : > { %v1713_v4 = vpack.c.bf16 %v4273_v2, %v1464_v3  ;;  %4366 = vmatprep.mubr.msk.bf16.mxu0 %vm2157_vm6, %v2151_v0  ;;  %v2100_v0 = vmul.f32 %v5399_v55, %v2017_v14 }
 0x1cc   : > { %v4276_v7 = vpop.f32.mrf.mxu0 }
 0x1cd   : > { %4349 = vmatmul.mubr.msk.bf16.gmra.mxu1 %vm1742_vm2, %v1713_v4  ;;  %v2067_v34 = vpop.permute.xlu0 %2066 }
 0x1ce   : > { %v1474_v10 = vpop.f32.mrf.mxu0 }
 0x1cf   : > { %v1714_v11 = vpack.c.bf16 %v4276_v7, %v1474_v10  ;;  %v2103_v7 = vmul.f32 %v5399_v55, %v2032_v45  ;;  %v5415_v10 = vld [vmem:[%s5999_s8] ss:$0 sm:$0xff] }
 0x1d0   : > { %v4279_v18 = vpop.f32.mrf.mxu0 }
 0x1d1   : > { %4352 = vmatprep.mubr.msk.bf16.mxu1 %vm1742_vm2, %v1714_v11  ;;  %v5417_v11 = vpop.permute.xlu1 %2061 }
 0x1d2   : > { %4367 = vmatmul.mubr.msk.bf16.gmra.mxu0 %vm2157_vm6, %v2152_v62  ;;  %v1484_v19 = vpop.f32.mrf.mxu0 }
 0x1d3   : > { %v1715_v23 = vpack.c.bf16 %v4279_v18, %v1484_v19  ;;  %4370 = vmatprep.mubr.msk.bf16.mxu0 %vm2157_vm6, %v2153_v16  ;;  %v2101_v19 = vmul.f32 %v5399_v55, %v2022_v40 }
 0x1d5   : > { %4353 = vmatmul.mubr.msk.bf16.gmra.mxu1 %vm1742_vm2, %v1715_v23  ;;  %v2072_v40 = vpop.permute.xlu1 %2071 }
 0x1d6   : > { %4356 = vmatprep.mubr.msk.bf16.mxu1 %vm1742_vm2, %v1716_v27 }
 0x1da   : > { %4371 = vmatmul.mubr.msk.bf16.gmra.mxu0 %vm2157_vm6, %v2154_v30  ;;  %v2106_v30 = vmul.f32 %v5399_v55, %v2047_v53 }
 0x1db   : > { %4374 = vmatprep.mubr.msk.bf16.mxu0 %vm2157_vm6, %v2155_v31 }
 0x1dd   : > { %4357 = vmatmul.mubr.msk.bf16.gmra.mxu1 %vm1742_vm2, %v1717_v32 }
 0x1e2   : > { %4375 = vmatmul.mubr.msk.bf16.gmra.mxu0 %vm2157_vm6, %v2156_v12 }
 0x1e3   : > { %4430 = vmatprep.mubr.msk.f32.mxu0 %vm4834_vm7, %v4833_v1 }
 0x26a   : > { %v4326_v36 = vpop.f32.mrf.mxu0 }
 0x26c   : > { %v1801_v37 = vpop.f32.mrf.mxu0 }
 0x26e   : > { %v4327_v38 = vpop.f32.mrf.mxu0 }
 0x270   : > { %v1804_v39 = vpop.f32.mrf.mxu0 }
 0x272   : > { %v4330_v15 = vpop.f32.mrf.mxu0 }
 0x274   : > { %v1817_v41 = vpop.f32.mrf.mxu0 }
 0x276   : > { %v4331_v42 = vpop.f32.mrf.mxu0 }
 0x278   : > { %v5380_v44 = vpop.f32.mrf.mxu0 }
 0x27a   : > { %v5382_v46 = vpop.f32.mrf.mxu0 }
 0x27c   : > { %v5384_v47 = vpop.f32.mrf.mxu0 }
 0x27e   : > { %v5386_v49 = vpop.f32.mrf.mxu0 }
 0x280   : > { %v5388_v51 = vpop.f32.mrf.mxu0 }
 0x282   : > { %v5390_v52 = vpop.f32.mrf.mxu0 }
 0x284   : > { %v5392_v54 = vpop.f32.mrf.mxu0 }
 0x285   : > { %v4346_v57 = vpop.f32.mrf.mxu1 }
 0x286   : > { %v5402_v59 = vpop.f32.mrf.mxu0  ;;  %v1943_v60 = vadd.f32 %v4346_v57, %v4326_v36  ;;  %v2107_v57 = vmul.f32 %v5399_v55, %v2052_v56 }
 0x287   : > { %v1934_v63 = vpop.f32.mrf.mxu1 }
 0x288   : > { %v5405_v2 = vpop.f32.mrf.mxu0  ;;  %v1935_v3 = vadd.f32 %v1934_v63, %v1801_v37  ;;  %v2118_v4 = vadd.f32 %v2102_v58, %v1943_v60  ;;  %v2104_v37 = vmul.f32 %v5399_v55, %v2037_v48 }
 0x289   : > { %v4347_v6 = vpop.f32.mrf.mxu1 }
 0x28a   : > { %v1946_v8 = vadd.f32 %v4347_v6, %v4327_v38  ;;  %v4364_v9 = vpop.f32.mrf.mxu0  ;;  %v2116_v62 = vadd.f32 %v2100_v0, %v1935_v3 }
 0x28b   : > { %v2285_v16 = vadd.f32 %v4364_v9, %v2118_v4  ;;  %v1937_v18 = vpop.f32.mrf.mxu1  ;;  %v2105_v4 = vmul.f32 %v5399_v55, %v2042_v50  ;;  %v2077_v9 = vpop.permute.xlu0 %2076 }
 0x28c   : > { %v1938_v23 = vadd.f32 %v1937_v18, %v1804_v39  ;;  %v2220_v24 = vpop.f32.mrf.mxu0  ;;  %v2119_v26 = vadd.f32 %v2103_v7, %v1946_v8  ;;  %v2110_v18 = vmul.f32 %v5399_v55, %v2067_v34  ;;  %v2082_v50 = vpop.permute.xlu1 %2081 }
 0x28d   : > { %v5421_v27 = vadd.f32 %v5415_v10, %v2285_v16  ;;  %v2283_v28 = vadd.f32 %v2220_v24, %v2116_v62  ;;  %v4350_v29 = vpop.f32.mrf.mxu1 }
 0x28e   : > { %v1959_v31 = vadd.f32 %v4350_v29, %v4330_v15  ;;  %v4365_v32 = vpop.f32.mrf.mxu0  ;;  %v2117_v33 = vadd.f32 %v2101_v19, %v1938_v23 }
 0x28f   : > { %v4026_v12 = vmul.f32 -1.442695, %v5421_v27  ;;  %v5426_v13 = vadd.f32 %v5415_v10, %v2283_v28  ;;  %v2286_v35 = vadd.f32 %v4365_v32, %v2119_v26  ;;  %v1950_v36 = vpop.f32.mrf.mxu1 }
 0x290   : > { %v1951_v38 = vadd.f32 %v1950_v36, %v1817_v41  ;;  %v2223_v39 = vpop.f32.mrf.mxu0  ;;  %v2122_v14 = vadd.f32 %v2106_v30, %v1959_v31  ;;  %v2108_v30 = vmul.f32 %v5399_v55, %v5407_v5  ;;  %v2111_v36 = vmul.f32 %v5399_v55, %v2072_v40 }
 0x291   : > { %4573 = vpow2.f32 %v4026_v12  ;;  %v4024_v43 = vmul.f32 -1.442695, %v5426_v13  ;;  %v5431_v15 = vadd.f32 %v5415_v10, %v2286_v35  ;;  %v2284_v45 = vadd.f32 %v2223_v39, %v2117_v33  ;;  %v4351_v53 = vpop.f32.mrf.mxu1 }
 0x292   : > { %v1962_v58 = vadd.f32 %v4351_v53, %v4331_v42  ;;  %v4368_v60 = vpop.f32.mrf.mxu0  ;;  %v2120_v63 = vadd.f32 %v2104_v37, %v1951_v38  ;;  %v2109_v53 = vmul.f32 %v5399_v55, %v5417_v11 }
 0x293   : > { %4575 = vpow2.f32 %v4024_v43  ;;  %v4027_v48 = vmul.f32 -1.442695, %v5431_v15  ;;  %v5436_v41 = vadd.f32 %v5415_v10, %v2284_v45  ;;  %v2289_v0 = vadd.f32 %v4368_v60, %v2122_v14  ;;  %v1953_v3 = vpop.f32.mrf.mxu1  ;;  %v2087_v14 = vpop.permute.xlu0 %2086 }
 0x294   : > { %v1954_v6 = vadd.f32 %v1953_v3, %v5380_v44  ;;  %v2236_v7 = vpop.f32.mrf.mxu0  ;;  %v2123_v8 = vadd.f32 %v2107_v57, %v1962_v58  ;;  %v2113_v57 = vmul.f32 %v5399_v55, %v2082_v50  ;;  %v2092_v60 = vpop.permute.xlu1 %2091  ;;  %v2114_v11 = vmul.f32 %v5399_v55, %v2087_v14 }
 0x295   : > { %4577 = vpow2.f32 %v4027_v48  ;;  %v4025_v42 = vmul.f32 -1.442695, %v5436_v41  ;;  %v5442_v56 = vadd.f32 %v5415_v10, %v2289_v0  ;;  %v2287_v62 = vadd.f32 %v2236_v7, %v2120_v63  ;;  %v4354_v16 = vpop.f32.mrf.mxu1 }
 0x296   : > { %v1975_v19 = vadd.f32 %v4354_v16, %v5382_v46  ;;  %v4369_v23 = vpop.f32.mrf.mxu0  ;;  %v2121_v24 = vadd.f32 %v2105_v4, %v1954_v6  ;;  %v2112_v6 = vmul.f32 %v5399_v55, %v2077_v9 }
 0x297   : > { %4579 = vpow2.f32 %v4025_v42  ;;  %v4030_v44 = vmul.f32 -1.442695, %v5442_v56  ;;  %v5448_v26 = vadd.f32 %v5415_v10, %v2287_v62  ;;  %v2290_v28 = vadd.f32 %v4369_v23, %v2123_v8  ;;  %v1966_v29 = vpop.f32.mrf.mxu1 }
 0x298   : > { %v1967_v31 = vadd.f32 %v1966_v29, %v5384_v47  ;;  %v2239_v32 = vpop.f32.mrf.mxu0  ;;  %v2126_v33 = vadd.f32 %v2110_v18, %v1975_v19  ;;  %v2115_v23 = vmul.f32 %v5399_v55, %v2092_v60 }
 0x299   : > { %4581 = vpow2.f32 %v4030_v44  ;;  %v4028_v46 = vmul.f32 -1.442695, %v5448_v26  ;;  %v5455_v34 = vadd.f32 %v5415_v10, %v2290_v28  ;;  %v2288_v12 = vadd.f32 %v2239_v32, %v2121_v24  ;;  %v4355_v35 = vpop.f32.mrf.mxu1 }
 0x29a   : > { %v1978_v37 = vadd.f32 %v4355_v35, %v5386_v49  ;;  %v4372_v38 = vpop.f32.mrf.mxu0  ;;  %v2124_v39 = vadd.f32 %v2108_v30, %v1967_v31 }
 0x29b   : > { %4583 = vpow2.f32 %v4028_v46  ;;  %v4031_v47 = vmul.f32 -1.442695, %v5455_v34  ;;  %v5461_v5 = vadd.f32 %v5415_v10, %v2288_v12  ;;  %v2293_v43 = vadd.f32 %v4372_v38, %v2126_v33  ;;  %v1969_v45 = vpop.f32.mrf.mxu1 }
 0x29c   : > { %v1970_v40 = vadd.f32 %v1969_v45, %v5388_v51  ;;  %v2252_v58 = vpop.f32.mrf.mxu0  ;;  %v2127_v49 = vadd.f32 %v2111_v36, %v1978_v37 }
 0x29d   : > { %4585 = vpow2.f32 %v4031_v47  ;;  %v4029_v63 = vmul.f32 -1.442695, %v5461_v5  ;;  %v5469_v48 = vadd.f32 %v5415_v10, %v2293_v43  ;;  %v2291_v0 = vadd.f32 %v2252_v58, %v2124_v39  ;;  %v4358_v3 = vpop.f32.mrf.mxu1 }
 0x29e   : > { %v4574_v4 = vpop.eup %4573  ;;  %v1991_v7 = vadd.f32 %v4358_v3, %v5390_v52  ;;  %v4373_v8 = vpop.f32.mrf.mxu0  ;;  %v2125_v51 = vadd.f32 %v2109_v53, %v1970_v40 }
 0x29f   : > { %v2372_v42 = vadd.f32 1.0, %v4574_v4  ;;  %4587 = vpow2.f32 %v4029_v63  ;;  %v4034_v62 = vmul.f32 -1.442695, %v5469_v48  ;;  %v5476_v16 = vadd.f32 %v5415_v10, %v2291_v0  ;;  %v1982_v18 = vpop.f32.mrf.mxu1 }
 0x2a0   : > { %v4576_v19 = vpop.eup %4575  ;;  %v2294_v24 = vadd.f32 %v4373_v8, %v2127_v49  ;;  %v1983_v9 = vadd.f32 %v1982_v18, %v5392_v54  ;;  %v2255_v50 = vpop.f32.mrf.mxu0  ;;  %v2130_v44 = vadd.f32 %v2114_v11, %v1991_v7 }
 0x2a1   : > { %4589 = vrcp.f32 %v2372_v42  ;;  %v2370_v52 = vadd.f32 1.0, %v4576_v19  ;;  %v4032_v28 = vmul.f32 -1.442695, %v5476_v16  ;;  %v2292_v29 = vadd.f32 %v2255_v50, %v2125_v51  ;;  %v4359_v30 = vpop.f32.mrf.mxu1 }
 0x2a2   : > { %v4578_v31 = vpop.eup %4577  ;;  %4591 = vpow2.f32 %v4034_v62  ;;  %v5482_v32 = vadd.f32 %v5415_v10, %v2294_v24  ;;  %v1994_v33 = vadd.f32 %v4359_v30, %v5402_v59  ;;  %v4376_v46 = vpop.f32.mrf.mxu0  ;;  %v2128_v55 = vadd.f32 %v2112_v6, %v1983_v9 }
 0x2a3   : > { %4593 = vrcp.f32 %v2370_v52  ;;  %v2373_v12 = vadd.f32 1.0, %v4578_v31  ;;  %v5486_v54 = vadd.f32 %v5415_v10, %v2292_v29  ;;  %v2297_v35 = vadd.f32 %v4376_v46, %v2130_v44  ;;  %v1985_v36 = vpop.f32.mrf.mxu1 }
 0x2a4   : > { %v4580_v37 = vpop.eup %4579  ;;  %4595 = vpow2.f32 %v4032_v28  ;;  %v4035_v38 = vmul.f32 -1.442695, %v5482_v32  ;;  %v1986_v39 = vadd.f32 %v1985_v36, %v5405_v2  ;;  %v2268_v14 = vpop.f32.mrf.mxu0  ;;  %v2131_v47 = vadd.f32 %v2115_v23, %v1994_v33 }
 0x2a5   : > { %4597 = vrcp.f32 %v2373_v12  ;;  %v2371_v43 = vadd.f32 1.0, %v4580_v37  ;;  %v4033_v59 = vmul.f32 -1.442695, %v5486_v54  ;;  %v5492_v45 = vadd.f32 %v5415_v10, %v2297_v35 }
 0x2a6   : > { %v4582_v53 = vpop.eup %4581  ;;  %4599 = vpow2.f32 %v4035_v38  ;;  %v2295_v40 = vadd.f32 %v2268_v14, %v2128_v55  ;;  %v4377_v58 = vpop.f32.mrf.mxu0  ;;  %v2129_v49 = vadd.f32 %v2113_v57, %v1986_v39 }
 0x2a7   : > { %4601 = vrcp.f32 %v2371_v43  ;;  %v2376_v60 = vadd.f32 1.0, %v4582_v53  ;;  %v4038_v63 = vmul.f32 -1.442695, %v5492_v45  ;;  %v2298_v0 = vadd.f32 %v4377_v58, %v2131_v47 }
 0x2a8   : > { %v4584_v2 = vpop.eup %4583  ;;  %4603 = vpow2.f32 %v4033_v59  ;;  %v5496_v3 = vadd.f32 %v5415_v10, %v2295_v40  ;;  %v2271_v4 = vpop.f32.mrf.mxu0 }
 0x2a9   : > { %4605 = vrcp.f32 %v2376_v60  ;;  %v2374_v6 = vadd.f32 1.0, %v4584_v2  ;;  %v5499_v11 = vadd.f32 %v5415_v10, %v2298_v0  ;;  %v2296_v7 = vadd.f32 %v2271_v4, %v2129_v49 }
 0x2aa   : > { %v4586_v8 = vpop.eup %4585  ;;  %4607 = vpow2.f32 %v4038_v63  ;;  %v4036_v57 = vmul.f32 -1.442695, %v5496_v3 }
 0x2ab   : > { %4609 = vrcp.f32 %v2374_v6  ;;  %v2377_v51 = vadd.f32 1.0, %v4586_v8  ;;  %v4039_v42 = vmul.f32 -1.442695, %v5499_v11  ;;  %v5504_v62 = vadd.f32 %v5415_v10, %v2296_v7 }
 0x2ac   : > { %v4588_v18 = vpop.eup %4587  ;;  %4611 = vpow2.f32 %v4036_v57 }
 0x2ad   : > { %4613 = vrcp.f32 %v2377_v51  ;;  %v2375_v19 = vadd.f32 1.0, %v4588_v18  ;;  %v4037_v23 = vmul.f32 -1.442695, %v5504_v62 }
 0x2ae   : > { %v4590_v24 = vpop.eup %4589  ;;  %4615 = vpow2.f32 %v4039_v42 }
 0x2af   : > { %v4592_v9 = vpop.eup %4591  ;;  %4617 = vrcp.f32 %v2375_v19  ;;  %v2420_v36 = vmul.f32 %v4590_v24, %v5421_v27 }
 0x2b0   : > { %v4594_v50 = vpop.eup %4593  ;;  %4619 = vpow2.f32 %v4037_v23  ;;  %v2380_v30 = vadd.f32 1.0, %v4592_v9 }
 0x2b1   : > { %v4596_v44 = vpop.eup %4595  ;;  %v2418_v55 = vmul.f32 %v4594_v50, %v5426_v13 }
 0x2b2   : > { %v4598_v52 = vpop.eup %4597  ;;  %v2378_v28 = vadd.f32 1.0, %v4596_v44 }
 0x2b3   : > { %v4600_v29 = vpop.eup %4599  ;;  %v2421_v10 = vmul.f32 %v4598_v52, %v5431_v15 }
 0x2b4   : > { %v4602_v31 = vpop.eup %4601  ;;  %v2381_v33 = vadd.f32 1.0, %v4600_v29  ;;  %4621 = vrcp.f32 %v2378_v28 }
 0x2b5   : > { %v4604_v46 = vpop.eup %4603  ;;  %v2419_v12 = vmul.f32 %v4602_v31, %v5436_v41  ;;  %v2439_v47 = vpack.c.bf16 %v2421_v10, %v2420_v36 }
 0x2b6   : > { %v4606_v35 = vpop.eup %4605  ;;  %4623 = vrcp.f32 %v2381_v33  ;;  %v2379_v37 = vadd.f32 1.0, %v4604_v46 }
 0x2b7   : > { %v4608_v38 = vpop.eup %4607  ;;  %v2438_v39 = vpack.c.bf16 %v2419_v12, %v2418_v55  ;;  %4625 = vrcp.f32 %v2380_v30  ;;  %v2424_v63 = vmul.f32 %v4606_v35, %v5442_v56 }
 0x2b8   : > { %v4610_v14 = vpop.eup %4609  ;;  %4627 = vrcp.f32 %v2379_v37  ;;  %v2384_v41 = vadd.f32 1.0, %v4608_v38 }
 0x2b9   : > { %v4612_v43 = vpop.eup %4611  ;;  %4382 = vmatprep.mubr.msk.bf16.mxu1 %vm1742_vm2, %v2438_v39  ;;  %v2422_v49 = vmul.f32 %v4610_v14, %v5448_v26 }
 0x2ba   : > { %v4614_v15 = vpop.eup %4613  ;;  %v2382_v59 = vadd.f32 1.0, %v4612_v43  ;;  %4383 = vmatmul.mubr.msk.bf16.vlgmr.msra.gmra.mxu1 %vm1742_vm2, %v2439_v47 }
 0x2bb   : > { %v4616_v13 = vpop.eup %4615  ;;  %v2425_v27 = vmul.f32 %v4614_v15, %v5455_v34 }
 0x2bc   : > { %v4618_v53 = vpop.eup %4617  ;;  %v2385_v40 = vadd.f32 1.0, %v4616_v13  ;;  %4629 = vrcp.f32 %v2382_v59 }
 0x2bd   : > { %v4620_v58 = vpop.eup %4619  ;;  %v2423_v60 = vmul.f32 %v4618_v53, %v5461_v5  ;;  %v2441_v4 = vpack.c.bf16 %v2425_v27, %v2424_v63 }
 0x2be   : > { %4631 = vrcp.f32 %v2385_v40  ;;  %v2383_v0 = vadd.f32 1.0, %v4620_v58 }
 0x2bf   : > { %v2440_v2 = vpack.c.bf16 %v2423_v60, %v2422_v49  ;;  %4633 = vrcp.f32 %v2384_v41 }
 0x2c0   : > { %4635 = vrcp.f32 %v2383_v0 }
 0x2c1   : > { %4386 = vmatprep.mubr.msk.bf16.mxu1 %vm1742_vm2, %v2440_v2  ;;  %v4622_v6 = vpop.eup %4621 }
 0x2c2   : > { %4387 = vmatmul.mubr.msk.bf16.gmra.mxu1 %vm1742_vm2, %v2441_v4  ;;  %v2426_v5 = vmul.f32 %v4622_v6, %v5476_v16 }
 0x2c3   : > { %v4624_v34 = vpop.eup %4623 }
 0x2c4   : > { %v4626_v7 = vpop.eup %4625  ;;  %v2429_v26 = vmul.f32 %v4624_v34, %v5482_v32 }
 0x2c5   : > { %v4628_v8 = vpop.eup %4627  ;;  %v2428_v57 = vmul.f32 %v4626_v7, %v5469_v48 }
 0x2c6   : > { %v2427_v56 = vmul.f32 %v4628_v8, %v5486_v54 }
 0x2c7   : > { %v2443_v42 = vpack.c.bf16 %v2429_v26, %v2428_v57 }
 0x2c8   : > { %v2442_v51 = vpack.c.bf16 %v2427_v56, %v2426_v5 }
 0x2c9   : > { %v4630_v18 = vpop.eup %4629 }
 0x2ca   : > { %4390 = vmatprep.mubr.msk.bf16.mxu1 %vm1742_vm2, %v2442_v51  ;;  %v2430_v32 = vmul.f32 %v4630_v18, %v5496_v3 }
 0x2cb   : > { %v4632_v19 = vpop.eup %4631  ;;  %4391 = vmatmul.mubr.msk.bf16.gmra.mxu1 %vm1742_vm2, %v2443_v42 }
 0x2cc   : > { %v4634_v23 = vpop.eup %4633  ;;  %v2433_v9 = vmul.f32 %v4632_v19, %v5499_v11 }
 0x2cd   : > { %v4636_v24 = vpop.eup %4635  ;;  %v2432_v54 = vmul.f32 %v4634_v23, %v5492_v45  ;;  %v4040_v45 = vld [vmem:[%s6001_s26] ss:$0 sm:$0xff] }
 0x2ce   : > { %v2431_v16 = vmul.f32 %v4636_v24, %v5504_v62 }
 0x2cf   : > { %v2445_v50 = vpack.c.bf16 %v2433_v9, %v2432_v54 }
 0x2d0   : > { %v2444_v48 = vpack.c.bf16 %v2431_v16, %v2430_v32 }
 0x2d2   : > { %4394 = vmatprep.mubr.msk.bf16.mxu1 %vm1742_vm2, %v2444_v48 }
 0x2d3   : > { %4395 = vmatmul.mubr.msk.bf16.gmra.mxu1 %vm1742_vm2, %v2445_v50 }
 0x37a   : > { %v4384_v44 = vpop.f32.mrf.mxu1 }
 0x37b   : > { %v5575_v26 = vadd.f32 %v4384_v44, %v4040_v45 }
 0x37c   : > { %v5531_v52 = vpop.f32.mrf.mxu1 }
 0x37d   : > { %v4053_v19 = vmul.f32 -1.442695, %v5575_v26  ;;  %v5584_v44 = vadd.f32 %v4040_v45, %v5531_v52 }
 0x37e   : > { %v4385_v28 = vpop.f32.mrf.mxu1 }
 0x37f   : > { %v5560_v58 = vadd.f32 %v4385_v28, %v4040_v45 }
 0x380   : > { %v2526_v29 = vpop.f32.mrf.mxu1 }
 0x381   : > { %v5568_v4 = vadd.f32 %v4040_v45, %v2526_v29  ;;  %v4054_v34 = vmul.f32 -1.442695, %v5560_v58 }
 0x382   : > { %v4388_v30 = vpop.f32.mrf.mxu1 }
 0x383   : > { %v5572_v7 = vadd.f32 %v4388_v30, %v4040_v45  ;;  %v4052_v5 = vmul.f32 -1.442695, %v5568_v4 }
 0x384   : > { %v2539_v11 = vpop.f32.mrf.mxu1 }
 0x385   : > { %v5578_v57 = vadd.f32 %v4040_v45, %v2539_v11  ;;  %v4057_v51 = vmul.f32 -1.442695, %v5572_v7 }
 0x386   : > { %v4389_v31 = vpop.f32.mrf.mxu1 }
 0x387   : > { %v5538_v33 = vadd.f32 %v4389_v31, %v4040_v45  ;;  %v4055_v9 = vmul.f32 -1.442695, %v5578_v57 }
 0x388   : > { %v2542_v3 = vpop.f32.mrf.mxu1 }
 0x389   : > { %v4058_v37 = vmul.f32 -1.442695, %v5538_v33  ;;  %v5546_v38 = vadd.f32 %v4040_v45, %v2542_v3  ;;  %v4051_v3 = vmul.f32 -1.442695, %v5584_v44 }
 0x38b   : > { %v4392_v10 = vpop.f32.mrf.mxu1  ;;  %v4056_v41 = vmul.f32 -1.442695, %v5546_v38 }
 0x38c   : > { %v5551_v43 = vadd.f32 %v4392_v10, %v4040_v45 }
 0x38d   : > { %v2555_v62 = vpop.f32.mrf.mxu1 }
 0x38e   : > { %v4061_v49 = vmul.f32 -1.442695, %v5551_v43  ;;  %v5563_v63 = vadd.f32 %v4040_v45, %v2555_v62 }
 0x38f   : > { %v4393_v46 = vpop.f32.mrf.mxu1 }
 0x390   : > { %v5540_v55 = vadd.f32 %v4393_v46, %v4040_v45  ;;  %v4059_v8 = vmul.f32 -1.442695, %v5563_v63 }
 0x391   : > { %v2558_v12 = vpop.f32.mrf.mxu1 }
 0x392   : > { %v4062_v35 = vmul.f32 -1.442695, %v5540_v55  ;;  %v5543_v36 = vadd.f32 %v4040_v45, %v2558_v12 }
 0x393   : > { %v4396_v39 = vpop.f32.mrf.mxu1 }
 0x394   : > { %4637 = vpow2.f32 %v4062_v35  ;;  %v4060_v14 = vmul.f32 -1.442695, %v5543_v36  ;;  %v5549_v47 = vadd.f32 %v4396_v39, %v4040_v45 }
 0x395   : > { %v2571_v15 = vpop.f32.mrf.mxu1 }
 0x396   : > { %4639 = vpow2.f32 %v4060_v14  ;;  %v4065_v59 = vmul.f32 -1.442695, %v5549_v47  ;;  %v5554_v13 = vadd.f32 %v4040_v45, %v2571_v15 }
 0x397   : > { %4641 = vpow2.f32 %v4058_v37  ;;  %v4397_v53 = vpop.f32.mrf.mxu1 }
 0x398   : > { %4643 = vpow2.f32 %v4065_v59  ;;  %v4063_v27 = vmul.f32 -1.442695, %v5554_v13  ;;  %v5558_v40 = vadd.f32 %v4397_v53, %v4040_v45 }
 0x399   : > { %v2574_v60 = vpop.f32.mrf.mxu1 }
 0x39a   : > { %4645 = vpow2.f32 %v4063_v27  ;;  %v4066_v0 = vmul.f32 -1.442695, %v5558_v40  ;;  %v5566_v2 = vadd.f32 %v4040_v45, %v2574_v60 }
 0x39b   : > { %4647 = vpow2.f32 %v4056_v41 }
 0x39c   : > { %4649 = vpow2.f32 %v4066_v0  ;;  %v4064_v6 = vmul.f32 -1.442695, %v5566_v2 }
 0x39d   : > { %4651 = vpow2.f32 %v4061_v49 }
 0x39e   : > { %4653 = vpow2.f32 %v4064_v6  ;;  %v5598_v6 = vld [vmem:[%s6003_s1] ss:$0 sm:$0xff] }
 0x39f   : > { %4655 = vpow2.f32 %v4054_v34 }
 0x3a0   : > { %4657 = vpow2.f32 %v4059_v8 }
 0x3a1   : > { %v4638_v56 = vpop.eup %4637  ;;  %4659 = vpow2.f32 %v4052_v5 }
 0x3a2   : > { %v2645_v42 = vadd.f32 1.0, %v4638_v56 }
 0x3a3   : > { %v4640_v18 = vpop.eup %4639 }
 0x3a4   : > { %v4642_v23 = vpop.eup %4641  ;;  %4661 = vrcp.f32 %v2645_v42  ;;  %v2643_v32 = vadd.f32 1.0, %v4640_v18 }
 0x3a5   : > { %v4644_v24 = vpop.eup %4643  ;;  %4663 = vpow2.f32 %v4057_v51  ;;  %v2641_v48 = vadd.f32 1.0, %v4642_v23 }
 0x3a6   : > { %v2648_v16 = vadd.f32 1.0, %v4644_v24  ;;  %4665 = vpow2.f32 %v4053_v19 }
 0x3a7   : > { %v4646_v54 = vpop.eup %4645 }
 0x3a8   : > { %v4648_v50 = vpop.eup %4647  ;;  %4667 = vrcp.f32 %v2648_v16  ;;  %v2646_v29 = vadd.f32 1.0, %v4646_v54 }
 0x3a9   : > { %v4650_v28 = vpop.eup %4649  ;;  %4669 = vpow2.f32 %v4055_v9  ;;  %v2639_v62 = vadd.f32 1.0, %v4648_v50 }
 0x3aa   : > { %v4652_v30 = vpop.eup %4651  ;;  %4671 = vrcp.f32 %v2643_v32  ;;  %v2649_v11 = vadd.f32 1.0, %v4650_v28 }
 0x3ab   : > { %v4654_v31 = vpop.eup %4653  ;;  %4673 = vrcp.f32 %v2641_v48  ;;  %v2644_v12 = vadd.f32 1.0, %v4652_v30 }
 0x3ac   : > { %4675 = vrcp.f32 %v2649_v11  ;;  %v2647_v10 = vadd.f32 1.0, %v4654_v31  ;;  %v4656_v46 = vpop.eup %4655 }
 0x3ad   : > { %4677 = vrcp.f32 %v2646_v29  ;;  %v4658_v52 = vpop.eup %4657  ;;  %v2637_v35 = vadd.f32 1.0, %v4656_v46 }
 0x3ae   : > { %4679 = vrcp.f32 %v2647_v10  ;;  %v4660_v45 = vpop.eup %4659  ;;  %v2642_v39 = vadd.f32 1.0, %v4658_v52 }
 0x3af   : > { %4681 = vpow2.f32 %v4051_v3  ;;  %v2635_v41 = vadd.f32 1.0, %v4660_v45 }
 0x3b0   : > { %4683 = vrcp.f32 %v2639_v62 }
 0x3b1   : > { %v4662_v37 = vpop.eup %4661  ;;  %4685 = vrcp.f32 %v2644_v12 }
 0x3b2   : > { %v4664_v14 = vpop.eup %4663  ;;  %4687 = vrcp.f32 %v2637_v35  ;;  %v5588_v53 = vmul.f32 %v4662_v37, %v5540_v55 }
 0x3b3   : > { %v4666_v15 = vpop.eup %4665  ;;  %v2640_v49 = vadd.f32 1.0, %v4664_v14  ;;  %4689 = vrcp.f32 %v2642_v39 }
 0x3b4   : > { %4691 = vrcp.f32 %v2635_v41  ;;  %v2716_v56 = vmul.f32 %v5598_v6, %v5588_v53  ;;  %v2636_v32 = vadd.f32 1.0, %v4666_v15 }
 0x3b5   : > { %v4668_v59 = vpop.eup %4667  ;;  %4693 = vrcp.f32 %v2640_v49 }
 0x3b6   : > { %v4670_v27 = vpop.eup %4669  ;;  %v5591_v60 = vmul.f32 %v4668_v59, %v5549_v47 }
 0x3b7   : > { %v4672_v0 = vpop.eup %4671  ;;  %v2638_v55 = vadd.f32 1.0, %v4670_v27 }
 0x3b8   : > { %v4674_v34 = vpop.eup %4673  ;;  %v2719_v8 = vmul.f32 %v5598_v6, %v5591_v60  ;;  %v5605_v47 = vmul.f32 %v4672_v0, %v5543_v36  ;;  %v2754_v36 = vsel %vm1742_vm2, %v2716_v56, 0.0 }
 0x3b9   : > { %v4676_v5 = vpop.eup %4675  ;;  %4695 = vrcp.f32 %v2638_v55  ;;  %v5617_v16 = vmul.f32 %v4674_v34, %v5538_v33 }
 0x3ba   : > { %v4678_v51 = vpop.eup %4677  ;;  %v5608_v42 = vmul.f32 %v4676_v5, %v5558_v40  ;;  %v2763_v18 = vsel %vm1742_vm2, %v2719_v8, 0.0  ;;  %v2714_v50 = vmul.f32 %v5598_v6, %v5605_v47  ;;  %4697 = vrcp.f32 %v2636_v32  ;;  %v2998_v32 = vld [vmem:[%s6004_s18 + $0x70] sm:$0xff] }
 0x3bb   : > { %v4680_v19 = vpop.eup %4679  ;;  %2764 = vadd.xlane.f32.xlu1 %v2763_v18  ;;  %v5621_v54 = vmul.f32 %v4678_v51, %v5554_v13  ;;  %v2712_v13 = vmul.f32 %v5598_v6, %v5617_v16 }
 0x3bc   : > { %v5612_v23 = vmul.f32 %v4680_v19, %v5566_v2  ;;  %v2720_v24 = vmul.f32 %v5598_v6, %v5608_v42  ;;  %v4682_v9 = vpop.eup %4681  ;;  %v2748_v3 = vsel %vm1742_vm2, %v2714_v50, 0.0  ;;  %v2992_v50 = vld [vmem:[%s6004_s18 + $0x40] sm:$0xff] }
 0x3bd   : > { %v4684_v40 = vpop.eup %4683  ;;  %v2634_v33 = vadd.f32 1.0, %v4682_v9  ;;  %v2717_v10 = vmul.f32 %v5598_v6, %v5621_v54  ;;  %v2742_v46 = vsel %vm1742_vm2, %v2712_v13, 0.0 }
 0x3be   : > { %v2766_v48 = vsel %vm1742_vm2, %v2720_v24, 0.0  ;;  %v2718_v2 = vmul.f32 %v5598_v6, %v5612_v23  ;;  %v4686_v28 = vpop.eup %4685  ;;  %v5629_v29 = vmul.f32 %v4684_v40, %v5546_v38  ;;  %v2996_v40 = vld [vmem:[%s6004_s18 + $0x60] sm:$0xff] }
 0x3bf   : > { %2755 = vadd.xlane.f32.xlu1 %v2754_v36  ;;  %2767 = vadd.xlane.f32.xlu0 %v2766_v48  ;;  %v4688_v30 = vpop.eup %4687  ;;  %v5634_v11 = vmul.f32 %v4686_v28, %v5551_v43  ;;  %4699 = vrcp.f32 %v2634_v33  ;;  %v2757_v52 = vsel %vm1742_vm2, %v2717_v10, 0.0  ;;  %v2997_v36 = vld [vmem:[%s6004_s18 + $0x68] sm:$0xff]  ;;  %v2995_v48 = vld [vmem:[%s6004_s18 + $0x58] sm:$0xff]  ;;  %v5703_v28 = vld [vmem:[%s6005_s6] ss:$0 sm:$0xff] }
 0x3c0   : > { %v2760_v31 = vsel %vm1742_vm2, %v2718_v2, 0.0  ;;  %v4690_v62 = vpop.eup %4689  ;;  %v5641_v38 = vmul.f32 %v4688_v30, %v5560_v58  ;;  %v2710_v35 = vmul.f32 %v5598_v6, %v5629_v29  ;;  %v2994_v2 = vld [vmem:[%s6004_s18 + $0x50] sm:$0xff] }
 0x3c1   : > { %v4692_v12 = vpop.eup %4691  ;;  %v5645_v43 = vmul.f32 %v4690_v62, %v5563_v63  ;;  %v2715_v45 = vmul.f32 %v5598_v6, %v5634_v11 }
 0x3c2   : > { %v4694_v37 = vpop.eup %4693  ;;  %v5653_v58 = vmul.f32 %v4692_v12, %v5568_v4  ;;  %v2708_v39 = vmul.f32 %v5598_v6, %v5641_v38  ;;  %v2736_v59 = vsel %vm1742_vm2, %v2710_v35, 0.0 }
 0x3c3   : > { %2761 = vadd.xlane.f32.xlu0 %v2760_v31  ;;  %2749 = vadd.xlane.f32.xlu1 %v2748_v3  ;;  %v5658_v63 = vmul.f32 %v4694_v37, %v5572_v7  ;;  %v2751_v15 = vsel %vm1742_vm2, %v2715_v45, 0.0  ;;  %v2713_v41 = vmul.f32 %v5598_v6, %v5645_v43 }
 0x3c4   : > { %v2730_v27 = vsel %vm1742_vm2, %v2708_v39, 0.0  ;;  %v2706_v7 = vmul.f32 %v5598_v6, %v5653_v58 }
 0x3c5   : > { %v2745_v0 = vsel %vm1742_vm2, %v2713_v41, 0.0  ;;  %v2711_v34 = vmul.f32 %v5598_v6, %v5658_v63 }
 0x3c6   : > { %v4696_v14 = vpop.eup %4695  ;;  %v2724_v55 = vsel %vm1742_vm2, %v2706_v7, 0.0 }
 0x3c7   : > { %2758 = vadd.xlane.f32.xlu0 %v2757_v52  ;;  %2743 = vadd.xlane.f32.xlu1 %v2742_v46  ;;  %v4698_v4 = vpop.eup %4697  ;;  %v5666_v49 = vmul.f32 %v4696_v14, %v5578_v57  ;;  %v2739_v57 = vsel %vm1742_vm2, %v2711_v34, 0.0 }
 0x3c8   : > { %v5674_v5 = vmul.f32 %v4698_v4, %v5575_v26 }
 0x3c9   : > { %v2709_v56 = vmul.f32 %v5598_v6, %v5666_v49 }
 0x3ca   : > { %v2707_v26 = vmul.f32 %v5598_v6, %v5674_v5 }
 0x3cb   : > { %2752 = vadd.xlane.f32.xlu0 %v2751_v15  ;;  %2737 = vadd.xlane.f32.xlu1 %v2736_v59  ;;  %v2733_v18 = vsel %vm1742_vm2, %v2709_v56, 0.0 }
 0x3cc   : > { %v4700_v8 = vpop.eup %4699  ;;  %v2727_v19 = vsel %vm1742_vm2, %v2707_v26, 0.0 }
 0x3cd   : > { %v5681_v51 = vmul.f32 %v4700_v8, %v5584_v44  ;;  %v2999_v44 = vld [vmem:[%s6004_s18 + $0x78] sm:$0xff] }
 0x3cf   : > { %2731 = vadd.xlane.f32.xlu1 %v2730_v27  ;;  %2746 = vadd.xlane.f32.xlu0 %v2745_v0  ;;  %v2705_v24 = vmul.f32 %v5598_v6, %v5681_v51  ;;  %v2993_v6 = vld [vmem:[%s6004_s18 + $0x48] sm:$0xff] }
 0x3d1   : > { %v2721_v9 = vsel %vm1742_vm2, %v2705_v24, 0.0 }
 0x3d3   : > { %2725 = vadd.xlane.f32.xlu1 %v2724_v55  ;;  %2740 = vadd.xlane.f32.xlu0 %v2739_v57  ;;  %v2991_v55 = vld [vmem:[%s6004_s18 + $0x38] sm:$0xff] }
 0x3d7   : > { %2734 = vadd.xlane.f32.xlu0 %v2733_v18  ;;  %v2990_v18 = vld [vmem:[%s6004_s18 + $0x30] sm:$0xff] }
 0x3db   : > { %2728 = vadd.xlane.f32.xlu0 %v2727_v19 }
 0x3df   : > { %2722 = vadd.xlane.f32.xlu0 %v2721_v9  ;;  %v2989_v9 = vld [vmem:[%s6004_s18 + $0x28] sm:$0xff] }
 0x3e4   : > { %3077 = vperm.xlu1 %4566, %v2999_v44  }
 0x3f5   : > { %3072 = vperm.xlu0 %4565, %v2998_v32  }
 0x3f9   : > { %3067 = vperm.xlu0 %4565, %v2997_v36  }
 0x3fd   : > { %3062 = vperm.xlu0 %4565, %v2996_v40  }
 0x401   : > { %3057 = vperm.xlu0 %4565, %v2995_v48  }
 0x405   : > { %3052 = vperm.xlu0 %4565, %v2994_v2   ;;  %v2988_v2 = vld [vmem:[%s6004_s18 + $0x20] sm:$0xff] }
 0x409   : > { %3047 = vperm.xlu0 %4565, %v2993_v6  }
 0x40d   : > { %3042 = vperm.xlu0 %4565, %v2992_v50  }
 0x444   : > { %v2765_v33 = vpop.xlane.xlu1 %2764 }
 0x445   : > { %v2790_v13 = vadd.f32 %v5703_v28, %v2765_v33 }
 0x447   : > { %v4083_v30 = vmul.f32 -1.442695, %v2790_v13 }
 0x448   : > { %v2768_v31 = vpop.xlane.xlu0 %2767  ;;  %v2756_v3 = vpop.xlane.xlu1 %2755 }
 0x449   : > { %4701 = vpow2.f32 %v4083_v30  ;;  %v2787_v34 = vadd.f32 %v5703_v28, %v2756_v3  ;;  %v2791_v36 = vadd.f32 %v5703_v28, %v2768_v31  ;;  %v2987_v3 = vld [vmem:[%s6004_s18 + $0x18] sm:$0xff] }
 0x44b   : > { %v4080_v56 = vmul.f32 -1.442695, %v2787_v34  ;;  %v4084_v50 = vmul.f32 -1.442695, %v2791_v36 }
 0x44c   : > { %v2762_v10 = vpop.xlane.xlu0 %2761  ;;  %v2750_v46 = vpop.xlane.xlu1 %2749 }
 0x44d   : > { %v2785_v57 = vadd.f32 %v5703_v28, %v2750_v46  ;;  %v2789_v33 = vadd.f32 %v5703_v28, %v2762_v10 }
 0x44f   : > { %v4078_v26 = vmul.f32 -1.442695, %v2785_v57  ;;  %v4082_v31 = vmul.f32 -1.442695, %v2789_v33 }
 0x450   : > { %v2759_v62 = vpop.xlane.xlu0 %2758  ;;  %v2744_v35 = vpop.xlane.xlu1 %2743 }
 0x451   : > { %v2783_v39 = vadd.f32 %v5703_v28, %v2744_v35  ;;  %v2788_v19 = vadd.f32 %v5703_v28, %v2759_v62 }
 0x453   : > { %v4076_v59 = vmul.f32 -1.442695, %v2783_v39  ;;  %v4081_v40 = vmul.f32 -1.442695, %v2788_v19 }
 0x454   : > { %v2753_v12 = vpop.xlane.xlu0 %2752  ;;  %v2738_v30 = vpop.xlane.xlu1 %2737 }
 0x455   : > { %v2786_v41 = vadd.f32 %v5703_v28, %v2753_v12  ;;  %v2781_v46 = vadd.f32 %v5703_v28, %v2738_v30 }
 0x456   : > { %v4702_v52 = vpop.eup %4701 }
 0x457   : > { %v2854_v45 = vadd.f32 1.0, %v4702_v52  ;;  %v4079_v4 = vmul.f32 -1.442695, %v2786_v41  ;;  %v2986_v52 = vld [vmem:[%s6004_s18 + $0x10] sm:$0xff]  ;;  %v4074_v10 = vmul.f32 -1.442695, %v2781_v46 }
 0x458   : > { %v2747_v37 = vpop.xlane.xlu0 %2746 }
 0x459   : > { %4703 = vrcp.f32 %v2854_v45  ;;  %v2784_v0 = vadd.f32 %v5703_v28, %v2747_v37 }
 0x45a   : > { %4705 = vpow2.f32 %v4076_v59  ;;  %v2985_v59 = vld [vmem:[%s6004_s18 + $0x8] sm:$0xff] }
 0x45b   : > { %v4077_v8 = vmul.f32 -1.442695, %v2784_v0 }
 0x45c   : > { %v2741_v14 = vpop.xlane.xlu0 %2740 }
 0x45d   : > { %v2782_v15 = vadd.f32 %v5703_v28, %v2741_v14  ;;  %v2732_v14 = vpop.xlane.xlu1 %2731 }
 0x45f   : > { %v4075_v27 = vmul.f32 -1.442695, %v2782_v15 }
 0x460   : > { %v2735_v35 = vpop.xlane.xlu0 %2734 }
 0x461   : > { %4707 = vpow2.f32 %v4075_v27  ;;  %v2780_v15 = vadd.f32 %v5703_v28, %v2735_v35  ;;  %v2726_v19 = vpop.xlane.xlu1 %2725 }
 0x462   : > { %4709 = vpow2.f32 %v4079_v4  ;;  %v2779_v4 = vadd.f32 %v5703_v28, %v2732_v14 }
 0x463   : > { %4711 = vpow2.f32 %v4077_v8 }
 0x464   : > { %4713 = vpow2.f32 %v4080_v56  ;;  %v2729_v8 = vpop.xlane.xlu0 %2728 }
 0x465   : > { %4715 = vpow2.f32 %v4078_v26 }
 0x466   : > { %v4704_v7 = vpop.eup %4703 }
 0x467   : > { %2960 = vperm.xlu0 %4565, %v4704_v7   ;;  %v4706_v24 = vpop.eup %4705  ;;  %v4073_v7 = vmul.f32 -1.442695, %v2780_v15 }
 0x468   : > { %v2847_v48 = vadd.f32 1.0, %v4706_v24 }
 0x46b   : > { %3037 = vperm.xlu0 %4565, %v2991_v55   ;;  %v4072_v55 = vmul.f32 -1.442695, %v2779_v4 }
 0x46e   : > { %v4708_v44 = vpop.eup %4707 }
 0x46f   : > { %3032 = vperm.xlu0 %4565, %v2990_v18   ;;  %v2846_v32 = vadd.f32 1.0, %v4708_v44  ;;  %v4710_v6 = vpop.eup %4709  ;;  %v2778_v18 = vadd.f32 %v5703_v28, %v2729_v8  ;;  %v2777_v44 = vadd.f32 %v5703_v28, %v2726_v19 }
 0x470   : > { %v2850_v13 = vadd.f32 1.0, %v4710_v6  ;;  %v4712_v62 = vpop.eup %4711 }
 0x471   : > { %4717 = vrcp.f32 %v2846_v32  ;;  %v2848_v12 = vadd.f32 1.0, %v4712_v62  ;;  %v4714_v45 = vpop.eup %4713  ;;  %v4071_v32 = vmul.f32 -1.442695, %v2778_v18  ;;  %v4070_v6 = vmul.f32 -1.442695, %v2777_v44  ;;  %v3078_v18 = vpop.permute.xlu1 %3077 }
 0x472   : > { %4719 = vpow2.f32 %v4081_v40  ;;  %v4716_v37 = vpop.eup %4715  ;;  %v2851_v39 = vadd.f32 1.0, %v4714_v45  ;;  %v2723_v40 = vpop.xlane.xlu0 %2722 }
 0x473   : > { %3027 = vperm.xlu0 %4565, %v2989_v9   ;;  %4721 = vrcp.f32 %v2847_v48  ;;  %v2849_v27 = vadd.f32 1.0, %v4716_v37 }
 0x474   : > { %4723 = vpow2.f32 %v4084_v50  ;;  %v2776_v50 = vadd.f32 %v5703_v28, %v2723_v40 }
 0x475   : > { %4725 = vrcp.f32 %v2850_v13 }
 0x476   : > { %4727 = vpow2.f32 %v4082_v31  ;;  %v3073_v8 = vpop.permute.xlu0 %3072 }
 0x477   : > { %3022 = vperm.xlu0 %4565, %v2988_v2   ;;  %4729 = vrcp.f32 %v2848_v12 }
 0x478   : > { %4731 = vpow2.f32 %v4074_v10 }
 0x479   : > { %4733 = vrcp.f32 %v2851_v39 }
 0x47a   : > { %4735 = vrcp.f32 %v2849_v27 }
 0x47b   : > { %3017 = vperm.xlu0 %4565, %v2987_v3   ;;  %4737 = vpow2.f32 %v4073_v7  ;;  %v4069_v3 = vmul.f32 -1.442695, %v2776_v50 }
 0x47c   : > { %4739 = vpow2.f32 %v4072_v55  ;;  %v3068_v55 = vpop.permute.xlu0 %3067 }
 0x47e   : > { %v4718_v41 = vpop.eup %4717 }
 0x47f   : > { %3012 = vperm.xlu0 %4565, %v2986_v52   ;;  %2920 = vperm.xlu1 %4566, %v4718_v41   ;;  %v4720_v0 = vpop.eup %4719 }
 0x480   : > { %v4722_v34 = vpop.eup %4721  ;;  %v2852_v56 = vadd.f32 1.0, %v4720_v0 }
 0x481   : > { %v4724_v57 = vpop.eup %4723 }
 0x482   : > { %v4726_v26 = vpop.eup %4725  ;;  %v2855_v24 = vadd.f32 1.0, %v4724_v57  ;;  %4741 = vrcp.f32 %v2852_v56  ;;  %v3063_v57 = vpop.permute.xlu0 %3062 }
 0x483   : > { %3007 = vperm.xlu0 %4565, %v2985_v59   ;;  %2925 = vperm.xlu1 %4566, %v4722_v34   ;;  %v4728_v9 = vpop.eup %4727  ;;  %v2984_v34 = vld [vmem:[%s6004_s18] sm:$0xff] }
 0x484   : > { %v4730_v36 = vpop.eup %4729  ;;  %4743 = vrcp.f32 %v2855_v24  ;;  %v2853_v48 = vadd.f32 1.0, %v4728_v9 }
 0x485   : > { %v4732_v2 = vpop.eup %4731  ;;  %4745 = vpow2.f32 %v4071_v32 }
 0x486   : > { %v4734_v33 = vpop.eup %4733  ;;  %4747 = vrcp.f32 %v2853_v48  ;;  %v2845_v13 = vadd.f32 1.0, %v4732_v2  ;;  %v3058_v56 = vpop.permute.xlu0 %3057 }
 0x487   : > { %2940 = vperm.xlu1 %4566, %v4726_v26   ;;  %v4736_v30 = vpop.eup %4735  ;;  %4749 = vpow2.f32 %v4070_v6 }
 0x488   : > { %v4738_v62 = vpop.eup %4737  ;;  %4751 = vrcp.f32 %v2845_v13 }
 0x489   : > { %v4740_v31 = vpop.eup %4739  ;;  %v2844_v46 = vadd.f32 1.0, %v4738_v62  ;;  %4753 = vpow2.f32 %v4069_v3 }
 0x48a   : > { %v2843_v45 = vadd.f32 1.0, %v4740_v31  ;;  %v3053_v26 = vpop.permute.xlu0 %3052 }
 0x48b   : > { %2930 = vperm.xlu1 %4566, %v4730_v36   ;;  %4755 = vrcp.f32 %v2844_v46 }
 0x48c   : > { %4757 = vrcp.f32 %v2843_v45 }
 0x48e   : > { %v3048_v9 = vpop.permute.xlu0 %3047 }
 0x48f   : > { %2945 = vperm.xlu1 %4566, %v4734_v33   ;;  %v4742_v12 = vpop.eup %4741 }
 0x491   : > { %v4744_v52 = vpop.eup %4743 }
 0x492   : > { %v4746_v35 = vpop.eup %4745  ;;  %v3043_v32 = vpop.permute.xlu0 %3042 }
 0x493   : > { %2935 = vperm.xlu1 %4566, %v4736_v30   ;;  %v4748_v28 = vpop.eup %4747  ;;  %v2842_v10 = vadd.f32 1.0, %v4746_v35 }
 0x494   : > { %v4750_v37 = vpop.eup %4749 }
 0x495   : > { %v4752_v39 = vpop.eup %4751  ;;  %v2841_v14 = vadd.f32 1.0, %v4750_v37  ;;  %4759 = vrcp.f32 %v2842_v10 }
 0x496   : > { %v4754_v15 = vpop.eup %4753 }
 0x497   : > { %2950 = vperm.xlu1 %4566, %v4742_v12   ;;  %4761 = vrcp.f32 %v2841_v14  ;;  %v2840_v59 = vadd.f32 1.0, %v4754_v15 }
 0x498   : > { %v4756_v41 = vpop.eup %4755 }
 0x499   : > { %4763 = vrcp.f32 %v2840_v59  ;;  %v4758_v27 = vpop.eup %4757 }
 0x49b   : > { %2965 = vperm.xlu1 %4566, %v4744_v52  }
 0x49f   : > { %2955 = vperm.xlu1 %4566, %v4748_v28  }
 0x4a2   : > { %v4760_v4 = vpop.eup %4759 }
 0x4a3   : > { %2915 = vperm.xlu1 %4566, %v4752_v39  }
 0x4a4   : > { %v4762_v0 = vpop.eup %4761 }
 0x4a6   : > { %v4764_v7 = vpop.eup %4763 }
 0x4a7   : > { %2910 = vperm.xlu1 %4566, %v4756_v41  }
 0x4ab   : > { %2905 = vperm.xlu1 %4566, %v4758_v27  }
 0x4af   : > { %2900 = vperm.xlu1 %4566, %v4760_v4  }
 0x4b3   : > { %2895 = vperm.xlu1 %4566, %v4762_v0  }
 0x4b7   : > { %2890 = vperm.xlu1 %4566, %v4764_v7  }
 0x4bb   : > { %3002 = vperm.xlu1 %4566, %v2984_v34  }
 0x4e2   : > { %v2961_v40 = vpop.permute.xlu0 %2960 }
 0x4e3   : > { %v2982_v30 = vmul.f32 %v2961_v40, %v5591_v60 }
 0x4e5   : > { %v3094_v46 = vmul.f32 %v3073_v8, %v2982_v30 }
 0x4e6   : > { %v3038_v6 = vpop.permute.xlu0 %3037 }
 0x4ea   : > { %v3033_v33 = vpop.permute.xlu0 %3032 }
 0x4ee   : > { %v3028_v45 = vpop.permute.xlu0 %3027 }
 0x4f2   : > { %v3023_v37 = vpop.permute.xlu0 %3022 }
 0x4f6   : > { %v3018_v27 = vpop.permute.xlu0 %3017 }
 0x4fa   : > { %v2921_v19 = vpop.permute.xlu1 %2920  ;;  %v3013_v8 = vpop.permute.xlu0 %3012 }
 0x4fe   : > { %v2926_v24 = vpop.permute.xlu1 %2925 }
 0x502   : > { %v2941_v44 = vpop.permute.xlu1 %2940 }
 0x503   : > { %v2978_v60 = vmul.f32 %v2941_v44, %v5634_v11  ;;  %v2975_v11 = vmul.f32 %v2926_v24, %v5617_v16 }
 0x505   : > { %v3087_v4 = vmul.f32 %v3038_v6, %v2975_v11 }
 0x506   : > { %v2931_v36 = vpop.permute.xlu1 %2930 }
 0x507   : > { %v2976_v14 = vmul.f32 %v2931_v36, %v5645_v43 }
 0x509   : > { %v3088_v41 = vmul.f32 %v3043_v32, %v2976_v14 }
 0x50a   : > { %v2946_v48 = vpop.permute.xlu1 %2945 }
 0x50b   : > { %v2979_v35 = vmul.f32 %v2946_v48, %v5588_v53  ;;  %v3090_v53 = vmul.f32 %v3053_v26, %v2978_v60  ;;  %v3097_v26 = vshrl.u32 %v1093_v61, 7  ;;  %v4835_v61 = vmov 1.0   ;;  %v3122_v48 = vld [vmem:[#allocation3] sm:$0xff] }
 0x50d   : > { %v3098_v32 = vadd.s32 8, %v3097_v26  ;;  %v3099_v36 = vadd.s32 16, %v3097_v26  ;;  %v3101_v40 = vadd.s32 32, %v3097_v26 }
 0x50e   : > { %v2936_v2 = vpop.permute.xlu1 %2935 }
 0x512   : > { %v2951_v50 = vpop.permute.xlu1 %2950 }
 0x513   : > { %v2980_v12 = vmul.f32 %v2951_v50, %v5621_v54  ;;  %v3091_v54 = vmul.f32 %v3058_v56, %v2979_v35 }
 0x516   : > { %v2966_v13 = vpop.permute.xlu1 %2965 }
 0x517   : > { %v2983_v3 = vmul.f32 %v2966_v13, %v5608_v42  ;;  %v3092_v42 = vmul.f32 %v3063_v57, %v2980_v12 }
 0x519   : > { %v3095_v62 = vmul.f32 %v3078_v18, %v2983_v3 }
 0x51a   : > { %v2956_v31 = vpop.permute.xlu1 %2955 }
 0x51b   : > { %v2981_v52 = vmul.f32 %v2956_v31, %v5612_v23  ;;  %4399 = vmatpush3.msra.mxu0 %v3095_v62  ;;  %v2977_v23 = vmul.f32 %v2936_v2, %v5605_v47  ;;  %v2974_v47 = vmul.f32 %v2921_v19, %v5658_v63  ;;  %v3008_v19 = vpop.permute.xlu0 %3007  ;;  %v3124_v62 = vld [vmem:[#allocation3 + $0x10] sm:$0xff] }
 0x51c   : > { %4400 = vmatprep.subr.mxu0 %v4833_v1 }
 0x51d   : > { %v3093_v28 = vmul.f32 %v3068_v55, %v2981_v52  ;;  %4401 = vmatpush3.msra.mxu0 %v3094_v46  ;;  %v3089_v15 = vmul.f32 %v3048_v9, %v2977_v23  ;;  %v3086_v16 = vmul.f32 %v3033_v33, %v2974_v47  ;;  %v3123_v33 = vld [vmem:[#allocation3 + $0x8] sm:$0xff]  ;;  %v3125_v52 = vld [vmem:[#allocation3 + $0x18] sm:$0xff] }
 0x51e   : > { %v2916_v10 = vpop.permute.xlu1 %2915  ;;  %4402 = vmatprep.subr.mxu0 %v4833_v1 }
 0x51f   : > { %4403 = vmatpush3.msra.mxu0 %v3093_v28  ;;  %v2973_v43 = vmul.f32 %v2916_v10, %v5629_v29  ;;  %v3126_v28 = vld [vmem:[#allocation3 + $0x20] sm:$0xff] }
 0x520   : > { %4404 = vmatprep.subr.mxu0 %v4833_v1 }
 0x521   : > { %4405 = vmatpush3.msra.mxu0 %v3092_v42  ;;  %v3085_v34 = vmul.f32 %v3028_v45, %v2973_v43 }
 0x522   : > { %v2911_v39 = vpop.permute.xlu1 %2910  ;;  %4406 = vmatprep.subr.mxu0 %v4833_v1 }
 0x523   : > { %4407 = vmatpush3.msra.mxu0 %v3091_v54  ;;  %v2972_v7 = vmul.f32 %v2911_v39, %v5666_v49 }
 0x524   : > { %4408 = vmatprep.subr.mxu0 %v4833_v1 }
 0x525   : > { %4409 = vmatpush3.msra.mxu0 %v3090_v53  ;;  %v3084_v29 = vmul.f32 %v3023_v37, %v2972_v7 }
 0x526   : > { %v2906_v59 = vpop.permute.xlu1 %2905  ;;  %4410 = vmatprep.subr.mxu0 %v4833_v1 }
 0x527   : > { %4411 = vmatpush3.msra.mxu0 %v3089_v15  ;;  %v2971_v63 = vmul.f32 %v2906_v59, %v5641_v38 }
 0x528   : > { %4412 = vmatprep.subr.mxu0 %v4833_v1 }
 0x529   : > { %4413 = vmatpush3.msra.mxu0 %v3088_v41  ;;  %v3083_v56 = vmul.f32 %v3018_v27, %v2971_v63 }
 0x52a   : > { %v2901_v0 = vpop.permute.xlu1 %2900  ;;  %4414 = vmatprep.subr.mxu0 %v4833_v1 }
 0x52b   : > { %4415 = vmatpush3.msra.mxu0 %v3087_v4  ;;  %v2970_v57 = vmul.f32 %v2901_v0, %v5674_v5  ;;  %v4085_v5 = vld [vmem:[%s6008_s30] ss:$0 sm:$0xff] }
 0x52c   : > { %4416 = vmatprep.subr.mxu0 %v4833_v1  ;;  %vm3107_vm8 = vcmp.eq.s32.totalorder %v3097_v26, %v4085_v5  ;;  %vm3108_vm9 = vcmp.eq.s32.totalorder %v3098_v32, %v4085_v5  ;;  %vm3109_vm10 = vcmp.eq.s32.totalorder %v3099_v36, %v4085_v5  ;;  %vm3111_vm12 = vcmp.eq.s32.totalorder %v3101_v40, %v4085_v5 }
 0x52d   : > { %4417 = vmatpush3.msra.mxu0 %v3086_v16  ;;  %v3082_v38 = vmul.f32 %v3013_v8, %v2970_v57 }
 0x52e   : > { %v2896_v55 = vpop.permute.xlu1 %2895  ;;  %4418 = vmatprep.subr.mxu0 %v4833_v1 }
 0x52f   : > { %4419 = vmatpush3.msra.mxu0 %v3085_v34  ;;  %v2969_v49 = vmul.f32 %v2896_v55, %v5653_v58 }
 0x530   : > { %4420 = vmatprep.subr.mxu0 %v4833_v1 }
 0x531   : > { %4421 = vmatpush3.msra.mxu0 %v3084_v29  ;;  %v3081_v24 = vmul.f32 %v3008_v19, %v2969_v49 }
 0x532   : > { %v2891_v18 = vpop.permute.xlu1 %2890  ;;  %4422 = vmatprep.subr.mxu0 %v4833_v1 }
 0x533   : > { %4423 = vmatpush3.msra.mxu0 %v3083_v56  ;;  %v2968_v9 = vmul.f32 %v2891_v18, %v5681_v51  ;;  %v3100_v51 = vadd.s32 24, %v3097_v26 }
 0x534   : > { %4424 = vmatprep.subr.mxu0 %v4833_v1 }
 0x535   : > { %4425 = vmatpush3.msra.mxu0 %v3082_v38  ;;  %vm3110_vm11 = vcmp.eq.s32.totalorder %v3100_v51, %v4085_v5 }
 0x536   : > { %v3003_v58 = vpop.permute.xlu1 %3002  ;;  %4426 = vmatprep.subr.mxu0 %v4833_v1 }
 0x537   : > { %v3080_v44 = vmul.f32 %v3003_v58, %v2968_v9  ;;  %4427 = vmatpush3.msra.mxu0 %v3081_v24 }
 0x538   : > { %4428 = vmatprep.subr.mxu0 %v4833_v1 }
 0x539   : > { %4429 = vmatpush3.msra.mxu0 %v3080_v44 }
 0x53a   : > { %4431 = vmatmul.mubr.msk.f32.vlgmr.msra.gmra.mxu0 %vm3107_vm8, %v4835_v61 }
 0x53b   : > { %4433 = vmatprep.mubr.msk.f32.mxu0 %vm4834_vm7, %v4833_v1 }
 0x53e   : > { %4434 = vmatmul.mubr.msk.f32.gmra.mxu0 %vm3108_vm9, %v4835_v61 }
 0x53f   : > { %4436 = vmatprep.mubr.msk.f32.mxu0 %vm4834_vm7, %v4833_v1 }
 0x542   : > { %4437 = vmatmul.mubr.msk.f32.gmra.mxu0 %vm3109_vm10, %v4835_v61 }
 0x543   : > { %4439 = vmatprep.mubr.msk.f32.mxu0 %vm4834_vm7, %v4833_v1 }
 0x546   : > { %4440 = vmatmul.mubr.msk.f32.gmra.mxu0 %vm3110_vm11, %v4835_v61 }
 0x547   : > { %4442 = vmatprep.mubr.msk.f32.mxu0 %vm4834_vm7, %v4833_v1 }
 0x54a   : > { %4443 = vmatmul.mubr.msk.f32.gmra.mxu0 %vm3111_vm12, %v4835_v61 }
 0x5fa   : > { %v3193_v2 = vpop.f32.mrf.mxu0 }
 0x5fb   : > { %v3217_v6 = vadd.f32 %v3193_v2, %v3122_v48 }
 0x5fc   : > { %v4432_v50 = vpop.f32.mrf.mxu0 }
 0x5fd   : > { %3222 = vst.msk [vmem:[#allocation3] sm:$0xff] %vm1742_vm2, %v3217_v6 }
 0x5fe   : > { %v3198_v13 = vpop.f32.mrf.mxu0 }
 0x5ff   : > { %v3218_v30 = vadd.f32 %v3198_v13, %v3123_v33 }
 0x600   : > { %v4435_v3 = vpop.f32.mrf.mxu0 }
 0x601   : > { %3223 = vst.msk [vmem:[#allocation3 + $0x8] sm:$0xff] %vm1742_vm2, %v3218_v30 }
 0x602   : > { %v3203_v31 = vpop.f32.mrf.mxu0 }
 0x603   : > { %v3219_v46 = vadd.f32 %v3203_v31, %v3124_v62 }
 0x604   : > { %v4438_v12 = vpop.f32.mrf.mxu0 }
 0x605   : > { %3224 = vst.msk [vmem:[#allocation3 + $0x10] sm:$0xff] %vm1742_vm2, %v3219_v46 }
 0x606   : > { %v3208_v1 = vpop.f32.mrf.mxu0 }
 0x607   : > { %v3220_v45 = vadd.f32 %v3208_v1, %v3125_v52 }
 0x608   : > { %v4441_v35 = vpop.f32.mrf.mxu0 }
 0x609   : > { %3225 = vst.msk [vmem:[#allocation3 + $0x18] sm:$0xff] %vm1742_vm2, %v3220_v45  ;;  %3230 = sbr.rel (%p4096_p12) target bundleno = 2038 (0x7f6), region = 124 }
 0x60a   : > { %v3213_v10 = vpop.f32.mrf.mxu0 }
 0x60b   : > { %v3221_v60 = vadd.f32 %v3213_v10, %v3126_v28 }
 0x60c   : > { %v4444_v42 = vpop.f32.mrf.mxu0 }
 0x60d   : > { %3226 = vst.msk [vmem:[#allocation3 + $0x20] sm:$0xff] %vm1742_vm2, %v3221_v60 }
 0x60e   : > { %v4765_v54 = vld [vmem:[%s5086_s13 + $0x8] sm:$0xff]   ;;  %v4836_v23 = vmov 0.0   ;;  %v4767_v39 = vld [vmem:[%s5086_s13] sm:$0xff]   ;;  %vm4837_vm13 = vmmov 0   ;;  %v3239_v11 = vld [vmem:[#allocation3 + $0x8] sm:$0xff]  ;;  %vm3423_vm14 = vcmask 1041408   ;;  %v3235_v47 = vpack.c.bf16 %v5151_v22, %v5160_v25 }
 0x60f   : > { %4445 = vmatprep.subr.bf16.mxu0 %v4836_v23  ;;  %4461 = vmatprep.subr.bf16.mxu1 %v4836_v23  ;;  %v4766_v37 = vld [vmem:[%s6009_s24 + $0x8] sm:$0xff]   ;;  %v4768_v53 = vld [vmem:[%s6009_s24] sm:$0xff]   ;;  %v3240_v27 = vld [vmem:[#allocation3 + $0x10] sm:$0xff]  ;;  %v3236_v0 = vpack.c.bf16 %v5140_v20, %v5143_v21  ;;  %v3237_v34 = vpack.c.bf16 %v5135_v17, %v5135_v17  ;;  %vm3413_vm15 = vcmask 31744   ;;  %s6014_s6 = sld [smem:[#allocation35_spill]] (!%p4122_p13) }
 0x610   : > { %4446 = vmatpush3.bf16.msra.mxu0 %v4765_v54  ;;  %4449 = vmatprep.mubr.msk.bf16.mxu0 %vm4837_vm13, %v4836_v23  ;;  %v3238_v14 = vld [vmem:[#allocation3] sm:$0xff]  ;;  %v3409_v15 = vld [vmem:[%s5096_s29] sm:$0x3]  ;;  %s6010_s29 = sld [smem:[#allocation16_spill]] }
 0x611   : > { %4462 = vmatpush3.bf16.msra.mxu1 %v4766_v37  ;;  %4447 = vmatprep.subr.bf16.mxu0 %v4836_v23  ;;  %v3247_v59 = vpack.c.bf16 %v3239_v11, %v3238_v14  ;;  %v3425_v41 = vsel %vm3423_vm14, %v3409_v15, 0  ;;  %v3241_v4 = vld [vmem:[#allocation3 + $0x18] sm:$0xff]  ;;  %v4769_v38 = vld [vmem:[%s5101_s2 + $0x8] sm:$0xff]  }
 0x612   : > { %4463 = vmatprep.subr.bf16.mxu1 %v4836_v23  ;;  %4465 = vmatprep.mubr.msk.bf16.mxu1 %vm4837_vm13, %v4836_v23  ;;  %v3248_v43 = vpack.c.bf16 %v3241_v4, %v3240_v27  ;;  %v4770_v26 = vld [vmem:[%s5101_s2] sm:$0xff]  }
 0x613   : > { %v4110_v35 = vld [vmem:[%s1052_s3] ss:$0 sm:$0xff] }
 0x614   : > { %4448 = vmatpush3.bf16.msra.mxu0 %v4767_v39  ;;  %v3242_v16 = vld [vmem:[#allocation3 + $0x20] sm:$0xff] }
 0x615   : > { %4464 = vmatpush3.bf16.msra.mxu1 %v4768_v53  ;;  %4477 = vmatprep.subr.bf16.mxu0 %v4836_v23  ;;  %v3249_v7 = vpack.c.bf16 %v3242_v16, %v3242_v16 }
 0x616   : > { %4491 = vmatprep.subr.bf16.mxu1 %v4836_v23  ;;  %v3404_v63 = vld [vmem:[%s6010_s29] sm:$0xff]  ;;  %v3405_v8 = vld [vmem:[%s6010_s29 + $0x8] sm:$0xff]  ;;  %v3406_v29 = vld [vmem:[%s6010_s29 + $0x10] sm:$0xff] }
 0x617   : > { %4450 = vmatmul.mubr.msk.bf16.vlgmr.msra.gmra.mxu0 %vm1742_vm2, %v3247_v59  ;;  %v3410_v55 = vpack.c.bf16 %v3405_v8, %v3404_v63  ;;  %v3407_v57 = vld [vmem:[%s6010_s29 + $0x18] sm:$0xff]  ;;  %v3408_v49 = vld [vmem:[%s6010_s29 + $0x20] sm:$0xff] }
 0x618   : > { %4466 = vmatmul.mubr.msk.bf16.vlgmr.msra.gmra.mxu1 %vm1742_vm2, %v3235_v47  ;;  %4478 = vmatpush3.bf16.msra.mxu0 %v3425_v41  ;;  %v3411_v56 = vpack.c.bf16 %v3407_v57, %v3406_v29  ;;  %v3412_v18 = vpack.c.bf16 %v3408_v49, %v3408_v49 }
 0x619   : > { %4453 = vmatprep.mubr.msk.bf16.mxu0 %vm4837_vm13, %v4836_v23  ;;  %4469 = vmatprep.mubr.msk.bf16.mxu1 %vm4837_vm13, %v4836_v23 }
 0x61a   : > { %4492 = vmatpush3.bf16.msra.mxu1 %v4769_v38 }
 0x61b   : > { %4493 = vmatprep.subr.bf16.mxu1 %v4836_v23 }
 0x61e   : > { %4494 = vmatpush3.bf16.msra.mxu1 %v4770_v26 }
 0x61f   : > { %4454 = vmatmul.mubr.msk.bf16.gmra.mxu0 %vm1742_vm2, %v3248_v43 }
 0x620   : > { %4470 = vmatmul.mubr.msk.bf16.gmra.mxu1 %vm1742_vm2, %v3236_v0  ;;  %4457 = vmatprep.mubr.msk.bf16.mxu0 %vm4837_vm13, %v4836_v23 }
 0x621   : > { %4473 = vmatprep.mubr.msk.bf16.mxu1 %vm4837_vm13, %v4836_v23 }
 0x627   : > { %4458 = vmatmul.mubr.msk.bf16.gmra.mxu0 %vm1742_vm2, %v3249_v7 }
 0x628   : > { %4474 = vmatmul.mubr.msk.bf16.gmra.mxu1 %vm1742_vm2, %v3237_v34  ;;  %4479 = vmatprep.mubr.msk.bf16.mxu0 %vm4837_vm13, %v4836_v23 }
 0x629   : > { %4495 = vmatprep.mubr.msk.bf16.mxu1 %vm4837_vm13, %v4836_v23 }
 0x62f   : > { %4480 = vmatmul.mubr.msk.bf16.vlgmr.msra.gmra.mxu0 %vm3413_vm15, %v3410_v55 }
 0x630   : > { %4483 = vmatprep.mubr.msk.bf16.mxu0 %vm4837_vm13, %v4836_v23 }
 0x637   : > { %4484 = vmatmul.mubr.msk.bf16.gmra.mxu0 %vm3413_vm15, %v3411_v56 }
 0x638   : > { %4487 = vmatprep.mubr.msk.bf16.mxu0 %vm4837_vm13, %v4836_v23 }
 0x63f   : > { %4488 = vmatmul.mubr.msk.bf16.gmra.mxu0 %vm3413_vm15, %v3412_v18 }
 0x6d7   : > { %v3305_v19 = vpop.f32.mrf.mxu0 }
 0x6d8   : > { %v3382_v5 = vpop.f32.mrf.mxu1 }
 0x6d9   : > { %v4451_v24 = vpop.f32.mrf.mxu0  ;;  %v3383_v52 = vadd.f32 %v3382_v5, %v3305_v19 }
 0x6da   : > { %v4467_v9 = vpop.f32.mrf.mxu1 }
 0x6db   : > { %v3308_v58 = vpop.f32.mrf.mxu0 }
 0x6dc   : > { %v3385_v44 = vpop.f32.mrf.mxu1 }
 0x6dd   : > { %v4452_v32 = vpop.f32.mrf.mxu0  ;;  %v3386_v60 = vadd.f32 %v3385_v44, %v3308_v58 }
 0x6de   : > { %v4468_v61 = vpop.f32.mrf.mxu1 }
 0x6df   : > { %v3313_v36 = vpop.f32.mrf.mxu0 }
 0x6e0   : > { %v3390_v51 = vpop.f32.mrf.mxu1 }
 0x6e1   : > { %v4455_v40 = vpop.f32.mrf.mxu0  ;;  %v3391_v14 = vadd.f32 %v3390_v51, %v3313_v36 }
 0x6e2   : > { %v4471_v48 = vpop.f32.mrf.mxu1 }
 0x6e3   : > { %v3316_v2 = vpop.f32.mrf.mxu0 }
 0x6e4   : > { %v3393_v6 = vpop.f32.mrf.mxu1 }
 0x6e5   : > { %v4456_v50 = vpop.f32.mrf.mxu0  ;;  %v3394_v27 = vadd.f32 %v3393_v6, %v3316_v2 }
 0x6e6   : > { %v4472_v33 = vpop.f32.mrf.mxu1 }
 0x6e7   : > { %v3321_v13 = vpop.f32.mrf.mxu0 }
 0x6e8   : > { %v3398_v30 = vpop.f32.mrf.mxu1 }
 0x6e9   : > { %v4459_v3 = vpop.f32.mrf.mxu0  ;;  %v3399_v34 = vadd.f32 %v3398_v30, %v3321_v13 }
 0x6ea   : > { %v4475_v62 = vpop.f32.mrf.mxu1 }
 0x6eb   : > { %v3324_v31 = vpop.f32.mrf.mxu0 }
 0x6ec   : > { %v3401_v46 = vpop.f32.mrf.mxu1 }
 0x6ed   : > { %v4460_v12 = vpop.f32.mrf.mxu0 }
 0x6ee   : > { %v4476_v1 = vpop.f32.mrf.mxu1 }
 0x6ef   : > { %v3461_v45 = vpop.f32.mrf.mxu0 }
 0x6f0   : > { %v3483_v28 = vadd.f32 %v3461_v45, %v3383_v52  ;;  %v4121_v52 = vld [vmem:[%s1060_s20] ss:$0 sm:$0xff] }
 0x6f1   : > { %v4481_v10 = vpop.f32.mrf.mxu0 }
 0x6f2   : > { %v3495_v42 = vadd.f32 %v4110_v35, %v3483_v28 }
 0x6f3   : > { %v3464_v54 = vpop.f32.mrf.mxu0 }
 0x6f4   : > { %v4111_v37 = vmul.f32 -1.442695, %v3495_v42  ;;  %v3484_v39 = vadd.f32 %v3464_v54, %v3386_v60 }
 0x6f5   : > { %v4482_v53 = vpop.f32.mrf.mxu0 }
 0x6f6   : > { %4771 = vpow2.f32 %v4111_v37  ;;  %v3496_v11 = vadd.f32 %v4110_v35, %v3484_v39 }
 0x6f7   : > { %v3469_v15 = vpop.f32.mrf.mxu0 }
 0x6f8   : > { %v4112_v59 = vmul.f32 -1.442695, %v3496_v11  ;;  %v3485_v47 = vadd.f32 %v3469_v15, %v3391_v14 }
 0x6f9   : > { %v4485_v41 = vpop.f32.mrf.mxu0 }
 0x6fa   : > { %4773 = vpow2.f32 %v4112_v59  ;;  %v3497_v4 = vadd.f32 %v4110_v35, %v3485_v47 }
 0x6fb   : > { %v3472_v43 = vpop.f32.mrf.mxu0 }
 0x6fc   : > { %v4113_v0 = vmul.f32 -1.442695, %v3497_v4  ;;  %v3486_v16 = vadd.f32 %v3472_v43, %v3394_v27 }
 0x6fd   : > { %v4486_v7 = vpop.f32.mrf.mxu0 }
 0x6fe   : > { %4775 = vpow2.f32 %v4113_v0  ;;  %v3498_v63 = vadd.f32 %v4110_v35, %v3486_v16 }
 0x6ff   : > { %v3477_v8 = vpop.f32.mrf.mxu0 }
 0x700   : > { %v4114_v55 = vmul.f32 -1.442695, %v3498_v63  ;;  %v3487_v29 = vadd.f32 %v3477_v8, %v3399_v34 }
 0x701   : > { %v4489_v57 = vpop.f32.mrf.mxu0 }
 0x702   : > { %4777 = vpow2.f32 %v4114_v55  ;;  %v3499_v56 = vadd.f32 %v4110_v35, %v3487_v29 }
 0x703   : > { %v4772_v49 = vpop.eup %4771  ;;  %v3480_v18 = vpop.f32.mrf.mxu0 }
 0x704   : > { %v3515_v38 = vadd.f32 1.0, %v4772_v49  ;;  %v4115_v26 = vmul.f32 -1.442695, %v3499_v56 }
 0x705   : > { %v4490_v19 = vpop.f32.mrf.mxu0 }
 0x706   : > { %4779 = vpow2.f32 %v4115_v26 }
 0x707   : > { %v4774_v5 = vpop.eup %4773  ;;  %4781 = vrcp.f32 %v3515_v38 }
 0x708   : > { %v3516_v24 = vadd.f32 1.0, %v4774_v5 }
 0x70a   : > { %4783 = vrcp.f32 %v3516_v24 }
 0x70b   : > { %v4776_v9 = vpop.eup %4775 }
 0x70c   : > { %v3517_v58 = vadd.f32 1.0, %v4776_v9 }
 0x70e   : > { %4785 = vrcp.f32 %v3517_v58 }
 0x70f   : > { %v4778_v44 = vpop.eup %4777 }
 0x710   : > { %v3518_v32 = vadd.f32 1.0, %v4778_v44 }
 0x712   : > { %4787 = vrcp.f32 %v3518_v32 }
 0x713   : > { %v4780_v61 = vpop.eup %4779 }
 0x714   : > { %v4782_v36 = vpop.eup %4781  ;;  %v3519_v51 = vadd.f32 1.0, %v4780_v61 }
 0x715   : > { %v3530_v48 = vmul.f32 %v4782_v36, %v3495_v42 }
 0x716   : > { %4789 = vrcp.f32 %v3519_v51 }
 0x717   : > { %v4784_v40 = vpop.eup %4783 }
 0x718   : > { %v3531_v2 = vmul.f32 %v4784_v40, %v3496_v11 }
 0x71a   : > { %v3539_v6 = vpack.c.bf16 %v3531_v2, %v3530_v48 }
 0x71b   : > { %v4786_v50 = vpop.eup %4785 }
 0x71c   : > { %4496 = vmatmul.mubr.msk.bf16.vlgmr.msra.gmra.mxu1 %vm1742_vm2, %v3539_v6  ;;  %v3532_v13 = vmul.f32 %v4786_v50, %v3497_v4 }
 0x71d   : > { %4499 = vmatprep.mubr.msk.bf16.mxu1 %vm4837_vm13, %v4836_v23 }
 0x71f   : > { %v4788_v33 = vpop.eup %4787 }
 0x720   : > { %v3533_v30 = vmul.f32 %v4788_v33, %v3498_v63 }
 0x722   : > { %v3540_v3 = vpack.c.bf16 %v3533_v30, %v3532_v13 }
 0x723   : > { %v4790_v62 = vpop.eup %4789 }
 0x724   : > { %4500 = vmatmul.mubr.msk.bf16.gmra.mxu1 %vm1742_vm2, %v3540_v3  ;;  %v3534_v31 = vmul.f32 %v4790_v62, %v3499_v56 }
 0x725   : > { %4503 = vmatprep.mubr.msk.bf16.mxu1 %vm4837_vm13, %v4836_v23 }
 0x726   : > { %v3541_v46 = vpack.c.bf16 %v3534_v31, %v3534_v31 }
 0x72c   : > { %4504 = vmatmul.mubr.msk.bf16.gmra.mxu1 %vm1742_vm2, %v3541_v46 }
 0x7dc   : > { %v3597_v12 = vpop.f32.mrf.mxu1 }
 0x7dd   : > { %v3619_v1 = vadd.f32 %v3597_v12, %v5160_v25 }
 0x7de   : > { %v4497_v45 = vpop.f32.mrf.mxu1 }
 0x7df   : > { %v3631_v35 = vadd.f32 %v4121_v52, %v3619_v1 }
 0x7e0   : > { %v3600_v28 = vpop.f32.mrf.mxu1 }
 0x7e1   : > { %3636 = vst.msk [vmem:[#allocation2] sm:$0xff] %vm1742_vm2, %v3631_v35  ;;  %v3620_v10 = vadd.f32 %v3600_v28, %v5151_v22 }
 0x7e2   : > { %v4498_v23 = vpop.f32.mrf.mxu1 }
 0x7e3   : > { %v3632_v60 = vadd.f32 %v4121_v52, %v3620_v10 }
 0x7e4   : > { %v3605_v42 = vpop.f32.mrf.mxu1 }
 0x7e5   : > { %3637 = vst.msk [vmem:[#allocation2 + $0x8] sm:$0xff] %vm1742_vm2, %v3632_v60  ;;  %v3621_v54 = vadd.f32 %v3605_v42, %v5143_v21 }
 0x7e6   : > { %v4501_v37 = vpop.f32.mrf.mxu1 }
 0x7e7   : > { %v3633_v39 = vadd.f32 %v4121_v52, %v3621_v54 }
 0x7e8   : > { %v3608_v53 = vpop.f32.mrf.mxu1 }
 0x7e9   : > { %3638 = vst.msk [vmem:[#allocation2 + $0x10] sm:$0xff] %vm1742_vm2, %v3633_v39  ;;  %v3622_v25 = vadd.f32 %v3608_v53, %v5140_v20 }
 0x7ea   : > { %v4502_v14 = vpop.f32.mrf.mxu1 }
 0x7eb   : > { %v3634_v11 = vadd.f32 %v4121_v52, %v3622_v25 }
 0x7ec   : > { %v3613_v15 = vpop.f32.mrf.mxu1 }
 0x7ed   : > { %3639 = vst.msk [vmem:[#allocation2 + $0x18] sm:$0xff] %vm1742_vm2, %v3634_v11  ;;  %v3623_v22 = vadd.f32 %v3613_v15, %v5135_v17 }
 0x7ee   : > { %v4505_v59 = vpop.f32.mrf.mxu1  ;;  %3644 = sbr.rel (%p4122_p13) target bundleno = 2038 (0x7f6), region = 128 }
 0x7ef   : > { %v3635_v47 = vadd.f32 %v4121_v52, %v3623_v22 }
 0x7f0   : > { %v3616_v41 = vpop.f32.mrf.mxu1 }
 0x7f1   : > { %3640 = vst.msk [vmem:[#allocation2 + $0x20] sm:$0xff] %vm1742_vm2, %v3635_v47 }
 0x7f2   : > { %v4506_v21 = vpop.f32.mrf.mxu1 }
 0x7f3   : > { %3645 = vst.msk [vmem:[%s6014_s6] sm:$0xff] %vm1742_vm2, %v3631_v35  ;;  %3646 = vst.msk [vmem:[%s6014_s6 + $0x8] sm:$0xff] %vm1742_vm2, %v3632_v60 }
 0x7f4   : > { %3647 = vst.msk [vmem:[%s6014_s6 + $0x10] sm:$0xff] %vm1742_vm2, %v3633_v39  ;;  %3648 = vst.msk [vmem:[%s6014_s6 + $0x18] sm:$0xff] %vm1742_vm2, %v3634_v11 }
 0x7f5   : > { %3649 = vst.msk [vmem:[%s6014_s6 + $0x20] sm:$0xff] %vm1742_vm2, %v3635_v47 }
 0x7f6 PF: > { %s6015_s21 = sld [smem:[#allocation7_spill]] }
 0x7f7   : > { %s6016_s4 = sld [smem:[#allocation5_spill]] }
 0x7f8   : > { %s6017_s30 = sld [smem:[#allocation6_spill]] }
 0x7f9   : > { %s6018_s24 = sld [smem:[#allocation8_spill]] }
 0x7fa   : > { %s6019_s25 = sld [smem:[#allocation9_spill]] }
 0x7fc   : > { %s33_s5 = sadd.s32 1, %s6015_s21  }
 0x7fd   : > { %p30_p0 = scmp.ge.s32.totalorder %s33_s5, 8  }
 0x7ff   :  { %32 = sbr.rel (!%p30_p0) target bundleno = 22 (0x16), region = 214 }

</bundles_post_ra>
